<compile_context>
chip_gen: v7x
topology: tpu7x:2x2x1
jax: 0.10.0
libtpu: 0.0.40
codegen_flags: <defaults>
</compile_context>

<pallas_src>
import math
import functools

import jax
import jax.numpy as jnp
from jax.experimental import pallas as pl
from jax.experimental.pallas import tpu as pltpu
from jax.scipy.linalg import block_diag


def _round_up(v, m):
  return ((v + m - 1) // m) * m


def _auto_tile_config():
  """Residue tile + scoped-VMEM limit per TPU generation."""
  vmem_cap = 64 * 1024 * 1024               # conservative default (v7x per-TC)
  try:
    vmem_cap = int(pltpu.get_tpu_info().vmem_capacity_bytes)
  except Exception:                          # not a TPU / API unavailable
    pass
  if vmem_cap >= 96 * 1024 * 1024:           # v5e / v6e (128 MiB physical VMEM)
    return 512, 80 * 1024 * 1024
  return 256, 48 * 1024 * 1024               # v7x (64 MiB physical, 2 TCs)


def _pick_tiles(n, tile_n):
  """Balanced residue tile (multiple of 8) and padded residue count."""
  max_tn = min(tile_n, _round_up(n, 8))
  num_tiles = max(1, -(-n // max_tn))
  if num_tiles < 2 and n > 8:                # keep both v7x TensorCores busy
    num_tiles = 2
  tn = _round_up(-(-n // num_tiles), 8)
  return tn, tn * num_tiles


def _equivariant_ffn_kernel(
    h_ref, xf_ref, amask_ref, rmask_ref, offs_ref,
    w1h_ref, w1c_ref, w1r_ref, b1_ref, w2_ref, b2_ref, w3_ref, b3_ref,
    h_out_ref, x_out_ref,
    *, inv_cutoff, gauss_coeff, residual, matmul_dtype):
  f32 = jnp.float32
  act_dtype = matmul_dtype      # silu in bf16 on bf16-EUP chips, f32 otherwise
  dot = lambda a_, b_: jnp.dot(a_.astype(matmul_dtype), b_.astype(matmul_dtype),
                               preferred_element_type=f32)

  h = h_ref[...].astype(f32)                       # [TN, A, Din]
  tn, a, d_in = h.shape
  x = xf_ref[...].astype(f32).reshape(tn, a, 3)    # lane-dense load -> [TN,A,3]
  am = amask_ref[...].astype(f32)                  # [TN, A]
  rm = rmask_ref[...].astype(f32)                  # [TN, 1]

  n_rbf = offs_ref.shape[-1]
  two_dh = w2_ref.shape[-1]
  d_out = h_out_ref.shape[-1] // a
  am3 = am[..., None]                              # [TN, A, 1]

  # Masked per-residue centers (atom axis = sublanes; XLU reduction).
  # Padded residues have cnt == 0; the zero-guard keeps them finite (the
  # reference would produce NaN there) -- they carry atom_mask == 0 everywhere
  # and are sliced off by the wrapper, so this never changes visible outputs.
  cnt = jnp.sum(am, axis=-1, keepdims=True)        # [TN, 1]
  inv_cnt = jnp.where(cnt > 0.0, 1.0 / cnt, 0.0)
  x_c = jnp.sum(x * am3, axis=1) * inv_cnt         # [TN, 3]
  h_c = jnp.sum(h * am3, axis=1) * inv_cnt         # [TN, Din]

  x_o = (x - x_c[:, None, :]) * am3                # [TN, A, 3]
  dist = jnp.sqrt(jnp.sum(x_o * x_o, axis=-1))     # [TN, A]

  # RadialBasis: polynomial envelope (exponent 5) * Gaussian smearing on [0,1].
  ds = dist * inv_cutoff
  ds2 = ds * ds
  ds6 = ds2 * ds2 * ds2
  env = 1.0 - 28.0 * ds6 + 48.0 * ds6 * ds - 21.0 * ds6 * ds2
  env = jnp.where(ds < 1.0, env, 0.0)              # [TN, A]
  offs = offs_ref[...].reshape(1, 1, n_rbf)
  diff = ds[..., None] - offs                      # [TN, A, n_rbf]
  radial = env[..., None] * jnp.exp(gauss_coeff * diff * diff)

  # Fused mlp_h / mlp_z (block-diagonal weights, shared input).  Layer 1 is
  # split by input group; the per-residue H_c term (with b1 folded in) is
  # computed once per residue and kept in f32.
  h2 = h.reshape(tn * a, d_in)
  r2 = radial.reshape(tn * a, n_rbf)
  hc_term = jnp.dot(h_c, w1c_ref[...].astype(f32),
                    preferred_element_type=f32) + b1_ref[...]     # [TN, 2dh]
  pre1 = (dot(h2, w1h_ref[...]) + dot(r2, w1r_ref[...])).reshape(tn, a, two_dh)
  pre1 = pre1 + hc_term[:, None, :]
  hid1 = jax.nn.silu(pre1.astype(act_dtype)).reshape(tn * a, two_dh)
  hid2 = jax.nn.silu((dot(hid1, w2_ref[...]) + b2_ref[...]).astype(act_dtype))
  out3 = dot(hid2, w3_ref[...]) + b3_ref[...]                     # [TN*A, Dout+1]

  h_upd = out3[:, :d_out].reshape(tn, a, d_out)
  z = out3[:, d_out:d_out + 1].reshape(tn, a, 1)

  h_new = h + h_upd if residual else h_upd
  x_upd = x_c[:, None, :] + z * x_o                # [TN, A, 3]
  x_new = jnp.where(rm[:, :, None] > 0.5, x_upd, x)   # X[residue_mask] = X_update

  # Final atom-mask zeroing also scrubs garbage flowing through padded atom
  # lanes (dist==0 -> env==1 there).  Keep it if this epilogue is refactored.
  # Lane-dense slabs: (TN, A*Dout) and (TN, A*3) avoid masked partial vst.
  h_out_ref[...] = (h_new * am3).reshape(tn, a * d_out).astype(h_out_ref.dtype)
  x_out_ref[...] = (x_new * am3).reshape(tn, a * 3).astype(x_out_ref.dtype)


def equivariant_ffn(H, X, atom_mask, residue_mask, params, *,
                    n_rbf=16, cutoff=7.0, residual=True,
                    tile_n=None, vmem_limit_bytes=None,
                    matmul_dtype=jnp.bfloat16):
  """Pallas TPU implementation of EquivariantFFN.forward (inference).

  H: [N, A, d_in], X: [N, A, 3], atom_mask: [N, A], residue_mask: [N] (bool).
  params holds the six nn.Linear weights/biases in PyTorch [out, in] layout.
  matmul_dtype=jnp.bfloat16 (default) keeps f32 accumulation on the MXU;
  pass jnp.float32 for bit-accurate comparisons at toy sizes.
  """
  f32 = jnp.float32
  n, a, d_in = H.shape
  d_hidden = params["h_w2"].shape[0]
  d_out = params["h_w3"].shape[0]
  assert (not residual) or d_out == d_in, "residual path requires d_out == d_in"

  a_p = _round_up(a, 8)

  if tile_n is None or vmem_limit_bytes is None:
    auto_tn, auto_vmem = _auto_tile_config()
    tile_n = auto_tn if tile_n is None else tile_n
    vmem_limit_bytes = auto_vmem if vmem_limit_bytes is None else vmem_limit_bytes
  tn, n_p = _pick_tiles(n, tile_n)

  def pad(arr, n_to, a_to=None):
    pads = [(0, n_to - arr.shape[0])] + [(0, 0)] * (arr.ndim - 1)
    if a_to is not None:
      pads[1] = (0, a_to - arr.shape[1])
    return jnp.pad(arr, pads)

  h_p = pad(H.astype(f32), n_p, a_p)                            # [Np, Ap, Din]
  x_p = pad(X.astype(f32), n_p, a_p).reshape(n_p, a_p * 3)       # lane-dense X
  am_p = pad(atom_mask.astype(f32), n_p, a_p)                    # [Np, Ap]
  rm_p = pad(residue_mask.astype(f32).reshape(n, 1), n_p)        # [Np, 1]

  # RBF constants (Gaussian smearing on d/cutoff over linspace(0, 1, n_rbf)).
  offs = jnp.linspace(0.0, 1.0, n_rbf, dtype=f32).reshape(1, n_rbf)
  gauss_coeff = -0.5 * float(n_rbf - 1) ** 2

  # Fuse mlp_h and mlp_z into one block-diagonal MLP of width 2*d_hidden: both
  # branches share `inputs`, so the fusion halves the number of weight pushes.
  # Layer 1 is split by input group (H | H_c | radial).
  wh1t, wz1t = params["h_w1"].T.astype(f32), params["z_w1"].T.astype(f32)
  w1h = jnp.concatenate([wh1t[:d_in], wz1t[:d_in]], axis=1)                  # [Din, 2dh]
  w1c = jnp.concatenate([wh1t[d_in:2 * d_in], wz1t[d_in:2 * d_in]], axis=1)  # [Din, 2dh]
  w1r = jnp.concatenate([wh1t[2 * d_in:], wz1t[2 * d_in:]], axis=1)          # [n_rbf, 2dh]
  b1 = jnp.concatenate([params["h_b1"], params["z_b1"]]).reshape(1, -1).astype(f32)
  w2 = block_diag(params["h_w2"].T, params["z_w2"].T).astype(f32)            # [2dh, 2dh]
  b2 = jnp.concatenate([params["h_b2"], params["z_b2"]]).reshape(1, -1).astype(f32)
  w3 = block_diag(params["h_w3"].T, params["z_w3"].T).astype(f32)            # [2dh, Dout+1]
  b3 = jnp.concatenate([params["h_b3"], params["z_b3"]]).reshape(1, -1).astype(f32)

  two_dh = 2 * d_hidden
  kernel = functools.partial(
      _equivariant_ffn_kernel,
      inv_cutoff=1.0 / cutoff, gauss_coeff=gauss_coeff,
      residual=residual, matmul_dtype=matmul_dtype)

  row_tile = lambda last: pl.BlockSpec((tn, last), lambda i: (i, 0))
  full = lambda shape: pl.BlockSpec(shape, lambda i: tuple(0 for _ in shape))

  h_out, x_out = pl.pallas_call(
      kernel,
      grid=(n_p // tn,),
      in_specs=[
          pl.BlockSpec((tn, a_p, d_in), lambda i: (i, 0, 0)),   # H
          row_tile(a_p * 3),                                    # X (flattened)
          row_tile(a_p),                                        # atom_mask
          row_tile(1),                                          # residue_mask (f32)
          full((1, n_rbf)),                                     # RBF offsets
          full((d_in, two_dh)), full((d_in, two_dh)), full((n_rbf, two_dh)),
          full((1, two_dh)),
          full((two_dh, two_dh)), full((1, two_dh)),
          full((two_dh, d_out + 1)), full((1, d_out + 1)),
      ],
      out_specs=(row_tile(a_p * d_out), row_tile(a_p * 3)),
      out_shape=(jax.ShapeDtypeStruct((n_p, a_p * d_out), f32),
                 jax.ShapeDtypeStruct((n_p, a_p * 3), f32)),
      compiler_params=pltpu.CompilerParams(
          dimension_semantics=("parallel",),
          vmem_limit_bytes=int(vmem_limit_bytes)),
  )(h_p, x_p, am_p, rm_p, offs, w1h, w1c, w1r, b1, w2, b2, w3, b3)

  h_out = h_out.reshape(n_p, a_p, d_out)[:n, :a]
  x_out = x_out.reshape(n_p, a_p, 3)[:n, :a]
  return h_out, x_out


def equivariant_ffn_ref(H, X, atom_mask, residue_mask, params, *,
                        n_rbf=16, cutoff=7.0, residual=True):
  """Pure-JAX reference matching the PyTorch forward pass (eval mode)."""
  am = atom_mask[..., None]
  cnt = jnp.sum(atom_mask, axis=-1, keepdims=True)
  X_c = jnp.sum(X * am, axis=-2) / cnt
  X_o = (X - X_c[:, None, :]) * am
  D = jnp.sqrt(jnp.sum(X_o * X_o, axis=-1))

  ds = D / cutoff
  env = 1.0 - 28.0 * ds ** 6 + 48.0 * ds ** 7 - 21.0 * ds ** 8
  env = jnp.where(ds < 1.0, env, 0.0)
  offs = jnp.linspace(0.0, 1.0, n_rbf)
  coeff = -0.5 * float(n_rbf - 1) ** 2
  radial = env[..., None] * jnp.exp(coeff * (ds[..., None] - offs) ** 2)

  H_c = jnp.sum(H * am, axis=-2) / cnt
  H_cb = jnp.repeat(H_c[:, None, :], H.shape[1], axis=1)
  inputs = jnp.concatenate([H, H_cb, radial], axis=-1)

  def mlp(x, w1, b1, w2, b2, w3, b3):
    h1 = jax.nn.silu(x @ w1.T + b1)
    h2 = jax.nn.silu(h1 @ w2.T + b2)
    return h2 @ w3.T + b3

  H_upd = mlp(inputs, params["h_w1"], params["h_b1"], params["h_w2"],
              params["h_b2"], params["h_w3"], params["h_b3"])
  z = mlp(inputs, params["z_w1"], params["z_b1"], params["z_w2"],
          params["z_b2"], params["z_w3"], params["z_b3"])

  H_new = H + H_upd if residual else H_upd
  X_upd = X_c[:, None, :] + z * X_o
  X_new = jnp.where(residue_mask[:, None, None], X_upd, X)
  return H_new * am, X_new * am


if __name__ == "__main__":
  jax.config.update("jax_default_matmul_precision", "highest")

  N, A = 8, 14                  # residues, atoms-per-residue (module hard-codes 14)
  d_in = d_out = 32
  d_hidden = 32
  n_rbf = 16
  d_cat = 2 * d_in + n_rbf

  key = jax.random.PRNGKey(0)
  keys = jax.random.split(key, 8)
  H = jax.random.normal(keys[0], (N, A, d_in), jnp.float32)
  X = 3.0 * jax.random.normal(keys[1], (N, A, 3), jnp.float32)
  n_atoms = 4 + jnp.arange(N, dtype=jnp.int32) % 11          # 4..14 real atoms
  atom_mask = (jnp.arange(A)[None, :] < n_atoms[:, None]).astype(jnp.float32)
  residue_mask = (jnp.arange(N) % 2) == 0

  def linear(k, dout_, din_):
    kw, kb = jax.random.split(k)
    s = 1.0 / math.sqrt(din_)
    return (s * jax.random.normal(kw, (dout_, din_), jnp.float32),
            s * jax.random.normal(kb, (dout_,), jnp.float32))

  params = {}
  params["h_w1"], params["h_b1"] = linear(keys[2], d_hidden, d_cat)
  params["h_w2"], params["h_b2"] = linear(keys[3], d_hidden, d_hidden)
  params["h_w3"], params["h_b3"] = linear(keys[4], d_out, d_hidden)
  params["z_w1"], params["z_b1"] = linear(keys[5], d_hidden, d_cat)
  params["z_w2"], params["z_b2"] = linear(keys[6], d_hidden, d_hidden)
  params["z_w3"], params["z_b3"] = linear(keys[7], 1, d_hidden)

  # f32 MXU path: bit-accuracy check against the pure-JAX reference.
  h_out, x_out = equivariant_ffn(H, X, atom_mask, residue_mask, params,
                                 n_rbf=n_rbf, residual=True,
                                 matmul_dtype=jnp.float32)
  h_out, x_out = jax.block_until_ready((h_out, x_out))

  h_ref, x_ref = equivariant_ffn_ref(H, X, atom_mask, residue_mask, params,
                                     n_rbf=n_rbf, residual=True)

  assert h_out.shape == (N, A, d_out) and x_out.shape == (N, A, 3)
  assert bool(jnp.all(jnp.isfinite(h_out))) and bool(jnp.all(jnp.isfinite(x_out)))
  err_h = float(jnp.max(jnp.abs(h_out - h_ref)))
  err_x = float(jnp.max(jnp.abs(x_out - x_ref)))
  assert bool(jnp.allclose(h_out, h_ref, rtol=2e-3, atol=2e-3)), f"H max abs err {err_h}"
  assert bool(jnp.allclose(x_out, x_ref, rtol=2e-3, atol=2e-3)), f"X max abs err {err_x}"

  # Default (bf16 MXU + bf16 silu) production path: smoke test for finiteness.
  h_bf, x_bf = equivariant_ffn(H, X, atom_mask, residue_mask, params,
                               n_rbf=n_rbf, residual=True)
  h_bf, x_bf = jax.block_until_ready((h_bf, x_bf))
  assert h_bf.shape == (N, A, d_out) and x_bf.shape == (N, A, 3)
  assert bool(jnp.all(jnp.isfinite(h_bf))) and bool(jnp.all(jnp.isfinite(x_bf)))

  print("KERNEL_OK")
</pallas_src>

<mosaic_0001>
module attributes {stable_mosaic.version = 11 : i64} {
  func.func @_equivariant_ffn_kernel(%arg0: i32, %arg1: memref<8x16x32xf32, #tpu.memory_space<vmem>>, %arg2: memref<8x48xf32, #tpu.memory_space<vmem>>, %arg3: memref<8x16xf32, #tpu.memory_space<vmem>>, %arg4: memref<8x1xf32, #tpu.memory_space<vmem>>, %arg5: memref<1x16xf32, #tpu.memory_space<vmem>>, %arg6: memref<32x64xf32, #tpu.memory_space<vmem>>, %arg7: memref<32x64xf32, #tpu.memory_space<vmem>>, %arg8: memref<16x64xf32, #tpu.memory_space<vmem>>, %arg9: memref<1x64xf32, #tpu.memory_space<vmem>>, %arg10: memref<64x64xf32, #tpu.memory_space<vmem>>, %arg11: memref<1x64xf32, #tpu.memory_space<vmem>>, %arg12: memref<64x33xf32, #tpu.memory_space<vmem>>, %arg13: memref<1x33xf32, #tpu.memory_space<vmem>>, %arg14: memref<8x512xf32, #tpu.memory_space<vmem>>, %arg15: memref<8x48xf32, #tpu.memory_space<vmem>>) attributes {dimension_semantics = [#tpu.dimension_semantics<parallel>], iteration_bounds = array<i64: 1>, scalar_prefetch = 0 : i64, scratch_operands = 0 : i64, tpu.core_type = #tpu.core_type<tc>, window_params = [{transform_indices = @transform_0, window_bounds = array<i64: 8, 16, 32>}, {transform_indices = @transform_1, window_bounds = array<i64: 8, 48>}, {transform_indices = @transform_2, window_bounds = array<i64: 8, 16>}, {transform_indices = @transform_3, window_bounds = array<i64: 8, 1>}, {pipeline_mode = #tpu.pipeline_mode<synchronous>, transform_indices = @transform_4, window_bounds = array<i64: 1, 16>}, {pipeline_mode = #tpu.pipeline_mode<synchronous>, transform_indices = @transform_5, window_bounds = array<i64: 32, 64>}, {pipeline_mode = #tpu.pipeline_mode<synchronous>, transform_indices = @transform_6, window_bounds = array<i64: 32, 64>}, {pipeline_mode = #tpu.pipeline_mode<synchronous>, transform_indices = @transform_7, window_bounds = array<i64: 16, 64>}, {pipeline_mode = #tpu.pipeline_mode<synchronous>, transform_indices = @transform_8, window_bounds = array<i64: 1, 64>}, {pipeline_mode = #tpu.pipeline_mode<synchronous>, transform_indices = @transform_9, window_bounds = array<i64: 64, 64>}, {pipeline_mode = #tpu.pipeline_mode<synchronous>, transform_indices = @transform_10, window_bounds = array<i64: 1, 64>}, {pipeline_mode = #tpu.pipeline_mode<synchronous>, transform_indices = @transform_11, window_bounds = array<i64: 64, 33>}, {pipeline_mode = #tpu.pipeline_mode<synchronous>, transform_indices = @transform_12, window_bounds = array<i64: 1, 33>}, {transform_indices = @transform_13, window_bounds = array<i64: 8, 512>}, {transform_indices = @transform_14, window_bounds = array<i64: 8, 48>}]} {
    %c0 = arith.constant 0 : index
    %c0_0 = arith.constant 0 : index
    %c0_1 = arith.constant 0 : index
    %0 = vector.load %arg1[%c0, %c0_0, %c0_1] : memref<8x16x32xf32, #tpu.memory_space<vmem>>, vector<8x16x32xf32>
    %c0_2 = arith.constant 0 : index
    %c0_3 = arith.constant 0 : index
    %1 = vector.load %arg2[%c0_2, %c0_3] : memref<8x48xf32, #tpu.memory_space<vmem>>, vector<8x48xf32>
    %2 = vector.shape_cast %1 : vector<8x48xf32> to vector<8x16x3xf32>
    %c0_4 = arith.constant 0 : index
    %c0_5 = arith.constant 0 : index
    %3 = vector.load %arg3[%c0_4, %c0_5] : memref<8x16xf32, #tpu.memory_space<vmem>>, vector<8x16xf32>
    %c0_6 = arith.constant 0 : index
    %c0_7 = arith.constant 0 : index
    %4 = vector.load %arg4[%c0_6, %c0_7] : memref<8x1xf32, #tpu.memory_space<vmem>>, vector<8x1xf32>
    %5 = vector.shape_cast %3 : vector<8x16xf32> to vector<8x16x1xf32>
    %cst = arith.constant dense<0.000000e+00> : vector<8xf32>
    %6 = vector.multi_reduction <add>, %3, %cst [1] : vector<8x16xf32> to vector<8xf32>
    %7 = vector.shape_cast %6 : vector<8xf32> to vector<8x1xf32>
    %cst_8 = arith.constant 0.000000e+00 : f32
    %8 = vector.broadcast %cst_8 : f32 to vector<8x1xf32>
    %9 = arith.cmpf ogt, %7, %8 : vector<8x1xf32>
    %cst_9 = arith.constant 1.000000e+00 : f32
    %10 = vector.broadcast %cst_9 : f32 to vector<8x1xf32>
    %11 = arith.divf %10, %7 : vector<8x1xf32>
    %cst_10 = arith.constant 0.000000e+00 : f32
    %12 = vector.broadcast %cst_10 : f32 to vector<8x1xf32>
    %13 = arith.select %9, %11, %12 : vector<8x1xi1>, vector<8x1xf32>
    %14 = vector.broadcast %5 : vector<8x16x1xf32> to vector<8x16x3xf32>
    %15 = arith.mulf %2, %14 : vector<8x16x3xf32>
    %cst_11 = arith.constant dense<0.000000e+00> : vector<8x3xf32>
    %16 = vector.multi_reduction <add>, %15, %cst_11 [1] : vector<8x16x3xf32> to vector<8x3xf32>
    %17 = vector.broadcast %13 : vector<8x1xf32> to vector<8x3xf32>
    %18 = arith.mulf %16, %17 : vector<8x3xf32>
    %19 = vector.broadcast %5 : vector<8x16x1xf32> to vector<8x16x32xf32>
    %20 = arith.mulf %0, %19 : vector<8x16x32xf32>
    %cst_12 = arith.constant dense<0.000000e+00> : vector<8x32xf32>
    %21 = vector.multi_reduction <add>, %20, %cst_12 [1] : vector<8x16x32xf32> to vector<8x32xf32>
    %22 = vector.broadcast %13 : vector<8x1xf32> to vector<8x32xf32>
    %23 = arith.mulf %21, %22 : vector<8x32xf32>
    %24 = vector.shape_cast %18 : vector<8x3xf32> to vector<8x1x3xf32>
    %25 = vector.broadcast %24 : vector<8x1x3xf32> to vector<8x16x3xf32>
    %26 = arith.subf %2, %25 : vector<8x16x3xf32>
    %27 = vector.broadcast %5 : vector<8x16x1xf32> to vector<8x16x3xf32>
    %28 = arith.mulf %26, %27 : vector<8x16x3xf32>
    %29 = arith.mulf %28, %28 : vector<8x16x3xf32>
    %cst_13 = arith.constant dense<0.000000e+00> : vector<8x16xf32>
    %30 = vector.multi_reduction <add>, %29, %cst_13 [2] : vector<8x16x3xf32> to vector<8x16xf32>
    %31 = math.sqrt %30 : vector<8x16xf32>
    %cst_14 = arith.constant 0.142857149 : f32
    %32 = vector.broadcast %cst_14 : f32 to vector<8x16xf32>
    %33 = arith.mulf %31, %32 : vector<8x16xf32>
    %34 = arith.mulf %33, %33 : vector<8x16xf32>
    %35 = arith.mulf %34, %34 : vector<8x16xf32>
    %36 = arith.mulf %35, %34 : vector<8x16xf32>
    %cst_15 = arith.constant 2.800000e+01 : f32
    %37 = vector.broadcast %cst_15 : f32 to vector<8x16xf32>
    %38 = arith.mulf %37, %36 : vector<8x16xf32>
    %cst_16 = arith.constant 1.000000e+00 : f32
    %39 = vector.broadcast %cst_16 : f32 to vector<8x16xf32>
    %40 = arith.subf %39, %38 : vector<8x16xf32>
    %cst_17 = arith.constant 4.800000e+01 : f32
    %41 = vector.broadcast %cst_17 : f32 to vector<8x16xf32>
    %42 = arith.mulf %41, %36 : vector<8x16xf32>
    %43 = arith.mulf %42, %33 : vector<8x16xf32>
    %44 = arith.addf %40, %43 : vector<8x16xf32>
    %cst_18 = arith.constant 2.100000e+01 : f32
    %45 = vector.broadcast %cst_18 : f32 to vector<8x16xf32>
    %46 = arith.mulf %45, %36 : vector<8x16xf32>
    %47 = arith.mulf %46, %34 : vector<8x16xf32>
    %48 = arith.subf %44, %47 : vector<8x16xf32>
    %cst_19 = arith.constant 1.000000e+00 : f32
    %49 = vector.broadcast %cst_19 : f32 to vector<8x16xf32>
    %50 = arith.cmpf olt, %33, %49 : vector<8x16xf32>
    %cst_20 = arith.constant 0.000000e+00 : f32
    %51 = vector.broadcast %cst_20 : f32 to vector<8x16xf32>
    %52 = arith.select %50, %48, %51 : vector<8x16xi1>, vector<8x16xf32>
    %c0_21 = arith.constant 0 : index
    %c0_22 = arith.constant 0 : index
    %53 = vector.load %arg5[%c0_21, %c0_22] : memref<1x16xf32, #tpu.memory_space<vmem>>, vector<1x16xf32>
    %54 = vector.shape_cast %53 : vector<1x16xf32> to vector<1x1x16xf32>
    %55 = vector.shape_cast %33 : vector<8x16xf32> to vector<8x16x1xf32>
    %56 = vector.broadcast %55 : vector<8x16x1xf32> to vector<8x16x16xf32>
    %57 = vector.broadcast %54 : vector<1x1x16xf32> to vector<8x16x16xf32>
    %58 = arith.subf %56, %57 : vector<8x16x16xf32>
    %59 = vector.shape_cast %52 : vector<8x16xf32> to vector<8x16x1xf32>
    %cst_23 = arith.constant -1.125000e+02 : f32
    %60 = vector.broadcast %cst_23 : f32 to vector<8x16x16xf32>
    %61 = arith.mulf %60, %58 : vector<8x16x16xf32>
    %62 = arith.mulf %61, %58 : vector<8x16x16xf32>
    %63 = math.exp %62 : vector<8x16x16xf32>
    %64 = vector.broadcast %59 : vector<8x16x1xf32> to vector<8x16x16xf32>
    %65 = arith.mulf %64, %63 : vector<8x16x16xf32>
    %66 = vector.shape_cast %0 : vector<8x16x32xf32> to vector<128x32xf32>
    %67 = vector.shape_cast %65 : vector<8x16x16xf32> to vector<128x16xf32>
    %c0_24 = arith.constant 0 : index
    %c0_25 = arith.constant 0 : index
    %68 = vector.load %arg7[%c0_24, %c0_25] : memref<32x64xf32, #tpu.memory_space<vmem>>, vector<32x64xf32>
    %cst_26 = arith.constant dense<0.000000e+00> : vector<8x64xf32>
    %69 = tpu.matmul %23, %68, %cst_26 {dimension_numbers = #tpu.dot_dimension_numbers<[1], [0], [0], [1], [0, 0, 1, 1], [], []>, precision = #tpu.contract_precision<fp32>} : vector<8x32xf32>, vector<32x64xf32>, vector<8x64xf32> -> vector<8x64xf32>
    %c0_27 = arith.constant 0 : index
    %c0_28 = arith.constant 0 : index
    %70 = vector.load %arg9[%c0_27, %c0_28] : memref<1x64xf32, #tpu.memory_space<vmem>>, vector<1x64xf32>
    %71 = vector.broadcast %70 : vector<1x64xf32> to vector<8x64xf32>
    %72 = arith.addf %69, %71 : vector<8x64xf32>
    %c0_29 = arith.constant 0 : index
    %c0_30 = arith.constant 0 : index
    %73 = vector.load %arg6[%c0_29, %c0_30] : memref<32x64xf32, #tpu.memory_space<vmem>>, vector<32x64xf32>
    %cst_31 = arith.constant dense<0.000000e+00> : vector<128x64xf32>
    %74 = tpu.matmul %66, %73, %cst_31 {dimension_numbers = #tpu.dot_dimension_numbers<[1], [0], [0], [1], [0, 0, 1, 1], [], []>, precision = #tpu.contract_precision<fp32>} : vector<128x32xf32>, vector<32x64xf32>, vector<128x64xf32> -> vector<128x64xf32>
    %c0_32 = arith.constant 0 : index
    %c0_33 = arith.constant 0 : index
    %75 = vector.load %arg8[%c0_32, %c0_33] : memref<16x64xf32, #tpu.memory_space<vmem>>, vector<16x64xf32>
    %cst_34 = arith.constant dense<0.000000e+00> : vector<128x64xf32>
    %76 = tpu.matmul %67, %75, %cst_34 {dimension_numbers = #tpu.dot_dimension_numbers<[1], [0], [0], [1], [0, 0, 1, 1], [], []>, precision = #tpu.contract_precision<fp32>} : vector<128x16xf32>, vector<16x64xf32>, vector<128x64xf32> -> vector<128x64xf32>
    %77 = arith.addf %74, %76 : vector<128x64xf32>
    %78 = vector.shape_cast %77 : vector<128x64xf32> to vector<8x16x64xf32>
    %79 = vector.shape_cast %72 : vector<8x64xf32> to vector<8x1x64xf32>
    %80 = vector.broadcast %79 : vector<8x1x64xf32> to vector<8x16x64xf32>
    %81 = arith.addf %78, %80 : vector<8x16x64xf32>
    %82 = arith.negf %81 : vector<8x16x64xf32>
    %83 = math.exp %82 : vector<8x16x64xf32>
    %cst_35 = arith.constant 1.000000e+00 : f32
    %84 = vector.broadcast %cst_35 : f32 to vector<8x16x64xf32>
    %85 = arith.addf %84, %83 : vector<8x16x64xf32>
    %86 = arith.divf %84, %85 : vector<8x16x64xf32>
    %87 = arith.mulf %81, %86 : vector<8x16x64xf32>
    %88 = vector.shape_cast %87 : vector<8x16x64xf32> to vector<128x64xf32>
    %c0_36 = arith.constant 0 : index
    %c0_37 = arith.constant 0 : index
    %89 = vector.load %arg10[%c0_36, %c0_37] : memref<64x64xf32, #tpu.memory_space<vmem>>, vector<64x64xf32>
    %cst_38 = arith.constant dense<0.000000e+00> : vector<128x64xf32>
    %90 = tpu.matmul %88, %89, %cst_38 {dimension_numbers = #tpu.dot_dimension_numbers<[1], [0], [0], [1], [0, 0, 1, 1], [], []>, precision = #tpu.contract_precision<fp32>} : vector<128x64xf32>, vector<64x64xf32>, vector<128x64xf32> -> vector<128x64xf32>
    %c0_39 = arith.constant 0 : index
    %c0_40 = arith.constant 0 : index
    %91 = vector.load %arg11[%c0_39, %c0_40] : memref<1x64xf32, #tpu.memory_space<vmem>>, vector<1x64xf32>
    %92 = vector.broadcast %91 : vector<1x64xf32> to vector<128x64xf32>
    %93 = arith.addf %90, %92 : vector<128x64xf32>
    %94 = arith.negf %93 : vector<128x64xf32>
    %95 = math.exp %94 : vector<128x64xf32>
    %cst_41 = arith.constant 1.000000e+00 : f32
    %96 = vector.broadcast %cst_41 : f32 to vector<128x64xf32>
    %97 = arith.addf %96, %95 : vector<128x64xf32>
    %98 = arith.divf %96, %97 : vector<128x64xf32>
    %99 = arith.mulf %93, %98 : vector<128x64xf32>
    %c0_42 = arith.constant 0 : index
    %c0_43 = arith.constant 0 : index
    %100 = vector.load %arg12[%c0_42, %c0_43] : memref<64x33xf32, #tpu.memory_space<vmem>>, vector<64x33xf32>
    %cst_44 = arith.constant dense<0.000000e+00> : vector<128x33xf32>
    %101 = tpu.matmul %99, %100, %cst_44 {dimension_numbers = #tpu.dot_dimension_numbers<[1], [0], [0], [1], [0, 0, 1, 1], [], []>, precision = #tpu.contract_precision<fp32>} : vector<128x64xf32>, vector<64x33xf32>, vector<128x33xf32> -> vector<128x33xf32>
    %c0_45 = arith.constant 0 : index
    %c0_46 = arith.constant 0 : index
    %102 = vector.load %arg13[%c0_45, %c0_46] : memref<1x33xf32, #tpu.memory_space<vmem>>, vector<1x33xf32>
    %103 = vector.broadcast %102 : vector<1x33xf32> to vector<128x33xf32>
    %104 = arith.addf %101, %103 : vector<128x33xf32>
    %105 = vector.extract_strided_slice %104 {offsets = [0, 0], sizes = [128, 32], strides = [1, 1]} : vector<128x33xf32> to vector<128x32xf32>
    %106 = vector.shape_cast %105 : vector<128x32xf32> to vector<8x16x32xf32>
    %107 = vector.extract_strided_slice %104 {offsets = [0, 32], sizes = [128, 1], strides = [1, 1]} : vector<128x33xf32> to vector<128x1xf32>
    %108 = vector.shape_cast %107 : vector<128x1xf32> to vector<8x16x1xf32>
    %109 = arith.addf %0, %106 : vector<8x16x32xf32>
    %110 = vector.shape_cast %18 : vector<8x3xf32> to vector<8x1x3xf32>
    %111 = vector.broadcast %108 : vector<8x16x1xf32> to vector<8x16x3xf32>
    %112 = arith.mulf %111, %28 : vector<8x16x3xf32>
    %113 = vector.broadcast %110 : vector<8x1x3xf32> to vector<8x16x3xf32>
    %114 = arith.addf %113, %112 : vector<8x16x3xf32>
    %115 = vector.shape_cast %4 : vector<8x1xf32> to vector<8x1x1xf32>
    %cst_47 = arith.constant 5.000000e-01 : f32
    %116 = vector.broadcast %cst_47 : f32 to vector<8x1x1xf32>
    %117 = arith.cmpf ogt, %115, %116 : vector<8x1x1xf32>
    %118 = vector.shape_cast %117 : vector<8x1x1xi1> to vector<8x1x1xi1>
    %119 = vector.broadcast %118 : vector<8x1x1xi1> to vector<8x16x3xi1>
    %120 = arith.select %119, %114, %2 : vector<8x16x3xi1>, vector<8x16x3xf32>
    %121 = vector.broadcast %5 : vector<8x16x1xf32> to vector<8x16x32xf32>
    %122 = arith.mulf %109, %121 : vector<8x16x32xf32>
    %123 = vector.shape_cast %122 : vector<8x16x32xf32> to vector<8x512xf32>
    %c0_48 = arith.constant 0 : index
    %c0_49 = arith.constant 0 : index
    %124 = vector.load %arg14[%c0_48, %c0_49] : memref<8x512xf32, #tpu.memory_space<vmem>>, vector<8x512xf32>
    tpu.vector_store %arg14[%c0_48, %c0_49], %123 {strides = array<i32>} : memref<8x512xf32, #tpu.memory_space<vmem>>, vector<8x512xf32>,
    %125 = vector.broadcast %5 : vector<8x16x1xf32> to vector<8x16x3xf32>
    %126 = arith.mulf %120, %125 : vector<8x16x3xf32>
    %127 = vector.shape_cast %126 : vector<8x16x3xf32> to vector<8x48xf32>
    %c0_50 = arith.constant 0 : index
    %c0_51 = arith.constant 0 : index
    %128 = vector.load %arg15[%c0_50, %c0_51] : memref<8x48xf32, #tpu.memory_space<vmem>>, vector<8x48xf32>
    tpu.vector_store %arg15[%c0_50, %c0_51], %127 {strides = array<i32>} : memref<8x48xf32, #tpu.memory_space<vmem>>, vector<8x48xf32>,
    return
  }
  func.func @transform_0(%arg0: i32) -> (i32, i32, i32) {
    %c0_i32 = arith.constant 0 : i32
    %c0_i32_0 = arith.constant 0 : i32
    %c0_i32_1 = arith.constant 0 : i32
    return %arg0, %c0_i32, %c0_i32_0 : i32, i32, i32
  }
  func.func @transform_1(%arg0: i32) -> (i32, i32) {
    %c0_i32 = arith.constant 0 : i32
    %c0_i32_0 = arith.constant 0 : i32
    return %arg0, %c0_i32 : i32, i32
  }
  func.func @transform_2(%arg0: i32) -> (i32, i32) {
    %c0_i32 = arith.constant 0 : i32
    %c0_i32_0 = arith.constant 0 : i32
    return %arg0, %c0_i32 : i32, i32
  }
  func.func @transform_3(%arg0: i32) -> (i32, i32) {
    %c0_i32 = arith.constant 0 : i32
    %c0_i32_0 = arith.constant 0 : i32
    return %arg0, %c0_i32 : i32, i32
  }
  func.func @transform_4(%arg0: i32) -> (i32, i32) {
    %c0_i32 = arith.constant 0 : i32
    %c0_i32_0 = arith.constant 0 : i32
    %c0_i32_1 = arith.constant 0 : i32
    return %c0_i32, %c0_i32_0 : i32, i32
  }
  func.func @transform_5(%arg0: i32) -> (i32, i32) {
    %c0_i32 = arith.constant 0 : i32
    %c0_i32_0 = arith.constant 0 : i32
    %c0_i32_1 = arith.constant 0 : i32
    return %c0_i32, %c0_i32_0 : i32, i32
  }
  func.func @transform_6(%arg0: i32) -> (i32, i32) {
    %c0_i32 = arith.constant 0 : i32
    %c0_i32_0 = arith.constant 0 : i32
    %c0_i32_1 = arith.constant 0 : i32
    return %c0_i32, %c0_i32_0 : i32, i32
  }
  func.func @transform_7(%arg0: i32) -> (i32, i32) {
    %c0_i32 = arith.constant 0 : i32
    %c0_i32_0 = arith.constant 0 : i32
    %c0_i32_1 = arith.constant 0 : i32
    return %c0_i32, %c0_i32_0 : i32, i32
  }
  func.func @transform_8(%arg0: i32) -> (i32, i32) {
    %c0_i32 = arith.constant 0 : i32
    %c0_i32_0 = arith.constant 0 : i32
    %c0_i32_1 = arith.constant 0 : i32
    return %c0_i32, %c0_i32_0 : i32, i32
  }
  func.func @transform_9(%arg0: i32) -> (i32, i32) {
    %c0_i32 = arith.constant 0 : i32
    %c0_i32_0 = arith.constant 0 : i32
    %c0_i32_1 = arith.constant 0 : i32
    return %c0_i32, %c0_i32_0 : i32, i32
  }
  func.func @transform_10(%arg0: i32) -> (i32, i32) {
    %c0_i32 = arith.constant 0 : i32
    %c0_i32_0 = arith.constant 0 : i32
    %c0_i32_1 = arith.constant 0 : i32
    return %c0_i32, %c0_i32_0 : i32, i32
  }
  func.func @transform_11(%arg0: i32) -> (i32, i32) {
    %c0_i32 = arith.constant 0 : i32
    %c0_i32_0 = arith.constant 0 : i32
    %c0_i32_1 = arith.constant 0 : i32
    return %c0_i32, %c0_i32_0 : i32, i32
  }
  func.func @transform_12(%arg0: i32) -> (i32, i32) {
    %c0_i32 = arith.constant 0 : i32
    %c0_i32_0 = arith.constant 0 : i32
    %c0_i32_1 = arith.constant 0 : i32
    return %c0_i32, %c0_i32_0 : i32, i32
  }
  func.func @transform_13(%arg0: i32) -> (i32, i32) {
    %c0_i32 = arith.constant 0 : i32
    %c0_i32_0 = arith.constant 0 : i32
    return %arg0, %c0_i32 : i32, i32
  }
  func.func @transform_14(%arg0: i32) -> (i32, i32) {
    %c0_i32 = arith.constant 0 : i32
    %c0_i32_0 = arith.constant 0 : i32
    return %arg0, %c0_i32 : i32, i32
  }
}

</mosaic_0001>

<bundles_post_ra>
// kernel: tpu_custom_call.1
= control target key start
LH: loop header
LB: loop body
LE: loop exit
PB: predicated region body
PF: predicated region fallthrough
CT: control target
= control target key end

     0   :  { %20 = vsyncpa [#allocation3], 0  ;;  %s13987_s0 = inlined_call_operand.hbm [shape: f32[8,16,32], index: 0, kind: input, shape index: {}]   ;;  %s13988_s1 = inlined_call_operand.hbm [shape: f32[8,48], index: 1, kind: input, shape index: {}]   ;;  %s13989_s2 = inlined_call_operand.hbm [shape: f32[8,16], index: 2, kind: input, shape index: {}]   ;;  %s13990_s3 = inlined_call_operand.vmem [shape: f32[8,1], index: 3, kind: input, shape index: {}]   ;;  %s13991_s4 = inlined_call_operand.vmem [shape: f32[1,16], index: 4, kind: input, shape index: {}]   ;;  %s13992_s5 = inlined_call_operand.vmem [shape: f32[32,64], index: 5, kind: input, shape index: {}]   ;;  %s13993_s6 = inlined_call_operand.hbm [shape: f32[32,64], index: 6, kind: input, shape index: {}]   ;;  %s13994_s7 = inlined_call_operand.vmem [shape: f32[16,64], index: 7, kind: input, shape index: {}]   ;;  %s13995_s8 = inlined_call_operand.vmem [shape: f32[1,64], index: 8, kind: input, shape index: {}]   ;;  %s13996_s9 = inlined_call_operand.vmem [shape: f32[64,64], index: 9, kind: input, shape index: {}]   ;;  %s13997_s10 = inlined_call_operand.hbm [shape: f32[1,64], index: 10, kind: input, shape index: {}]   ;;  %s13998_s11 = inlined_call_operand.vmem [shape: f32[64,33], index: 11, kind: input, shape index: {}]   ;;  %s13999_s12 = inlined_call_operand.vmem [shape: f32[1,33], index: 12, kind: input, shape index: {}]   ;;  %s14000_s13 = inlined_call_operand.hbm [shape: f32[8,512], index: 13, kind: output, shape index: {0}]   ;;  %s14001_s14 = inlined_call_operand.hbm [shape: f32[8,48], index: 14, kind: output, shape index: {1}]  }
   0x1   :  { %21 = vsyncpa [#allocation6], 0 }
   0x2   :  { %22 = vsyncpa [#allocation9], 0 }
   0x3   :  { %23 = vsyncpa [#allocation4], 0 }
   0x4   :  { %24 = vsyncpa [#allocation13], 0  ;;  %s10662_s29 = smov [#allocation5]   ;;  %s10498_s17 = scalar_lea.hbm %s13988_s1, 128 }
   0x5   :  { %s43_s30 = sshll.u32 %s10662_s29, 4  ;;  %p10499_p0 = scmp.ne.s32.totalorder %s13988_s1, %s10498_s17  ;;  %s44_s30 = int_to_ptr.vmem [resolvable:$true] %s43_s30 }
   0x6   :  { %p10502_p1 = scmp.lt.u32.totalorder %s10498_s17, %s13988_s1 }
   0x8   :  { %p10504_p2 = pnand %p10502_p1, %p10499_p0 }
   0xa   :  { %10507 = shalt.err (!%p10504_p2)
}
   0xb   :  { %s10508_s22 = scalar_lea.vmem %s44_s30, 128  ;;  %p10513_p4 = scmp.lt.s32.totalorder %s44_s30, %s44_s30 }
   0xc   :  { %p10509_p3 = scmp.ne.s32.totalorder %s44_s30, %s10508_s22  ;;  %p10514_p5 = scmp.lt.s32.totalorder %s10508_s22, %s10508_s22 }
   0xe   :  { %p10515_p6 = por %p10514_p5, %p10513_p4 }
  0x10   :  { %p10516_p7 = pnand %p10515_p6, %p10509_p3 }
  0x12   :  { %10519 = shalt.err (!%p10516_p7)
}
  0x13   :  { %46 = dma.hbm_to_vmem [thread:$0]  %s13988_s1, 128, %s44_s30, [#allocation6]  }
  0x14   :  { %s10663_s25 = smov [#allocation8]   ;;  %s10664_s27 = smov [#allocation2]  }
  0x15   :  { %s68_s26 = sshll.u32 %s10663_s25, 4  ;;  %s30_s28 = sshll.u32 %s10664_s27, 4  ;;  %s69_s26 = int_to_ptr.vmem [resolvable:$true] %s68_s26  ;;  %s31_s28 = int_to_ptr.vmem [resolvable:$true] %s30_s28 }
  0x16   :  { %s10520_s16 = scalar_lea.hbm %s13993_s6, 512 }
  0x17   :  { %p10521_p8 = scmp.ne.s32.totalorder %s13993_s6, %s10520_s16  ;;  %p10524_p9 = scmp.lt.u32.totalorder %s10520_s16, %s13993_s6 }
  0x19   :  { %p10526_p10 = pnand %p10524_p9, %p10521_p8 }
  0x1b   :  { %10529 = shalt.err (!%p10526_p10)
}
  0x1c   :  { %s10530_s1 = scalar_lea.vmem %s69_s26, 512  ;;  %p10535_p12 = scmp.lt.s32.totalorder %s69_s26, %s69_s26 }
  0x1d   :  { %p10531_p11 = scmp.ne.s32.totalorder %s69_s26, %s10530_s1  ;;  %p10536_p13 = scmp.lt.s32.totalorder %s10530_s1, %s10530_s1 }
  0x1f   :  { %p10537_p0 = por %p10536_p13, %p10535_p12 }
  0x21   :  { %p10538_p1 = pnand %p10537_p0, %p10531_p11 }
  0x23   :  { %10541 = shalt.err (!%p10538_p1)
}
  0x24   :  { %s10665_s30 = smov 128   ;;  %s10666_s21 = smov 8  }
  0x25   :  { %74 = dma.hbm_to_vmem [thread:$0]  %s13993_s6, 512, %s69_s26, [#allocation9], %s10665_s30, %s10665_s30, %s10666_s21  }
  0x26   :  { %s10542_s27 = scalar_lea.hbm %s13987_s0, 2048 }
  0x27   :  { %p10543_p2 = scmp.ne.s32.totalorder %s13987_s0, %s10542_s27  ;;  %p10546_p3 = scmp.lt.u32.totalorder %s10542_s27, %s13987_s0 }
  0x29   :  { %p10548_p4 = pnand %p10546_p3, %p10543_p2 }
  0x2b   :  { %10551 = shalt.err (!%p10548_p4)
}
  0x2c   :  { %s10552_s18 = scalar_lea.vmem %s31_s28, 2048  ;;  %p10557_p6 = scmp.lt.s32.totalorder %s31_s28, %s31_s28 }
  0x2d   :  { %p10553_p5 = scmp.ne.s32.totalorder %s31_s28, %s10552_s18  ;;  %p10558_p7 = scmp.lt.s32.totalorder %s10552_s18, %s10552_s18 }
  0x2f   :  { %p10559_p8 = por %p10558_p7, %p10557_p6 }
  0x31   :  { %p10560_p9 = pnand %p10559_p8, %p10553_p5 }
  0x33   :  { %10563 = shalt.err (!%p10560_p9)
}
  0x34   :  { %36 = dma.hbm_to_vmem [thread:$0]  %s13987_s0, 2048, %s31_s28, [#allocation3], %s10665_s30, %s10665_s30, %s10666_s21  }
  0x35   :  { %s10667_s19 = smov [#allocation7]   ;;  %s10668_s1 = smov [#allocation10]  }
  0x36   :  { %s53_s20 = sshll.u32 %s10667_s19, 4  ;;  %s87_s22 = sshll.u32 %s10668_s1, 4  ;;  %s54_s20 = int_to_ptr.vmem [resolvable:$true] %s53_s20  ;;  %s88_s22 = int_to_ptr.vmem [resolvable:$true] %s87_s22 }
  0x37   :  { %s10564_s25 = scalar_lea.hbm %s13989_s2, 128 }
  0x38   :  { %p10565_p10 = scmp.ne.s32.totalorder %s13989_s2, %s10564_s25  ;;  %p10568_p11 = scmp.lt.u32.totalorder %s10564_s25, %s13989_s2 }
  0x3a   :  { %p10570_p12 = pnand %p10568_p11, %p10565_p10 }
  0x3c   :  { %10573 = shalt.err (!%p10570_p12)
}
  0x3d   :  { %s10574_s0 = scalar_lea.vmem %s54_s20, 128  ;;  %p10579_p0 = scmp.lt.s32.totalorder %s54_s20, %s54_s20 }
  0x3e   :  { %p10575_p13 = scmp.ne.s32.totalorder %s54_s20, %s10574_s0  ;;  %p10580_p1 = scmp.lt.s32.totalorder %s10574_s0, %s10574_s0 }
  0x40   :  { %p10581_p2 = por %p10580_p1, %p10579_p0 }
  0x42   :  { %p10582_p3 = pnand %p10581_p2, %p10575_p13 }
  0x44   :  { %10585 = shalt.err (!%p10582_p3)
}
  0x45   :  { %56 = dma.hbm_to_vmem [thread:$0]  %s13989_s2, 128, %s54_s20, [#allocation6]  }
  0x46   :  { %s10586_s18 = scalar_lea.hbm %s13997_s10, 16 }
  0x47   :  { %p10587_p4 = scmp.ne.s32.totalorder %s13997_s10, %s10586_s18  ;;  %p10590_p5 = scmp.lt.u32.totalorder %s10586_s18, %s13997_s10 }
  0x49   :  { %p10592_p6 = pnand %p10590_p5, %p10587_p4 }
  0x4b   :  { %10595 = shalt.err (!%p10592_p6)
}
  0x4c   :  { %s10596_s23 = scalar_lea.vmem %s88_s22, 16  ;;  %s10600_s24 = scalar_lea.vmem %s88_s22, 32 }
  0x4d   :  { %p10597_p7 = scmp.ne.s32.totalorder %s88_s22, %s10596_s23  ;;  %p10601_p8 = scmp.lt.s32.totalorder %s88_s22, %s88_s22 }
  0x4e   :  { %p10602_p9 = scmp.lt.s32.totalorder %s10600_s24, %s10596_s23 }
  0x50   :  { %p10603_p10 = por %p10602_p9, %p10601_p8 }
  0x52   :  { %p10604_p11 = pnand %p10603_p10, %p10597_p7 }
  0x54   :  { %10607 = shalt.err (!%p10604_p11)
}
  0x55   :  { %90 = dma.hbm_to_vmem [thread:$0]  %s13997_s10, 16, %s88_s22, [#allocation9]  }
  0x56   :  { %10652 = dma.done.wait [#allocation3], 2048  }
  0x57   :  { %10653 = vsyncadd [#allocation3], 4294965248 }
  0x58   :  { %10654 = dma.done.wait [#allocation6], 256  }
  0x59   :  { %10655 = vsyncadd [#allocation6], 4294967040 }
  0x5a   :  { %10656 = dma.done.wait [#allocation9], 528  }
  0x5b   :  { %10657 = vsyncadd [#allocation9], 4294966768  ;;  %v10847_v0 = vld [vmem:[#allocation5] sm:$0xff]  ;;  %s10669_s25 = smov 119   ;;  %s10670_s27 = smov 125   ;;  %v178_v1 = vlaneseq  ;;  %v445_v4 = vld [vmem:[#allocation7] sm:$0xff] }
  0x5c   :  { %134 = vrot.lane.b32.xlu1 %v10847_v0, %s10669_s25  ;;  %128 = vrot.lane.b32.xlu0 %v10847_v0, %s10670_s27  ;;  %s10671_s29 = smov 116   ;;  %s10672_s15 = smov 122   ;;  %vm535_vm0 = vcmask 130048   ;;  %v1320_v21 = vld [vmem:[#allocation8] sm:$0xff]  ;;  %v1321_v22 = vld [vmem:[#allocation8 + $0x8] sm:$0xff]  ;;  %v14004_v23 = vmov 0.0|0.0  }
  0x5d   :  { %s10673_s10 = smov 110   ;;  %s10674_s22 = smov 113   ;;  %v10861_v2 = vshrl.u32 %v178_v1, 7  ;;  %v536_v13 = vsel %vm535_vm0, %v445_v4, 0.0  ;;  %9537 = vmatprep.subr.bf16.mxu0 %v14004_v23  ;;  %v1363_v24 = vand.u32 4294901760, %v1320_v21  ;;  %v1366_v25 = vand.u32 4294901760, %v1321_v22 }
  0x5e   :  { %s10675_s16 = smov 104   ;;  %s10676_s0 = smov 107   ;;  %v1322_v29 = vld [vmem:[#allocation8 + $0x10] sm:$0xff]  ;;  %v1323_v30 = vld [vmem:[#allocation8 + $0x18] sm:$0xff]  ;;  %vm10685_vm1 = vmmov 0   ;;  %v14002_v38 = vmov 0.0  }
  0x5f   :  { %s10677_s28 = smov 98   ;;  %s10678_s30 = smov 101   ;;  %14160 = vst [vmem:[#allocation19_spill] sm:$0xff] %v10861_v2  ;;  %v10866_v3 = vsub.s32 0, %v10861_v2  ;;  %v460_v6 = vsub.s32 1, %v10861_v2  ;;  %v471_v8 = vsub.s32 2, %v10861_v2  ;;  %v10879_v26 = vpack.c.bf16 %v1366_v25, %v1363_v24  ;;  %8639 = vmatprep.mubr.msk.f32.mxu0 %vm10685_vm1, %v14002_v38 }
  0x60   :  { %137 = vrot.lane.b32.xlu1 %v10847_v0, %s10671_s29  ;;  %131 = vrot.lane.b32.xlu0 %v10847_v0, %s10672_s15  ;;  %s10679_s21 = smov 92   ;;  %s10680_s17 = smov 95   ;;  %v482_v10 = vsub.s32 3, %v10861_v2  ;;  %v493_v12 = vsub.s32 4, %v10861_v2  ;;  %v504_v15 = vsub.s32 5, %v10861_v2  ;;  %v515_v17 = vsub.s32 6, %v10861_v2 }
  0x61   :  { %s10681_s18 = smov 86   ;;  %s10682_s6 = smov 89   ;;  %14161 = vst [vmem:[#allocation20_spill] sm:$0xff] %v10866_v3  ;;  %v450_v5 = vrot.slane %v445_v4, %v10866_v3  ;;  %v461_v7 = vrot.slane %v445_v4, %v460_v6  ;;  %v472_v9 = vrot.slane %v445_v4, %v471_v8  ;;  %v526_v19 = vsub.s32 7, %v10861_v2  ;;  %14162 = vst [vmem:[#allocation21_spill] sm:$0xff] %v10879_v26 }
  0x62   :  { %s10683_s26 = smov 83   ;;  %v483_v11 = vrot.slane %v445_v4, %v482_v10  ;;  %v494_v14 = vrot.slane %v445_v4, %v493_v12  ;;  %v505_v16 = vrot.slane %v445_v4, %v504_v15  ;;  %v516_v18 = vrot.slane %v445_v4, %v515_v17  ;;  %9539 = vmatpush3.bf16.msra.mxu0 %v10879_v26  ;;  %s10693_s19 = smov 64  }
  0x63   :  { %v527_v20 = vrot.slane %v445_v4, %v526_v19  ;;  %v10881_v27 = vsub.f32 %v1320_v21, %v1363_v24  ;;  %v10883_v28 = vsub.f32 %v1321_v22, %v1366_v25  ;;  %v1369_v31 = vand.u32 4294901760, %v1322_v29  ;;  %9540 = vmatprep.subr.bf16.mxu0 %v14004_v23  ;;  %s10694_s1 = smov 24   ;;  %s10695_s23 = smov 27  }
  0x64   :  { %143 = vrot.lane.b32.xlu1 %v10847_v0, %s10673_s10  ;;  %140 = vrot.lane.b32.xlu0 %v10847_v0, %s10674_s22  ;;  %v1372_v32 = vand.u32 4294901760, %v1323_v30  ;;  %v10688_v12 = vmov 1934713408   ;;  %vm559_vm2 = vcmask 23552   ;;  %vm672_vm3 = vcmask 261120   ;;  %s10696_s24 = smov 30  }
  0x65   :  { %14163 = vst [vmem:[#allocation22_spill] sm:$0xff] %v10881_v27  ;;  %14164 = vst [vmem:[#allocation23_spill] sm:$0xff] %v10883_v28  ;;  %v10893_v36 = vsub.f32 %v1322_v29, %v1369_v31  ;;  %v1444_v43 = vand.u32 4294901760, %v10881_v27  ;;  %v1451_v44 = vand.u32 4294901760, %v10883_v28  ;;  %vm1340_vm5 = vcmask 1041409   ;;  %s10698_s2 = smov 36  }
  0x66   :  { %v10891_v35 = vpack.c.bf16 %v1372_v32, %v1369_v31  ;;  %v10895_v37 = vsub.f32 %v1323_v30, %v1372_v32  ;;  %vm1343_vm6 = vcmask 1042434   ;;  %vm1346_vm7 = vcmask 1043459   ;;  %s10702_s20 = smov 12   ;;  %s10703_s25 = smov 9  }
  0x67   :  { %14166 = vst [vmem:[#allocation25_spill] sm:$0xff] %v10893_v36  ;;  %v1445_v46 = vsub.f32 %v10881_v27, %v1444_v43  ;;  %v1452_v47 = vsub.f32 %v10883_v28, %v1451_v44  ;;  %v1458_v48 = vand.u32 4294901760, %v10893_v36  ;;  %v10952_v17 = vpack.c.bf16 %v1451_v44, %v1444_v43  ;;  %s10704_s27 = smov 18   ;;  %s10705_s29 = smov 15  }
  0x68   :  { %149 = vrot.lane.b32.xlu1 %v10847_v0, %s10675_s16  ;;  %146 = vrot.lane.b32.xlu0 %v10847_v0, %s10676_s0  ;;  %14165 = vst [vmem:[#allocation24_spill] sm:$0xff] %v10891_v35  ;;  %14167 = vst [vmem:[#allocation26_spill] sm:$0xff] %v10895_v37  ;;  %v1465_v49 = vand.u32 4294901760, %v10895_v37  ;;  %vm1349_vm8 = vcmask 1044484   ;;  %vm1352_vm9 = vcmask 1045509   ;;  %vm1355_vm10 = vcmask 1046534  }
  0x69   :  { %9542 = vmatpush3.bf16.msra.mxu0 %v10891_v35  ;;  %v1446_v51 = vand.u32 4294901760, %v1445_v46  ;;  %v1453_v52 = vand.u32 4294901760, %v1452_v47  ;;  %v1459_v53 = vsub.f32 %v10893_v36, %v1458_v48  ;;  %14172 = vst [vmem:[#allocation31_spill] sm:$0xff] %v10952_v17  ;;  %vm1358_vm11 = vcmask 1047559   ;;  %s10706_s15 = smov 42   ;;  %s10707_s10 = smov 96  }
  0x6a   :  { %9543 = vmatprep.subr.bf16.mxu0 %v14004_v23  ;;  %v1466_v54 = vsub.f32 %v10895_v37, %v1465_v49  ;;  %v10963_v22 = vpack.c.bf16 %v1465_v49, %v1458_v48  ;;  %s10708_s22 = smov 21   ;;  %s10710_s16 = smov [#allocation11]  }
  0x6b   :  { %v10921_v56 = vpack.c.bf16 %v1453_v52, %v1446_v51  ;;  %v1460_v57 = vand.u32 4294901760, %v1459_v53  ;;  %s8024_s0 = sshll.u32 %s10710_s16, 4  ;;  %s8025_s0 = int_to_ptr.vmem [resolvable:$true] %s8024_s0 }
  0x6c   :  { %155 = vrot.lane.b32.xlu1 %v10847_v0, %s10677_s28  ;;  %152 = vrot.lane.b32.xlu0 %v10847_v0, %s10678_s30  ;;  %v1467_v58 = vand.u32 4294901760, %v1466_v54  ;;  %14174 = vst [vmem:[#allocation33_spill] sm:$0xff] %v10963_v22  ;;  %s10711_s28 = smov [#allocation12]   ;;  %p10613_p13 = scmp.lt.s32.totalorder %s8025_s0, %s8025_s0 }
  0x6d   :  { %14168 = vst [vmem:[#allocation27_spill] sm:$0xff] %v10921_v56  ;;  %s8034_s30 = sshll.u32 %s10711_s28, 4  ;;  %s8035_s30 = int_to_ptr.vmem [resolvable:$true] %s8034_s30 }
  0x6e   :  { %v10927_v61 = vpack.c.bf16 %v1467_v58, %v1460_v57 }
  0x70   :  { %161 = vrot.lane.b32.xlu1 %v10847_v0, %s10679_s21  ;;  %158 = vrot.lane.b32.xlu0 %v10847_v0, %s10680_s17  ;;  %14169 = vst [vmem:[#allocation28_spill] sm:$0xff] %v10927_v61  ;;  %s10608_s21 = scalar_lea.vmem %s8025_s0, 512 }
  0x71   :  { %p10609_p12 = scmp.ne.s32.totalorder %s8025_s0, %s10608_s21  ;;  %p10614_p0 = scmp.lt.s32.totalorder %s10608_s21, %s10608_s21 }
  0x73   :  { %p10615_p1 = por %p10614_p0, %p10613_p13 }
  0x74   :  { %167 = vrot.lane.b32.xlu1 %v10847_v0, %s10681_s18  ;;  %164 = vrot.lane.b32.xlu0 %v10847_v0, %s10682_s6 }
  0x75   :  { %p10616_p2 = pnand %p10615_p1, %p10609_p12 }
  0x78   :  { %170 = vrot.lane.b32.xlu0 %v10847_v0, %s10683_s26 }
  0x7c   :  { %452 = vbcast.lane.b32.xlu0 %v450_v5, 256 }
  0x80   :  { %456 = vbcast.lane.b32.xlu0 %v450_v5, 264  ;;  %v10687_v5 = vmov 1983009808  }
  0x81   :  { %v176_v6 = vunpack.c.l.s4 %v10687_v5 }
  0x83   :  { %v177_v8 = vunpack.c.0.s8 %v176_v6 }
  0x84   :  { %463 = vbcast.lane.b32.xlu0 %v461_v7, 256 }
  0x88   :  { %467 = vbcast.lane.b32.xlu0 %v461_v7, 264 }
  0x8c   :  { %474 = vbcast.lane.b32.xlu0 %v472_v9, 256 }
  0x90   :  { %478 = vbcast.lane.b32.xlu0 %v472_v9, 264 }
  0x94   :  { %485 = vbcast.lane.b32.xlu0 %v483_v11, 256 }
  0x98   :  { %537 = vadd.xlane.f32.xlu1 %v536_v13  ;;  %489 = vbcast.lane.b32.xlu0 %v483_v11, 264  ;;  %v240_v13 = vunpack.c.l.s4 %v10688_v12  ;;  %v111_v12 = vld [vmem:[#allocation2 + $0x8] sm:$0xff] }
  0x9a   :  { %v241_v29 = vunpack.c.0.s8 %v240_v13 }
  0x9c   :  { %496 = vbcast.lane.b32.xlu0 %v494_v14, 256  ;;  %v10985_v51 = vsub.s32 %v241_v29, %v10861_v2 }
  0x9e   :  { %14176 = vst [vmem:[#allocation35_spill] sm:$0xff] %v10985_v51 }
  0xa0   :  { %507 = vbcast.lane.b32.xlu0 %v505_v16, 256 }
  0xa4   :  { %511 = vbcast.lane.b32.xlu0 %v505_v16, 264 }
  0xa8   :  { %518 = vbcast.lane.b32.xlu0 %v516_v18, 256 }
  0xa9   :  { %500 = vbcast.lane.b32.xlu1 %v494_v14, 264  ;;  %v10946_v14 = vsub.s32 %v177_v8, %v10861_v2 }
  0xab   :  { %14171 = vst [vmem:[#allocation30_spill] sm:$0xff] %v10946_v14 }
  0xac   :  { %522 = vbcast.lane.b32.xlu0 %v516_v18, 264 }
  0xad   :  { %529 = vbcast.lane.b32.xlu1 %v527_v20, 256 }
  0xb0   :  { %533 = vbcast.lane.b32.xlu0 %v527_v20, 264 }
  0xce   :  { %v10887_v33 = vpop.permute.xlu1 %134  ;;  %v10889_v34 = vpop.permute.xlu0 %128 }
  0xcf   :  { %v189_v43 = vcombine.low %v10889_v34, %v10887_v33  ;;  %v190_v47 = vcombine.high %v10889_v34, %v10887_v33 }
  0xd1   :  { %v197_v54 = vrot.slane %v189_v43, %v10946_v14  ;;  %v204_v58 = vrot.slane %v190_v47, %v10946_v14 }
  0xd2   :  { %v10901_v39 = vpop.permute.xlu1 %137  ;;  %v132_v40 = vpop.permute.xlu0 %131 }
  0xd3   :  { %v173_v24 = vcombine.low %v10847_v0, %v132_v40  ;;  %v174_v30 = vcombine.high %v10847_v0, %v132_v40 }
  0xd5   :  { %v181_v0 = vrot.slane %v173_v24, %v10946_v14  ;;  %v188_v52 = vrot.slane %v174_v30, %v10946_v14 }
  0xd6   :  { %v10903_v41 = vpop.permute.xlu1 %143  ;;  %v10905_v42 = vpop.permute.xlu0 %140 }
  0xd7   :  { %v205_v25 = vcombine.low %v10901_v39, %v10903_v41  ;;  %v237_v6 = vcombine.low %v181_v0, %v197_v54  ;;  %v206_v8 = vcombine.high %v10901_v39, %v10903_v41  ;;  %v238_v13 = vcombine.high %v181_v0, %v197_v54 }
  0xd9   :  { %v213_v40 = vrot.slane %v205_v25, %v10946_v14  ;;  %v245_v41 = vrot.slane %v237_v6, %v10985_v51  ;;  %v220_v29 = vrot.slane %v206_v8, %v10946_v14  ;;  %v252_v43 = vrot.slane %v238_v13, %v10985_v51 }
  0xda   :  { %v10909_v45 = vpop.permute.xlu0 %146  ;;  %v10915_v50 = vpop.permute.xlu1 %149 }
  0xdb   :  { %v221_v18 = vcombine.low %v10905_v42, %v10909_v45  ;;  %v222_v33 = vcombine.high %v10905_v42, %v10909_v45 }
  0xdd   :  { %v229_v44 = vrot.slane %v221_v18, %v10946_v14  ;;  %v11000_v42 = vrot.slane %v222_v33, %v10946_v14 }
  0xde   :  { %v10919_v55 = vpop.permute.xlu0 %152  ;;  %v10923_v59 = vpop.permute.xlu1 %155 }
  0xdf   :  { %v309_v20 = vcombine.low %v10915_v50, %v10923_v59  ;;  %v269_v34 = vcombine.low %v213_v40, %v229_v44  ;;  %v270_v30 = vcombine.high %v213_v40, %v229_v44 }
  0xe1   :  { %v317_v48 = vrot.slane %v309_v20, %v10946_v14  ;;  %v277_v45 = vrot.slane %v269_v34, %v10985_v51  ;;  %v284_v8 = vrot.slane %v270_v30, %v10985_v51 }
  0xe2   :  { %v10925_v60 = vpop.permute.xlu0 %158  ;;  %v10935_v4 = vpop.permute.xlu1 %161 }
  0xe3   :  { %v325_v15 = vcombine.low %v10919_v55, %v10925_v60  ;;  %v11021_v54 = vcombine.low %v245_v41, %v277_v45 }
  0xe5   :  { %v10970_v31 = vrot.slane %v325_v15, %v10946_v14  ;;  %v253_v15 = vcombine.low %v188_v52, %v204_v58  ;;  %14180 = vst [vmem:[#allocation39_spill] sm:$0xff] %v11021_v54 }
  0xe6   :  { %v10933_v1 = vpop.permute.xlu0 %164  ;;  %v10939_v9 = vpop.permute.xlu1 %167 }
  0xe7   :  { %v341_v16 = vcombine.low %v10935_v4, %v10939_v9  ;;  %v373_v53 = vcombine.low %v317_v48, %v10970_v31  ;;  %v11013_v47 = vrot.slane %v253_v15, %v10985_v51  ;;  %v374_v33 = vcombine.high %v317_v48, %v10970_v31 }
  0xe8   :  { %v342_v31 = vcombine.high %v10935_v4, %v10939_v9 }
  0xe9   :  { %v349_v32 = vrot.slane %v341_v16, %v10946_v14  ;;  %v254_v16 = vcombine.high %v188_v52, %v204_v58  ;;  %v381_v18 = vrot.slane %v373_v53, %v10985_v51  ;;  %v285_v52 = vcombine.low %v220_v29, %v11000_v42 }
  0xea   :  { %v10937_v7 = vpop.permute.xlu0 %170  ;;  %v286_v53 = vcombine.high %v220_v29, %v11000_v42 }
  0xeb   :  { %v357_v11 = vcombine.low %v10933_v1, %v10937_v7  ;;  %v358_v48 = vcombine.high %v10933_v1, %v10937_v7  ;;  %v293_v1 = vrot.slane %v285_v52, %v10985_v51  ;;  %v388_v7 = vrot.slane %v374_v33, %v10985_v51 }
  0xed   :  { %v10961_v21 = vrot.slane %v357_v11, %v10946_v14  ;;  %v110_v11 = vld [vmem:[#allocation2] sm:$0xff]  ;;  %v11110_v63 = vcombine.high %v11013_v47, %v293_v1 }
  0xee   :  { %v10941_v10 = vpop.permute.xlu0 %452 }
  0xef   :  { %14170 = vst [vmem:[#allocation29_spill] sm:$0xff] %v10941_v10  ;;  %v405_v49 = vcombine.low %v349_v32, %v10961_v21  ;;  %v656_v25 = vmul.f32 %v10941_v10, %v110_v11  ;;  %v406_v0 = vcombine.high %v349_v32, %v10961_v21  ;;  %v112_v21 = vld [vmem:[#allocation2 + $0x10] sm:$0xff]  ;;  %v113_v32 = vld [vmem:[#allocation2 + $0x18] sm:$0xff]  ;;  %v326_v11 = vcombine.high %v10919_v55, %v10925_v60 }
  0xf0   :  { %v543_v13 = vmul.f32 %v10941_v10, %v11021_v54  ;;  %14192 = vst [vmem:[#allocation51_spill] sm:$0xff] %v11110_v63 }
  0xf1   :  { %v413_v5 = vrot.slane %v405_v49, %v10985_v51  ;;  %v11016_v49 = vrot.slane %v254_v16, %v10985_v51  ;;  %v673_v34 = vsel %vm672_vm3, %v656_v25, 0.0  ;;  %v310_v16 = vcombine.high %v10915_v50, %v10923_v59 }
  0xf2   :  { %v10956_v19 = vpop.permute.xlu0 %456  ;;  %v11060_v50 = vrot.slane %v326_v11, %v10946_v14  ;;  %v11063_v59 = vrot.slane %v342_v31, %v10946_v14  ;;  %v11066_v25 = vrot.slane %v358_v48, %v10946_v14 }
  0xf3   :  { %14173 = vst [vmem:[#allocation32_spill] sm:$0xff] %v10956_v19  ;;  %v11005_v24 = vcombine.low %v381_v18, %v413_v5  ;;  %v657_v39 = vmul.f32 %v10956_v19, %v111_v12  ;;  %v11026_v40 = vcombine.high %v381_v18, %v413_v5  ;;  %v11039_v5 = vcombine.high %v245_v41, %v277_v45  ;;  %v115_v41 = vld [vmem:[#allocation2 + $0x28] sm:$0xff] }
  0xf4   :  { %v420_v12 = vrot.slane %v406_v0, %v10985_v51  ;;  %v11057_v45 = vcombine.low %v252_v43, %v284_v8  ;;  %v560_v0 = vsel %vm559_vm2, %v543_v13, 0.0  ;;  %v11086_v13 = vcombine.high %v252_v43, %v284_v8 }
  0xf5   :  { %14179 = vst [vmem:[#allocation38_spill] sm:$0xff] %v11005_v24  ;;  %14182 = vst [vmem:[#allocation41_spill] sm:$0xff] %v11026_v40  ;;  %v544_v58 = vmul.f32 %v10956_v19, %v11005_v24  ;;  %v674_v6 = vsel %vm672_vm3, %v657_v39, 0.0  ;;  %v114_v39 = vld [vmem:[#allocation2 + $0x20] sm:$0xff]  ;;  %v422_v2 = vcombine.high %v11063_v59, %v11066_v25 }
  0xf6   :  { %v10976_v46 = vpop.permute.xlu0 %463  ;;  %14183 = vst [vmem:[#allocation42_spill] sm:$0xff] %v11039_v5  ;;  %v675_v55 = vadd.f32 %v674_v6, %v673_v34  ;;  %14185 = vst [vmem:[#allocation44_spill] sm:$0xff] %v11057_v45  ;;  %v11068_v29 = vcombine.low %v388_v7, %v420_v12  ;;  %v11070_v30 = vcombine.high %v388_v7, %v420_v12 }
  0xf7   :  { %14175 = vst [vmem:[#allocation34_spill] sm:$0xff] %v10976_v46  ;;  %v658_v60 = vmul.f32 %v10976_v46, %v112_v21  ;;  %v561_v18 = vsel %vm559_vm2, %v544_v58, 0.0  ;;  %v545_v42 = vmul.f32 %v10976_v46, %v11039_v5  ;;  %v11084_v12 = vrot.slane %v286_v53, %v10985_v51  ;;  %14189 = vst [vmem:[#allocation48_spill] sm:$0xff] %v11086_v13 }
  0xf8   :  { %14186 = vst [vmem:[#allocation45_spill] sm:$0xff] %v11068_v29  ;;  %14187 = vst [vmem:[#allocation46_spill] sm:$0xff] %v11070_v30  ;;  %v562_v33 = vadd.f32 %v561_v18, %v560_v0  ;;  %v676_v34 = vrot.slane %v675_v55, 4  ;;  %v11098_v53 = vcombine.low %v11013_v47, %v293_v1 }
  0xf9   :  { %v682_v58 = vsel %vm672_vm3, %v658_v60, 0.0 }
  0xfa   :  { %v10992_v57 = vpop.permute.xlu0 %467  ;;  %14190 = vst [vmem:[#allocation49_spill] sm:$0xff] %v11098_v53  ;;  %v563_v8 = vrot.slane %v562_v33, 4 }
  0xfb   :  { %14177 = vst [vmem:[#allocation36_spill] sm:$0xff] %v10992_v57  ;;  %v546_v15 = vmul.f32 %v10992_v57, %v11026_v40  ;;  %v659_v4 = vmul.f32 %v10992_v57, %v113_v32  ;;  %v569_v32 = vsel %vm559_vm2, %v545_v42, 0.0  ;;  %v116_v42 = vld [vmem:[#allocation2 + $0x30] sm:$0xff] }
  0xfd   :  { %v570_v52 = vsel %vm559_vm2, %v546_v15, 0.0  ;;  %v683_v6 = vsel %vm672_vm3, %v659_v4, 0.0  ;;  %v11089_v15 = vrot.slane %v310_v16, %v10946_v14  ;;  %v421_v4 = vcombine.low %v11063_v59, %v11066_v25 }
  0xfe   :  { %v11003_v20 = vpop.permute.xlu0 %474  ;;  %v571_v60 = vadd.f32 %v570_v52, %v569_v32  ;;  %v684_v7 = vadd.f32 %v683_v6, %v682_v58  ;;  %v677_v16 = vadd.f32 %v676_v34, %v675_v55  ;;  %v120_v55 = vld [vmem:[#allocation2 + $0x50] sm:$0xff]  ;;  %v11128_v59 = vcombine.low %v11016_v49, %v11084_v12 }
  0xff   :  { %14178 = vst [vmem:[#allocation37_spill] sm:$0xff] %v11003_v20  ;;  %v660_v11 = vmul.f32 %v11003_v20, %v114_v39  ;;  %v547_v18 = vmul.f32 %v11003_v20, %v11057_v45  ;;  %v117_v39 = vld [vmem:[#allocation2 + $0x38] sm:$0xff]  ;;  %v389_v43 = vcombine.low %v11089_v15, %v11060_v50  ;;  %v429_v34 = vrot.slane %v421_v4, %v10985_v51 }
 0x100   :  { %v572_v62 = vrot.slane %v571_v60, 4  ;;  %v685_v14 = vrot.slane %v684_v7, 4  ;;  %v678_v17 = vrot.slane %v677_v16, 2  ;;  %14194 = vst [vmem:[#allocation53_spill] sm:$0xff] %v11128_v59 }
 0x101   :  { %v691_v52 = vsel %vm672_vm3, %v660_v11, 0.0  ;;  %v578_v11 = vsel %vm559_vm2, %v547_v18, 0.0 }
 0x102   :  { %v11024_v44 = vpop.permute.xlu0 %478  ;;  %v573_v35 = vadd.f32 %v572_v62, %v571_v60  ;;  %v436_v62 = vrot.slane %v422_v2, %v10985_v51 }
 0x103   :  { %14181 = vst [vmem:[#allocation40_spill] sm:$0xff] %v11024_v44  ;;  %v548_v31 = vmul.f32 %v11024_v44, %v11068_v29  ;;  %v661_v48 = vmul.f32 %v11024_v44, %v115_v41 }
 0x105   :  { %v579_v58 = vsel %vm559_vm2, %v548_v31, 0.0  ;;  %v692_v6 = vsel %vm672_vm3, %v661_v48, 0.0  ;;  %v397_v48 = vrot.slane %v389_v43, %v10985_v51  ;;  %v121_v43 = vld [vmem:[#allocation2 + $0x58] sm:$0xff] }
 0x106   :  { %v11050_v9 = vpop.permute.xlu0 %485  ;;  %v580_v47 = vadd.f32 %v579_v58, %v578_v11  ;;  %v693_v1 = vadd.f32 %v692_v6, %v691_v52  ;;  %v686_v52 = vadd.f32 %v685_v14, %v684_v7  ;;  %v574_v11 = vrot.slane %v573_v35, 2 }
 0x107   :  { %14184 = vst [vmem:[#allocation43_spill] sm:$0xff] %v11050_v9  ;;  %v549_v32 = vmul.f32 %v11050_v9, %v11086_v13  ;;  %v662_v38 = vmul.f32 %v11050_v9, %v116_v42  ;;  %v564_v42 = vadd.f32 %v563_v8, %v562_v33  ;;  %v11130_v25 = vcombine.high %v397_v48, %v429_v34 }
 0x108   :  { %v390_v8 = vcombine.high %v11089_v15, %v11060_v50  ;;  %v694_v60 = vrot.slane %v693_v1, 4  ;;  %v687_v50 = vrot.slane %v686_v52, 2 }
 0x109   :  { %v700_v18 = vsel %vm672_vm3, %v662_v38, 0.0  ;;  %14195 = vst [vmem:[#allocation54_spill] sm:$0xff] %v11130_v25  ;;  %v581_v38 = vrot.slane %v580_v47, 4  ;;  %v565_v7 = vrot.slane %v564_v42, 2 }
 0x10a   :  { %v11076_v21 = vpop.permute.xlu0 %489 }
 0x10b   :  { %14188 = vst [vmem:[#allocation47_spill] sm:$0xff] %v11076_v21  ;;  %v550_v41 = vmul.f32 %v11076_v21, %v11070_v30  ;;  %v663_v23 = vmul.f32 %v11076_v21, %v117_v39  ;;  %v587_v39 = vsel %vm559_vm2, %v549_v32, 0.0 }
 0x10d   :  { %v588_v31 = vsel %vm559_vm2, %v550_v41, 0.0  ;;  %v701_v41 = vsel %vm672_vm3, %v663_v23, 0.0 }
 0x10e   :  { %v11102_v0 = vpop.permute.xlu0 %496  ;;  %v589_v26 = vadd.f32 %v588_v31, %v587_v39  ;;  %v702_v23 = vadd.f32 %v701_v41, %v700_v18  ;;  %v122_v39 = vld [vmem:[#allocation2 + $0x60] sm:$0xff]  ;;  %v582_v18 = vadd.f32 %v581_v38, %v580_v47  ;;  %v695_v41 = vadd.f32 %v694_v60, %v693_v1  ;;  %v123_v47 = vld [vmem:[#allocation2 + $0x68] sm:$0xff] }
 0x10f   :  { %14191 = vst [vmem:[#allocation50_spill] sm:$0xff] %v11102_v0 }
 0x110   :  { %v590_v31 = vrot.slane %v589_v26, 4 }
 0x112   :  { %v11120_v22 = vpop.permute.xlu0 %507  ;;  %v591_v61 = vadd.f32 %v590_v31, %v589_v26 }
 0x113   :  { %14193 = vst [vmem:[#allocation52_spill] sm:$0xff] %v11120_v22  ;;  %v666_v4 = vmul.f32 %v11120_v22, %v120_v55  ;;  %v553_v33 = vmul.f32 %v11120_v22, %v11110_v63  ;;  %v679_v55 = vadd.f32 %v678_v17, %v677_v16  ;;  %v404_v17 = vrot.slane %v390_v8, %v10985_v51 }
 0x114   :  { %v703_v16 = vrot.slane %v702_v23, 4  ;;  %v696_v8 = vrot.slane %v695_v41, 2  ;;  %v592_v31 = vrot.slane %v591_v61, 2 }
 0x115   :  { %v718_v6 = vsel %vm672_vm3, %v666_v4, 0.0  ;;  %v605_v2 = vsel %vm559_vm2, %v553_v33, 0.0  ;;  %v11154_v33 = vcombine.low %v397_v48, %v429_v34  ;;  %v11156_v1 = vcombine.low %v404_v17, %v436_v62 }
 0x116   :  { %v11137_v58 = vpop.permute.xlu0 %511 }
 0x117   :  { %14196 = vst [vmem:[#allocation55_spill] sm:$0xff] %v11137_v58  ;;  %v554_v32 = vmul.f32 %v11137_v58, %v11130_v25  ;;  %v667_v14 = vmul.f32 %v11137_v58, %v121_v43  ;;  %v11150_v43 = vcombine.high %v11016_v49, %v11084_v12  ;;  %14199 = vst [vmem:[#allocation58_spill] sm:$0xff] %v11154_v33 }
 0x118   :  { %14200 = vst [vmem:[#allocation59_spill] sm:$0xff] %v11156_v1  ;;  %v575_v49 = vadd.f32 %v574_v11, %v573_v35  ;;  %v688_v12 = vadd.f32 %v687_v50, %v686_v52 }
 0x119   :  { %v606_v15 = vsel %vm559_vm2, %v554_v32, 0.0  ;;  %v719_v36 = vsel %vm672_vm3, %v667_v14, 0.0  ;;  %14198 = vst [vmem:[#allocation57_spill] sm:$0xff] %v11150_v43  ;;  %v566_v32 = vadd.f32 %v565_v7, %v564_v42  ;;  %v11166_v42 = vcombine.high %v404_v17, %v436_v62 }
 0x11a   :  { %v607_v4 = vadd.f32 %v606_v15, %v605_v2  ;;  %v720_v37 = vadd.f32 %v719_v36, %v718_v6  ;;  %v11146_v27 = vpop.permute.xlu0 %518  ;;  %v680_v36 = vrot.slane %v679_v55, 1  ;;  %v583_v6 = vrot.slane %v582_v18, 2 }
 0x11b   :  { %14197 = vst [vmem:[#allocation56_spill] sm:$0xff] %v11146_v27  ;;  %v668_v28 = vmul.f32 %v11146_v27, %v122_v39  ;;  %v555_v60 = vmul.f32 %v11146_v27, %v11128_v59  ;;  %v704_v39 = vadd.f32 %v703_v16, %v702_v23  ;;  %14202 = vst [vmem:[#allocation61_spill] sm:$0xff] %v11166_v42  ;;  %v567_v7 = vrot.slane %v566_v32, 1 }
 0x11c   :  { %v608_v14 = vrot.slane %v607_v4, 4  ;;  %v721_v38 = vrot.slane %v720_v37, 4  ;;  %v576_v23 = vrot.slane %v575_v49, 1  ;;  %v689_v50 = vrot.slane %v688_v12, 1 }
 0x11d   :  { %v727_v34 = vsel %vm672_vm3, %v668_v28, 0.0  ;;  %v614_v35 = vsel %vm559_vm2, %v555_v60, 0.0  ;;  %v118_v28 = vld [vmem:[#allocation2 + $0x40] sm:$0xff]  ;;  %v11171_v27 = vadd.f32 %v680_v36, %v679_v55  ;;  %v697_v62 = vadd.f32 %v696_v8, %v695_v41  ;;  %v125_v36 = vld [vmem:[#allocation2 + $0x78] sm:$0xff] }
 0x11e   :  { %v11160_v2 = vpop.permute.xlu0 %522  ;;  %v609_v15 = vadd.f32 %v608_v14, %v607_v4  ;;  %v722_v51 = vadd.f32 %v721_v38, %v720_v37  ;;  %v705_v17 = vrot.slane %v704_v39, 2  ;;  %v11173_v14 = vadd.f32 %v567_v7, %v566_v32  ;;  %v119_v32 = vld [vmem:[#allocation2 + $0x48] sm:$0xff] }
 0x11f   :  { %14201 = vst [vmem:[#allocation60_spill] sm:$0xff] %v11160_v2  ;;  %v556_v26 = vmul.f32 %v11160_v2, %v11156_v1  ;;  %v669_v48 = vmul.f32 %v11160_v2, %v123_v47  ;;  %v584_v47 = vadd.f32 %v583_v6, %v582_v18  ;;  %v593_v2 = vadd.f32 %v592_v31, %v591_v61 }
 0x120   :  { %v610_v22 = vrot.slane %v609_v15, 2  ;;  %v551_v38 = vmul.f32 %v11102_v0, %v11098_v53  ;;  %v664_v60 = vmul.f32 %v11102_v0, %v118_v28  ;;  %v11180_v55 = vadd.f32 %v689_v50, %v688_v12 }
 0x121   :  { %v615_v52 = vsel %vm559_vm2, %v556_v26, 0.0  ;;  %v728_v11 = vsel %vm672_vm3, %v669_v48, 0.0  ;;  %v723_v26 = vrot.slane %v722_v51, 2  ;;  %v585_v61 = vrot.slane %v584_v47, 1 }
 0x122   :  { %v616_v16 = vadd.f32 %v615_v52, %v614_v35  ;;  %v729_v56 = vadd.f32 %v728_v11, %v727_v34  ;;  %v11178_v35 = vadd.f32 %v576_v23, %v575_v49  ;;  %v698_v6 = vrot.slane %v697_v62, 1  ;;  %v11182_v11 = vpop.permute.xlu0 %533 }
 0x123   :  { %v706_v8 = vadd.f32 %v705_v17, %v704_v39  ;;  %v594_v34 = vrot.slane %v593_v2, 1  ;;  %v611_v7 = vadd.f32 %v610_v22, %v609_v15  ;;  %14203 = vst [vmem:[#allocation62_spill] sm:$0xff] %v11182_v11  ;;  %v596_v28 = vsel %vm559_vm2, %v551_v38, 0.0  ;;  %v124_v38 = vld [vmem:[#allocation2 + $0x70] sm:$0xff] }
 0x124   :  { %v617_v4 = vrot.slane %v616_v16, 4  ;;  %v730_v37 = vrot.slane %v729_v56, 4  ;;  %v709_v49 = vsel %vm672_vm3, %v664_v60, 0.0  ;;  %v724_v12 = vadd.f32 %v723_v26, %v722_v51 }
 0x125   :  { %v538_v48 = vpop.xlane.xlu1 %537  ;;  %v671_v23 = vmul.f32 %v11182_v11, %v125_v36  ;;  %v586_v15 = vadd.f32 %v585_v61, %v584_v47  ;;  %v11192_v17 = vadd.f32 %v698_v6, %v697_v62  ;;  %v11196_v51 = vadd.f32 %v594_v34, %v593_v2 }
 0x126   :  { %v618_v18 = vadd.f32 %v617_v4, %v616_v16  ;;  %v731_v41 = vadd.f32 %v730_v37, %v729_v56  ;;  %10272 = vrcp.f32 %v538_v48  ;;  %v707_v4 = vrot.slane %v706_v8, 1 }
 0x127   :  { %v558_v37 = vmul.f32 %v11182_v11, %v11166_v42  ;;  %v612_v60 = vrot.slane %v611_v7, 1  ;;  %v737_v36 = vsel %vm672_vm3, %v671_v23, 0.0  ;;  %vm539_vm4 = vcmp.gt.f32.partialorder %v538_v48, 0.0 }
 0x128   :  { %v619_v31 = vrot.slane %v618_v18, 2  ;;  %v732_v52 = vrot.slane %v731_v41, 2  ;;  %v11206_v34 = vadd.f32 %v707_v4, %v706_v8 }
 0x129   :  { %v11187_v56 = vpop.permute.xlu1 %500  ;;  %v11209_v11 = vadd.f32 %v612_v60, %v611_v7 }
 0x12a   :  { %14204 = vst [vmem:[#allocation63_spill] sm:$0xff] %v11187_v56  ;;  %v620_v50 = vadd.f32 %v619_v31, %v618_v18  ;;  %v733_v16 = vadd.f32 %v732_v52, %v731_v41  ;;  %v552_v39 = vmul.f32 %v11187_v56, %v11154_v33  ;;  %v665_v22 = vmul.f32 %v11187_v56, %v119_v32 }
 0x12b   :  { %v725_v41 = vrot.slane %v724_v12, 1  ;;  %v624_v52 = vsel %vm559_vm2, %v558_v37, 0.0 }
 0x12c   :  { %v597_v26 = vsel %vm559_vm2, %v552_v39, 0.0  ;;  %v710_v18 = vsel %vm672_vm3, %v665_v22, 0.0  ;;  %v621_v62 = vrot.slane %v620_v50, 1  ;;  %v734_v61 = vrot.slane %v733_v16, 1 }
 0x12d   :  { %v598_v31 = vadd.f32 %v597_v26, %v596_v28  ;;  %v711_v32 = vadd.f32 %v710_v18, %v709_v49  ;;  %v11201_v47 = vpop.permute.xlu1 %529  ;;  %v11213_v58 = vadd.f32 %v725_v41, %v724_v12 }
 0x12e   :  { %14205 = vst [vmem:[#allocation64_spill] sm:$0xff] %v11201_v47  ;;  %v557_v6 = vmul.f32 %v11201_v47, %v11150_v43  ;;  %v670_v2 = vmul.f32 %v11201_v47, %v124_v38  ;;  %v11215_v8 = vadd.f32 %v621_v62, %v620_v50  ;;  %v11217_v4 = vadd.f32 %v734_v61, %v733_v16 }
 0x12f   :  { %v599_v39 = vrot.slane %v598_v31, 4  ;;  %v712_v22 = vrot.slane %v711_v32, 4 }
 0x130   :  { %v623_v28 = vsel %vm559_vm2, %v557_v6, 0.0  ;;  %v736_v49 = vsel %vm672_vm3, %v670_v2, 0.0  ;;  %v10273_v23 = vpop.eup %10272 }
 0x131   :  { %v600_v26 = vadd.f32 %v599_v39, %v598_v31  ;;  %v713_v18 = vadd.f32 %v712_v22, %v711_v32  ;;  %v625_v42 = vadd.f32 %v624_v52, %v623_v28  ;;  %v738_v43 = vadd.f32 %v737_v36, %v736_v49 }
 0x132   :  { %v11219_v37 = vsel %vm539_vm4, %v10273_v23, 0.0 }
 0x133   :  { %v11223_v48 = vmul.f32 %v11171_v27, %v11219_v37  ;;  %v601_v7 = vrot.slane %v600_v26, 2  ;;  %v714_v38 = vrot.slane %v713_v18, 2  ;;  %v626_v60 = vrot.slane %v625_v42, 4 }
 0x134   :  { %v739_v6 = vrot.slane %v738_v43, 4  ;;  %v648_v31 = vmul.f32 %v11173_v14, %v11219_v37  ;;  %v633_v12 = vrot.slane %v11219_v37, 1  ;;  %v634_v50 = vrot.slane %v11219_v37, 2 }
 0x135   :  { %v602_v41 = vadd.f32 %v601_v7, %v600_v26  ;;  %v715_v16 = vadd.f32 %v714_v38, %v713_v18  ;;  %v627_v36 = vadd.f32 %v626_v60, %v625_v42  ;;  %v635_v32 = vrot.slane %v11219_v37, 3 }
 0x136   :  { %v740_v62 = vadd.f32 %v739_v6, %v738_v43  ;;  %v11231_v27 = vrot.slane %v648_v31, %v10866_v3  ;;  %v649_v61 = vmul.f32 %v633_v12, %v11178_v35  ;;  %v11235_v2 = vmul.f32 %v11180_v55, %v633_v12 }
 0x137   :  { %v603_v52 = vrot.slane %v602_v41, 1  ;;  %v716_v14 = vrot.slane %v715_v16, 1  ;;  %v628_v39 = vrot.slane %v627_v36, 2  ;;  %v650_v22 = vmul.f32 %v634_v50, %v586_v15 }
 0x138   :  { %14206 = vst [vmem:[#allocation65_spill] sm:$0xff] %v11231_v27  ;;  %v741_v28 = vrot.slane %v740_v62, 2  ;;  %v786_v49 = vsub.f32 %v11005_v24, %v11231_v27  ;;  %v785_v42 = vsub.f32 %v11021_v54, %v11231_v27  ;;  %v11242_v43 = vrot.slane %v649_v61, %v10866_v3 }
 0x139   :  { %v604_v23 = vadd.f32 %v603_v52, %v602_v41  ;;  %v717_v26 = vadd.f32 %v716_v14, %v715_v16  ;;  %v629_v35 = vadd.f32 %v628_v39, %v627_v36  ;;  %v11256_v31 = vrot.slane %v650_v22, %v10866_v3 }
 0x13a   :  { %14207 = vst [vmem:[#allocation66_spill] sm:$0xff] %v11242_v43  ;;  %v742_v18 = vadd.f32 %v741_v28, %v740_v62  ;;  %v11246_v7 = vmul.f32 %v786_v49, %v10956_v19  ;;  %v11249_v15 = vmul.f32 %v785_v42, %v10941_v10  ;;  %v788_v38 = vsub.f32 %v11026_v40, %v11242_v43  ;;  %v14238_v40 = vld [vmem:[#allocation27_spill] sm:$0xff] }
 0x13b   :  { %v630_v60 = vrot.slane %v629_v35, 1  ;;  %v787_v6 = vsub.f32 %v11039_v5, %v11242_v43  ;;  %14210 = vst [vmem:[#allocation69_spill] sm:$0xff] %v11256_v31  ;;  %v747_v12 = vmul.f32 %v11192_v17, %v634_v50  ;;  %v790_v17 = vsub.f32 %v11068_v29, %v11256_v31 }
 0x13c   :  { %14208 = vst [vmem:[#allocation67_spill] sm:$0xff] %v11246_v7  ;;  %14209 = vst [vmem:[#allocation68_spill] sm:$0xff] %v11249_v15  ;;  %v743_v41 = vrot.slane %v742_v18, 1  ;;  %v818_v16 = vmul.f32 %v11246_v7, %v11246_v7  ;;  %v817_v36 = vmul.f32 %v11249_v15, %v11249_v15  ;;  %v11264_v62 = vmul.f32 %v788_v38, %v10992_v57 }
 0x13d   :  { %v11266_v61 = vadd.f32 %v630_v60, %v629_v35  ;;  %v11269_v52 = vmul.f32 %v787_v6, %v10976_v46  ;;  %v1342_v50 = vrot.slane %v747_v12, 6  ;;  %v11280_v42 = vmul.f32 %v790_v17, %v11024_v44 }
 0x13e   :  { %14211 = vst [vmem:[#allocation70_spill] sm:$0xff] %v11264_v62  ;;  %v744_v14 = vadd.f32 %v743_v41, %v742_v18  ;;  %v836_v39 = vsel %vm559_vm2, %v818_v16, 0.0  ;;  %v833_v22 = vsel %vm559_vm2, %v817_v36, 0.0  ;;  %v820_v28 = vmul.f32 %v11264_v62, %v11264_v62 }
 0x13f   :  { %14212 = vst [vmem:[#allocation71_spill] sm:$0xff] %v11269_v52  ;;  %837 = vadd.xlane.f32.xlu0 %v836_v39  ;;  %834 = vadd.xlane.f32.xlu1 %v833_v22  ;;  %v819_v49 = vmul.f32 %v11269_v52, %v11269_v52  ;;  %14213 = vst [vmem:[#allocation72_spill] sm:$0xff] %v11280_v42  ;;  %v789_v35 = vsub.f32 %v11057_v45, %v11256_v31  ;;  %v636_v18 = vrot.slane %v11219_v37, 4 }
 0x140   :  { %v842_v38 = vsel %vm559_vm2, %v820_v28, 0.0  ;;  %v651_v60 = vmul.f32 %v635_v32, %v11196_v51  ;;  %v748_v6 = vmul.f32 %v11206_v34, %v635_v32  ;;  %v637_v12 = vrot.slane %v11219_v37, 5 }
 0x141   :  { %v839_v41 = vsel %vm559_vm2, %v819_v49, 0.0  ;;  %v822_v16 = vmul.f32 %v11280_v42, %v11280_v42  ;;  %v11293_v36 = vmul.f32 %v789_v35, %v11003_v20  ;;  %v652_v17 = vmul.f32 %v636_v18, %v604_v23 }
 0x142   :  { %v11296_v39 = vrot.slane %v651_v60, %v10866_v3  ;;  %v1345_v22 = vrot.slane %v748_v6, 5  ;;  %v749_v51 = vmul.f32 %v717_v26, %v636_v18  ;;  %v638_v34 = vrot.slane %v11219_v37, 6 }
 0x143   :  { %14214 = vst [vmem:[#allocation73_spill] sm:$0xff] %v11293_v36  ;;  %843 = vadd.xlane.f32.xlu1 %v842_v38  ;;  %840 = vadd.xlane.f32.xlu0 %v839_v41  ;;  %v848_v32 = vsel %vm559_vm2, %v822_v16, 0.0  ;;  %v821_v28 = vmul.f32 %v11293_v36, %v11293_v36  ;;  %v11303_v49 = vrot.slane %v652_v17, %v10866_v3  ;;  %v639_v23 = vrot.slane %v11219_v37, 7 }
 0x144   :  { %14215 = vst [vmem:[#allocation74_spill] sm:$0xff] %v11296_v39  ;;  %v792_v35 = vsub.f32 %v11070_v30, %v11296_v39  ;;  %v791_v26 = vsub.f32 %v11086_v13, %v11296_v39  ;;  %v1348_v18 = vrot.slane %v749_v51, 4  ;;  %v750_v38 = vmul.f32 %v11213_v58, %v637_v12 }
 0x145   :  { %14216 = vst [vmem:[#allocation75_spill] sm:$0xff] %v11303_v49  ;;  %v845_v60 = vsel %vm559_vm2, %v821_v28, 0.0  ;;  %v794_v6 = vsub.f32 %v11154_v33, %v11303_v49  ;;  %v793_v41 = vsub.f32 %v11098_v53, %v11303_v49  ;;  %v751_v16 = vmul.f32 %v11217_v4, %v638_v34 }
 0x146   :  { %v11318_v37 = vmul.f32 %v792_v35, %v11076_v21  ;;  %v11321_v17 = vmul.f32 %v791_v26, %v11050_v9  ;;  %v752_v55 = vmul.f32 %v744_v14, %v639_v23  ;;  %v14219_v58 = vrot.slane %v11235_v2, 7 }
 0x147   :  { %849 = vadd.xlane.f32.xlu1 %v848_v32  ;;  %846 = vadd.xlane.f32.xlu0 %v845_v60  ;;  %v11328_v28 = vmul.f32 %v794_v6, %v11187_v56  ;;  %v11331_v33 = vmul.f32 %v793_v41, %v11102_v0  ;;  %v1351_v35 = vrot.slane %v750_v38, 3 }
 0x148   :  { %14217 = vst [vmem:[#allocation76_spill] sm:$0xff] %v11318_v37  ;;  %14218 = vst [vmem:[#allocation77_spill] sm:$0xff] %v11321_v17  ;;  %v1341_v51 = vsel %vm1340_vm5, %v14219_v58, %v11223_v48  ;;  %v824_v26 = vmul.f32 %v11318_v37, %v11318_v37  ;;  %v823_v14 = vmul.f32 %v11321_v17, %v11321_v17  ;;  %v1354_v48 = vrot.slane %v751_v16, 2 }
 0x149   :  { %14220 = vst [vmem:[#allocation78_spill] sm:$0xff] %v11328_v28  ;;  %14221 = vst [vmem:[#allocation79_spill] sm:$0xff] %v11331_v33  ;;  %v1344_v4 = vsel %vm1343_vm6, %v1342_v50, %v1341_v51  ;;  %v826_v32 = vmul.f32 %v11328_v28, %v11328_v28  ;;  %v825_v60 = vmul.f32 %v11331_v33, %v11331_v33  ;;  %v1357_v41 = vrot.slane %v752_v55, 1 }
 0x14a   :  { %v1347_v2 = vsel %vm1346_vm7, %v1345_v22, %v1344_v4  ;;  %v854_v50 = vsel %vm559_vm2, %v824_v26, 0.0  ;;  %v851_v38 = vsel %vm559_vm2, %v823_v14, 0.0  ;;  %v653_v51 = vmul.f32 %v637_v12, %v11209_v11 }
 0x14b   :  { %v1350_v6 = vsel %vm1349_vm8, %v1348_v18, %v1347_v2  ;;  %855 = vadd.xlane.f32.xlu1 %v854_v50  ;;  %852 = vadd.xlane.f32.xlu0 %v851_v38  ;;  %v654_v16 = vmul.f32 %v638_v34, %v11215_v8  ;;  %v655_v55 = vmul.f32 %v639_v23, %v11266_v61  ;;  %v860_v18 = vsel %vm559_vm2, %v826_v32, 0.0  ;;  %v14230_v38 = vld [vmem:[#allocation60_spill] sm:$0xff] }
 0x14c   :  { %v1353_v58 = vsel %vm1352_vm9, %v1351_v35, %v1350_v6  ;;  %v11352_v28 = vrot.slane %v653_v51, %v10866_v3  ;;  %v857_v26 = vsel %vm559_vm2, %v825_v60, 0.0  ;;  %v14227_v60 = vld [vmem:[#allocation52_spill] sm:$0xff] }
 0x14d   :  { %v1356_v22 = vsel %vm1355_vm10, %v1354_v48, %v1353_v58  ;;  %v11359_v11 = vrot.slane %v654_v16, %v10866_v3  ;;  %v11368_v14 = vrot.slane %v655_v55, %v10866_v3  ;;  %v14225_v48 = vld [vmem:[#allocation55_spill] sm:$0xff]  ;;  %v14232_v51 = vld [vmem:[#allocation56_spill] sm:$0xff]  ;;  %v14234_v16 = vld [vmem:[#allocation57_spill] sm:$0xff] }
 0x14e   :  { %v1359_v4 = vsel %vm1358_vm11, %v1357_v41, %v1356_v22  ;;  %14222 = vst [vmem:[#allocation80_spill] sm:$0xff] %v11352_v28  ;;  %v796_v8 = vsub.f32 %v11130_v25, %v11352_v28  ;;  %v795_v34 = vsub.f32 %v11110_v63, %v11352_v28  ;;  %v14229_v41 = vld [vmem:[#allocation61_spill] sm:$0xff] }
 0x14f   :  { %v1360_v35 = vsel %vm672_vm3, %v1359_v4, 0  ;;  %14223 = vst [vmem:[#allocation81_spill] sm:$0xff] %v11359_v11  ;;  %14224 = vst [vmem:[#allocation82_spill] sm:$0xff] %v11368_v14  ;;  %861 = vadd.xlane.f32.xlu1 %v860_v18  ;;  %858 = vadd.xlane.f32.xlu0 %v857_v26  ;;  %v798_v61 = vsub.f32 %v11156_v1, %v11359_v11  ;;  %v797_v23 = vsub.f32 %v11128_v59, %v11359_v11 }
 0x150   :  { %v11361_v12 = vand.u32 4294901760, %v1360_v35  ;;  %v11376_v32 = vmul.f32 %v796_v8, %v14225_v48  ;;  %v11379_v6 = vmul.f32 %v795_v34, %v14227_v60  ;;  %v800_v50 = vsub.f32 %v14229_v41, %v11368_v14 }
 0x151   :  { %v11384_v58 = vmul.f32 %v798_v61, %v14230_v38  ;;  %v11387_v22 = vmul.f32 %v797_v23, %v14232_v51  ;;  %v799_v4 = vsub.f32 %v14234_v16, %v11368_v14 }
 0x152   :  { %v1432_v2 = vsub.f32 %v1360_v35, %v11361_v12  ;;  %14226 = vst [vmem:[#allocation83_spill] sm:$0xff] %v11376_v32  ;;  %14228 = vst [vmem:[#allocation84_spill] sm:$0xff] %v11379_v6  ;;  %v828_v18 = vmul.f32 %v11376_v32, %v11376_v32  ;;  %v827_v26 = vmul.f32 %v11379_v6, %v11379_v6  ;;  %v14235_v35 = vld [vmem:[#allocation62_spill] sm:$0xff] }
 0x153   :  { %14231 = vst [vmem:[#allocation85_spill] sm:$0xff] %v11384_v58  ;;  %14233 = vst [vmem:[#allocation86_spill] sm:$0xff] %v11387_v22  ;;  %v11396_v8 = vmul.f32 %v800_v50, %v14235_v35  ;;  %v830_v23 = vmul.f32 %v11384_v58, %v11384_v58  ;;  %v829_v25 = vmul.f32 %v11387_v22, %v11387_v22 }
 0x154   :  { %v1433_v55 = vand.u32 4294901760, %v1432_v2  ;;  %v866_v61 = vsel %vm559_vm2, %v828_v18, 0.0  ;;  %v863_v1 = vsel %vm559_vm2, %v827_v26, 0.0  ;;  %v11405_v41 = vmul.f32 %v799_v4, %v11201_v47 }
 0x155   :  { %14236 = vst [vmem:[#allocation87_spill] sm:$0xff] %v11396_v8  ;;  %867 = vadd.xlane.f32.xlu1 %v866_v61  ;;  %864 = vadd.xlane.f32.xlu0 %v863_v1  ;;  %v872_v50 = vsel %vm559_vm2, %v830_v23, 0.0  ;;  %v832_v18 = vmul.f32 %v11396_v8, %v11396_v8  ;;  %v869_v26 = vsel %vm559_vm2, %v829_v25, 0.0  ;;  %v14239_v61 = vmov 0.0|0.0   ;;  %v14243_v25 = vld [vmem:[#allocation22_spill] sm:$0xff] }
 0x156   :  { %v1434_v34 = vsub.f32 %v1432_v2, %v1433_v55  ;;  %14237 = vst [vmem:[#allocation88_spill] sm:$0xff] %v11405_v41  ;;  %v831_v1 = vmul.f32 %v11405_v41, %v11405_v41  ;;  %v14240_v4 = vmov 0.0  }
 0x158   :  { %v1435_v16 = vand.u32 4294901760, %v1434_v34  ;;  %v14241_v34 = vld [vmem:[#allocation28_spill] sm:$0xff]  ;;  %v875_v23 = vsel %vm559_vm2, %v831_v1, 0.0  ;;  %v14248_v1 = vld [vmem:[#allocation21_spill] sm:$0xff] }
 0x159   :  { %873 = vadd.xlane.f32.xlu1 %v872_v50  ;;  %870 = vadd.xlane.f32.xlu0 %v869_v26  ;;  %v14246_v26 = vld [vmem:[#allocation25_spill] sm:$0xff] }
 0x15a   :  { %8640 = vmatmul.mubr.f32.vlgmr.msra.gmra.mrb[0].mxu0 %v1435_v16  ;;  %v878_v16 = vsel %vm559_vm2, %v832_v18, 0.0  ;;  %v14245_v18 = vld [vmem:[#allocation26_spill] sm:$0xff] }
 0x15b   :  { %9545 = vmatpush3.bf16.msra.mxu0 %v14238_v40  ;;  %8650 = vmatprep.mubr.msk.f32.mxu0 %vm10685_vm1, %v14240_v4  ;;  %v14242_v40 = vld [vmem:[#allocation23_spill] sm:$0xff] }
 0x15c   :  { %9546 = vmatprep.subr.bf16.mxu0 %v14239_v61  ;;  %v14244_v50 = vpack.c.bf16 %v14242_v40, %v14243_v25  ;;  %v1852_v40 = vld [vmem:[%s13994_s7 + $0x8] sm:$0xff] }
 0x15d   :  { %879 = vadd.xlane.f32.xlu1 %v878_v16  ;;  %876 = vadd.xlane.f32.xlu0 %v875_v23  ;;  %v14249_v16 = vld [vmem:[#allocation24_spill] sm:$0xff]  ;;  %v14250_v23 = vld [vmem:[#allocation31_spill] sm:$0xff] }
 0x15f   :  { %9548 = vmatpush3.bf16.msra.mxu0 %v14241_v34  ;;  %v14247_v34 = vpack.c.bf16 %v14245_v18, %v14246_v26 }
 0x160   :  { %9549 = vmatprep.subr.bf16.mxu0 %v14239_v61 }
 0x162   :  { %8651 = vmatmul.mubr.f32.vlgmr.msra.gmra.mrb[0].mxu0 %v11361_v12 }
 0x163   :  { %9551 = vmatpush3.bf16.msra.mxu0 %v14244_v50  ;;  %8661 = vmatprep.mubr.msk.f32.mxu0 %vm10685_vm1, %v14240_v4  ;;  %v1905_v50 = vand.u32 4294901760, %v1852_v40 }
 0x164   :  { %9552 = vmatprep.subr.bf16.mxu0 %v14239_v61 }
 0x167   :  { %9554 = vmatpush3.bf16.msra.mxu0 %v14247_v34 }
 0x168   :  { %9555 = vmatprep.subr.bf16.mxu0 %v14239_v61 }
 0x16a   :  { %8662 = vmatmul.mubr.f32.vlgmr.msra.gmra.mrb[0].mxu0 %v1432_v2  ;;  %v14251_v2 = vld [vmem:[#allocation33_spill] sm:$0xff] }
 0x16b   :  { %9557 = vmatpush3.bf16.msra.mxu0 %v14248_v1  ;;  %8672 = vmatprep.mubr.msk.f32.mxu0 %vm10685_vm1, %v14240_v4 }
 0x16c   :  { %9558 = vmatprep.subr.bf16.mxu0 %v14239_v61 }
 0x16f   :  { %9560 = vmatpush3.bf16.msra.mxu0 %v14249_v16 }
 0x170   :  { %9561 = vmatprep.subr.bf16.mxu0 %v14239_v61 }
 0x172   :  { %8673 = vmatmul.mubr.f32.vlgmr.msra.gmra.mrb[0].mxu0 %v1433_v55  ;;  %v1851_v55 = vld [vmem:[%s13994_s7] sm:$0xff]  ;;  %s10697_s7 = smov 33  }
 0x173   :  { %9563 = vmatpush3.bf16.msra.mxu0 %v14250_v23  ;;  %8683 = vmatprep.mubr.msk.f32.mxu0 %vm10685_vm1, %v14240_v4  ;;  %v1902_v25 = vand.u32 4294901760, %v1851_v55 }
 0x174   :  { %9564 = vmatprep.subr.bf16.mxu0 %v14239_v61 }
 0x175   :  { %v11457_v18 = vpack.c.bf16 %v1905_v50, %v1902_v25 }
 0x177   :  { %9566 = vmatpush3.bf16.msra.mxu0 %v14251_v2  ;;  %14252 = vst [vmem:[#allocation27_spill] sm:$0xff] %v11457_v18  ;;  %9574 = vmatprep.subr.bf16.mxu1 %v11457_v18 }
 0x178   :  { %9567 = vmatprep.subr.bf16.mxu0 %v14239_v61  ;;  %9576 = vmatpush3.bf16.msra.mxu1 %v11457_v18 }
 0x17a   :  { %8684 = vmatmul.mubr.f32.vlgmr.msra.gmra.mrb[0].mxu0 %v11361_v12 }
 0x17b   :  { %9569 = vmatpush3.bf16.msra.mxu0 %v14248_v1  ;;  %8694 = vmatprep.mubr.msk.f32.mxu0 %vm10685_vm1, %v14240_v4  ;;  %v11463_v4 = vsub.f32 %v1852_v40, %v1905_v50 }
 0x17c   :  { %9570 = vmatprep.subr.bf16.mxu0 %v14239_v61  ;;  %v11461_v61 = vsub.f32 %v1851_v55, %v1902_v25 }
 0x17d   :  { %14254 = vst [vmem:[#allocation23_spill] sm:$0xff] %v11463_v4  ;;  %v14040_v26 = vand.u32 4294901760, %v11463_v4 }
 0x17e   :  { %14253 = vst [vmem:[#allocation28_spill] sm:$0xff] %v11461_v61 }
 0x17f   :  { %9572 = vmatpush3.bf16.msra.mxu0 %v14249_v16  ;;  %v2139_v1 = vsub.f32 %v11463_v4, %v14040_v26 }
 0x181   :  { %v2140_v23 = vand.u32 4294901760, %v2139_v1 }
 0x182   :  { %8695 = vmatmul.mubr.f32.vlgmr.msra.gmra.mrb[0].mxu0 %v11361_v12  ;;  %v14039_v12 = vand.u32 4294901760, %v11461_v61 }
 0x184   :  { %v2132_v34 = vsub.f32 %v11461_v61, %v14039_v12 }
 0x186   :  { %v2133_v16 = vand.u32 4294901760, %v2132_v34 }
 0x188   :  { %v11473_v2 = vpack.c.bf16 %v2140_v23, %v2133_v16 }
 0x18a   :  { %9578 = vmatprep.subr.bf16.mxu1 %v11473_v2 }
 0x1cc   :  { %v835_v55 = vpop.xlane.xlu1 %834  ;;  %v838_v40 = vpop.xlane.xlu0 %837 }
 0x1cd   :  { %10274 = vrsqrt.f32 %v835_v55  ;;  %vm883_vm12 = vcmp.eq.f32.partialorder %v835_v55, inf  ;;  %vm885_vm13 = vcmp.eq.f32.partialorder %v835_v55, 0.0  ;;  %v886_v1 = vand.u32 2147483648, %v835_v55 }
 0x1ce   :  { %10276 = vrsqrt.f32 %v838_v40  ;;  %vm890_vm14 = vcmp.eq.f32.partialorder %v838_v40, inf  ;;  %vm892_vm15 = vcmp.eq.f32.partialorder %v838_v40, 0.0  ;;  %v893_v26 = vand.u32 2147483648, %v838_v40 }
 0x1d0   :  { %v844_v25 = vpop.xlane.xlu1 %843  ;;  %v841_v50 = vpop.xlane.xlu0 %840 }
 0x1d1   :  { %10278 = vrsqrt.f32 %v844_v25  ;;  %vm904_vm1 = vcmp.eq.f32.partialorder %v844_v25, inf  ;;  %vm906_vm4 = vcmp.eq.f32.partialorder %v844_v25, 0.0  ;;  %v907_v24 = vand.u32 2147483648, %v844_v25 }
 0x1d2   :  { %10280 = vrsqrt.f32 %v841_v50  ;;  %vm897_vm5 = vcmp.eq.f32.partialorder %v841_v50, inf  ;;  %vm899_vm6 = vcmp.eq.f32.partialorder %v841_v50, 0.0  ;;  %v900_v41 = vand.u32 2147483648, %v841_v50 }
 0x1d4   :  { %v11476_v58 = vpop.xlane.xlu1 %849  ;;  %v11478_v12 = vpop.xlane.xlu0 %846 }
 0x1d5   :  { %10282 = vrsqrt.f32 %v11476_v58  ;;  %vm918_vm7 = vcmp.eq.f32.partialorder %v11476_v58, inf  ;;  %vm920_vm8 = vcmp.eq.f32.partialorder %v11476_v58, 0.0  ;;  %v921_v32 = vand.u32 2147483648, %v11476_v58 }
 0x1d6   :  { %10284 = vrsqrt.f32 %v11478_v12  ;;  %vm911_vm9 = vcmp.eq.f32.partialorder %v11478_v12, inf  ;;  %vm913_vm10 = vcmp.eq.f32.partialorder %v11478_v12, 0.0 }
 0x1d7   :  { %v10275_v34 = vpop.eup %10274 }
 0x1d8   :  { %v10277_v16 = vpop.eup %10276  ;;  %v882_v23 = vmul.f32 %v10275_v34, %v835_v55  ;;  %v11482_v14 = vpop.xlane.xlu1 %855 }
 0x1d9   :  { %v11484_v63 = vpop.xlane.xlu0 %852  ;;  %v889_v30 = vmul.f32 %v10277_v16, %v838_v40  ;;  %10286 = vrsqrt.f32 %v11482_v14  ;;  %vm932_vm11 = vcmp.eq.f32.partialorder %v11482_v14, inf }
 0x1da   :  { %10288 = vrsqrt.f32 %v11484_v63  ;;  %v884_v34 = vsel %vm883_vm12, %v835_v55, %v882_v23  ;;  %v914_v23 = vand.u32 2147483648, %v11478_v12  ;;  %vm934_vm12 = vcmp.eq.f32.partialorder %v11482_v14, 0.0 }
 0x1db   :  { %v10279_v59 = vpop.eup %10278  ;;  %v891_v53 = vsel %vm890_vm14, %v838_v40, %v889_v30  ;;  %v887_v30 = vsel %vm885_vm13, %v886_v1, %v884_v34  ;;  %v935_v55 = vand.u32 2147483648, %v11482_v14  ;;  %vm925_vm13 = vcmp.eq.f32.partialorder %v11484_v63, inf }
 0x1dc   :  { %v10281_v16 = vpop.eup %10280  ;;  %v894_v45 = vsel %vm892_vm15, %v893_v26, %v891_v53  ;;  %v903_v29 = vmul.f32 %v10279_v59, %v844_v25  ;;  %v11496_v54 = vpop.xlane.xlu1 %861  ;;  %v11511_v26 = vld [vmem:[%s13991_s4] ss:$0 sm:$0xff]  ;;  %vm927_vm14 = vcmp.eq.f32.partialorder %v11484_v63, 0.0  ;;  %v11521_v34 = vmul.f32 0.14285715, %v887_v30  ;;  %s10700_s4 = smov 6  }
 0x1dd   :  { %v11498_v11 = vpop.xlane.xlu0 %858  ;;  %v896_v8 = vmul.f32 %v10281_v16, %v841_v50  ;;  %10290 = vrsqrt.f32 %v11496_v54  ;;  %v11504_v40 = vmul.f32 0.14285715, %v894_v45  ;;  %vm946_vm15 = vcmp.eq.f32.partialorder %v11496_v54, inf }
 0x1de   :  { %v905_v53 = vsel %vm904_vm1, %v844_v25, %v903_v29  ;;  %10292 = vrsqrt.f32 %v11498_v11  ;;  %vm948_vm1 = vcmp.eq.f32.partialorder %v11496_v54, 0.0  ;;  %v949_v13 = vand.u32 2147483648, %v11496_v54 }
 0x1df   :  { %v10283_v59 = vpop.eup %10282  ;;  %v908_v16 = vsel %vm906_vm4, %v907_v24, %v905_v53  ;;  %v898_v28 = vsel %vm897_vm5, %v841_v50, %v896_v8  ;;  %v928_v24 = vand.u32 2147483648, %v11484_v63  ;;  %v11528_v8 = vsub.f32 %v11504_v40, %v11511_v26 }
 0x1e0   :  { %v10285_v45 = vpop.eup %10284  ;;  %v901_v1 = vsel %vm899_vm6, %v900_v41, %v898_v28  ;;  %v917_v29 = vmul.f32 %v10283_v59, %v11476_v58  ;;  %v11530_v50 = vmul.f32 0.14285715, %v908_v16  ;;  %vm939_vm4 = vcmp.eq.f32.partialorder %v11498_v11, inf }
 0x1e1   :  { %v910_v25 = vmul.f32 %v10285_v45, %v11478_v12  ;;  %v11532_v28 = vmul.f32 0.14285715, %v901_v1  ;;  %vm941_vm5 = vcmp.eq.f32.partialorder %v11498_v11, 0.0  ;;  %v942_v22 = vand.u32 2147483648, %v11498_v11 }
 0x1e2   :  { %v919_v41 = vsel %vm918_vm7, %v11476_v58, %v917_v29  ;;  %v11537_v30 = vpop.xlane.xlu1 %867  ;;  %v11539_v53 = vpop.xlane.xlu0 %864 }
 0x1e3   :  { %v10287_v59 = vpop.eup %10286  ;;  %v922_v45 = vsel %vm920_vm8, %v921_v32, %v919_v41  ;;  %v912_v5 = vsel %vm911_vm9, %v11478_v12, %v910_v25  ;;  %10294 = vrsqrt.f32 %v11537_v30  ;;  %v11560_v41 = vmul.f32 -112.5, %v11528_v8 }
 0x1e4   :  { %v10289_v16 = vpop.eup %10288  ;;  %v915_v1 = vsel %vm913_vm10, %v914_v23, %v912_v5  ;;  %v931_v29 = vmul.f32 %v10287_v59, %v11482_v14  ;;  %v11553_v58 = vmul.f32 0.14285715, %v922_v45  ;;  %v11564_v5 = vsub.f32 %v11530_v50, %v11511_v26 }
 0x1e5   :  { %v11555_v32 = vmul.f32 0.14285715, %v915_v1  ;;  %v924_v25 = vmul.f32 %v10289_v16, %v11484_v63  ;;  %v11568_v12 = vsub.f32 %v11532_v28, %v11511_v26  ;;  %10296 = vrsqrt.f32 %v11539_v53 }
 0x1e6   :  { %v933_v23 = vsel %vm932_vm11, %v11482_v14, %v931_v29  ;;  %v11573_v59 = vpop.xlane.xlu1 %873  ;;  %v11587_v6 = vpop.xlane.xlu0 %870  ;;  %v11591_v14 = vmul.f32 %v11521_v34, %v11521_v34  ;;  %vm960_vm6 = vcmp.eq.f32.partialorder %v11537_v30, inf  ;;  %vm962_vm7 = vcmp.eq.f32.partialorder %v11537_v30, 0.0 }
 0x1e7   :  { %v10291_v45 = vpop.eup %10290  ;;  %v936_v16 = vsel %vm934_vm12, %v935_v55, %v933_v23  ;;  %v926_v1 = vsel %vm925_vm13, %v11484_v63, %v924_v25  ;;  %v11595_v55 = vsub.f32 %v11553_v58, %v11511_v26  ;;  %v11599_v25 = vsub.f32 %v11555_v32, %v11511_v26 }
 0x1e8   :  { %v10293_v49 = vpop.eup %10292  ;;  %v11582_v31 = vmul.f32 0.14285715, %v936_v16  ;;  %v929_v29 = vsel %vm927_vm14, %v928_v24, %v926_v1  ;;  %v945_v27 = vmul.f32 %v10291_v45, %v11496_v54  ;;  %v11605_v24 = vmul.f32 -112.5, %v11564_v5 }
 0x1e9   :  { %v11601_v23 = vmul.f32 0.14285715, %v929_v29  ;;  %v938_v63 = vmul.f32 %v10293_v49, %v11498_v11  ;;  %v11608_v45 = vmul.f32 -112.5, %v11568_v12  ;;  %10298 = vrsqrt.f32 %v11573_v59 }
 0x1ea   :  { %v947_v16 = vsel %vm946_vm15, %v11496_v54, %v945_v27  ;;  %v11616_v1 = vsub.f32 %v11582_v31, %v11511_v26  ;;  %v11633_v37 = vpop.xlane.xlu1 %879  ;;  %v963_v62 = vand.u32 2147483648, %v11537_v30  ;;  %vm953_vm8 = vcmp.eq.f32.partialorder %v11539_v53, inf }
 0x1eb   :  { %v950_v29 = vsel %vm948_vm1, %v949_v13, %v947_v16  ;;  %v940_v49 = vsel %vm939_vm4, %v11498_v11, %v938_v63  ;;  %v11626_v43 = vsub.f32 %v11601_v23, %v11511_v26  ;;  %v11636_v13 = vmul.f32 -112.5, %v11595_v55 }
 0x1ec   :  { %v11628_v27 = vmul.f32 0.14285715, %v950_v29  ;;  %v943_v39 = vsel %vm941_vm5, %v942_v22, %v940_v49  ;;  %v11639_v63 = vmul.f32 -112.5, %v11599_v25  ;;  %10300 = vrsqrt.f32 %v11587_v6  ;;  %v11651_v22 = vpop.xlane.xlu0 %876 }
 0x1ed   :  { %v10295_v54 = vpop.eup %10294  ;;  %v11641_v16 = vmul.f32 0.14285715, %v943_v39  ;;  %v11654_v49 = vmul.f32 -112.5, %v11616_v1  ;;  %vm955_vm9 = vcmp.eq.f32.partialorder %v11539_v53, 0.0  ;;  %v956_v39 = vand.u32 2147483648, %v11539_v53 }
 0x1ee   :  { %v11646_v29 = vsub.f32 %v11628_v27, %v11511_v26  ;;  %v959_v11 = vmul.f32 %v10295_v54, %v11537_v30  ;;  %10302 = vrsqrt.f32 %v11633_v37  ;;  %v11660_v7 = vmul.f32 -112.5, %v11626_v43 }
 0x1ef   :  { %v11664_v54 = vsub.f32 %v11641_v16, %v11511_v26  ;;  %vm974_vm10 = vcmp.eq.f32.partialorder %v11573_v59, inf  ;;  %v10297_v36 = vpop.eup %10296  ;;  %vm976_vm11 = vcmp.eq.f32.partialorder %v11573_v59, 0.0  ;;  %v977_v15 = vand.u32 2147483648, %v11573_v59 }
 0x1f0   :  { %v961_v33 = vsel %vm960_vm6, %v11537_v30, %v959_v11  ;;  %10304 = vrsqrt.f32 %v11651_v22  ;;  %v11676_v52 = vmul.f32 -112.5, %v11646_v29  ;;  %v952_v17 = vmul.f32 %v10297_v36, %v11539_v53 }
 0x1f1   :  { %v964_v42 = vsel %vm962_vm7, %v963_v62, %v961_v33  ;;  %vm967_vm12 = vcmp.eq.f32.partialorder %v11587_v6, inf  ;;  %v970_v11 = vand.u32 2147483648, %v11587_v6  ;;  %vm969_vm13 = vcmp.eq.f32.partialorder %v11587_v6, 0.0 }
 0x1f2   :  { %vm988_vm14 = vcmp.eq.f32.partialorder %v11633_v37, inf  ;;  %v1025_v33 = vmul.f32 %v11591_v14, %v11591_v14  ;;  %v1224_v62 = vsub.f32 %v11521_v34, %v11511_v26  ;;  %v11689_v30 = vmul.f32 %v11504_v40, %v11504_v40 }
 0x1f3   :  { %v11692_v36 = vmul.f32 -112.5, %v11664_v54  ;;  %v11694_v47 = vmul.f32 0.14285715, %v964_v42  ;;  %v954_v35 = vsel %vm953_vm8, %v11539_v53, %v952_v17  ;;  %vm990_vm15 = vcmp.eq.f32.partialorder %v11633_v37, 0.0  ;;  %v10299_v48 = vpop.eup %10298 }
 0x1f4   :  { %v1257_v60 = vmul.f32 %v11560_v41, %v11528_v8  ;;  %v957_v51 = vsel %vm955_vm9, %v956_v39, %v954_v35  ;;  %v1041_v0 = vmul.f32 %v1025_v33, %v11591_v14  ;;  %v1240_v38 = vmul.f32 -112.5, %v1224_v62 }
 0x1f5   :  { %v1026_v42 = vmul.f32 %v11689_v30, %v11689_v30  ;;  %v11707_v56 = vmul.f32 0.14285715, %v957_v51  ;;  %v973_v9 = vmul.f32 %v10299_v48, %v11573_v59  ;;  %v991_v17 = vand.u32 2147483648, %v11633_v37 }
 0x1f6   :  { %v1274_v46 = vmul.f32 1.442695, %v1257_v60  ;;  %vm981_vm1 = vcmp.eq.f32.partialorder %v11651_v22, inf  ;;  %v1057_v8 = vmul.f32 28.0, %v1041_v0  ;;  %v1089_v41 = vmul.f32 48.0, %v1041_v0  ;;  %v10301_v53 = vpop.eup %10300 }
 0x1f7   :  { %v1256_v21 = vmul.f32 %v1240_v38, %v1224_v62  ;;  %v11714_v35 = vsub.f32 %v11694_v47, %v11511_v26  ;;  %v975_v51 = vsel %vm974_vm10, %v11573_v59, %v973_v9  ;;  %v1137_v39 = vmul.f32 21.0, %v1041_v0 }
 0x1f8   :  { %v1042_v48 = vmul.f32 %v1026_v42, %v11689_v30  ;;  %v10303_v33 = vpop.eup %10302  ;;  %v978_v60 = vsel %vm976_vm11, %v977_v15, %v975_v51  ;;  %v966_v57 = vmul.f32 %v10301_v53, %v11587_v6  ;;  %v1073_v20 = vsub.f32 1.0, %v1057_v8 }
 0x1f9   :  { %v1105_v38 = vmul.f32 %v1089_v41, %v11521_v34  ;;  %vm1185_vm4 = vcmp.lt.f32.partialorder %v11521_v34, 1.0  ;;  %v11727_v62 = vsub.f32 %v11707_v56, %v11511_v26  ;;  %v11729_v10 = vmul.f32 0.14285715, %v978_v60 }
 0x1fa   :  { %v987_v9 = vmul.f32 %v10303_v33, %v11633_v37  ;;  %10306 = vpow2.f32 %v1274_v46  ;;  %v10305_v0 = vpop.eup %10304  ;;  %v968_v15 = vsel %vm967_vm12, %v11587_v6, %v966_v57  ;;  %v1272_v42 = vmul.f32 1.442695, %v1256_v21 }
 0x1fb   :  { %v1121_v59 = vadd.f32 %v1105_v38, %v1073_v20  ;;  %v1058_v8 = vmul.f32 28.0, %v1042_v48  ;;  %v971_v41 = vsel %vm969_vm13, %v970_v11, %v968_v15  ;;  %v980_v51 = vmul.f32 %v10305_v0, %v11651_v22 }
 0x1fc   :  { %v989_v53 = vsel %vm988_vm14, %v11633_v37, %v987_v9  ;;  %v1153_v33 = vmul.f32 %v1137_v39, %v11591_v14  ;;  %v11742_v46 = vmul.f32 0.14285715, %v971_v41  ;;  %vm983_vm5 = vcmp.eq.f32.partialorder %v11651_v22, 0.0 }
 0x1fd   :  { %v992_v60 = vsel %vm990_vm15, %v991_v17, %v989_v53  ;;  %10308 = vpow2.f32 %v1272_v42  ;;  %v11749_v57 = vsub.f32 %v11729_v10, %v11511_v26  ;;  %v982_v21 = vsel %vm981_vm1, %v11651_v22, %v980_v51 }
 0x1fe   :  { %v11751_v20 = vmul.f32 0.14285715, %v992_v60  ;;  %v1169_v6 = vsub.f32 %v1121_v59, %v1153_v33  ;;  %v984_v14 = vand.u32 2147483648, %v11651_v22  ;;  %v1074_v11 = vsub.f32 1.0, %v1058_v8 }
 0x1ff   :  { %v1090_v39 = vmul.f32 48.0, %v1042_v48  ;;  %vm1186_vm6 = vcmp.lt.f32.partialorder %v11504_v40, 1.0  ;;  %v11759_v37 = vmul.f32 -112.5, %v11714_v35  ;;  %v11762_v17 = vmul.f32 -112.5, %v11727_v62 }
 0x200   :  { %v1138_v38 = vmul.f32 21.0, %v1042_v48  ;;  %v1011_v9 = vmul.f32 %v11532_v28, %v11532_v28  ;;  %v11768_v0 = vsub.f32 %v11742_v46, %v11511_v26  ;;  %v985_v15 = vsel %vm983_vm5, %v984_v14, %v982_v21 }
 0x201   :  { %v1106_v22 = vmul.f32 %v1090_v39, %v11504_v40  ;;  %v1258_v59 = vmul.f32 %v11608_v45, %v11568_v12  ;;  %v11774_v42 = vmul.f32 -112.5, %v11749_v57  ;;  %v11778_v8 = vsub.f32 %v11751_v20, %v11511_v26 }
 0x202   :  { %v1201_v48 = vsel %vm1185_vm4, %v1169_v6, 0.0  ;;  %v1027_v41 = vmul.f32 %v1011_v9, %v1011_v9  ;;  %v1154_v51 = vmul.f32 %v1138_v38, %v11689_v30  ;;  %v1012_v60 = vmul.f32 %v11530_v50, %v11530_v50 }
 0x203   :  { %v1122_v53 = vadd.f32 %v1106_v22, %v1074_v11  ;;  %v1276_v33 = vmul.f32 1.442695, %v1258_v59  ;;  %v11785_v12 = vmul.f32 0.14285715, %v985_v15  ;;  %v1259_v14 = vmul.f32 %v11605_v24, %v11564_v5 }
 0x204   :  { %v10307_v21 = vpop.eup %10306  ;;  %v1043_v45 = vmul.f32 %v1027_v41, %v1011_v9  ;;  %v1013_v39 = vmul.f32 %v11555_v32, %v11555_v32  ;;  %v11792_v34 = vmul.f32 -112.5, %v11768_v0  ;;  %v1028_v30 = vmul.f32 %v1012_v60, %v1012_v60 }
 0x205   :  { %v1170_v6 = vsub.f32 %v1122_v53, %v1154_v51  ;;  %10310 = vpow2.f32 %v1276_v33  ;;  %vm1187_vm7 = vcmp.lt.f32.partialorder %v11532_v28, 1.0  ;;  %v1278_v15 = vmul.f32 1.442695, %v1259_v14 }
 0x206   :  { %v1059_v11 = vmul.f32 28.0, %v1043_v45  ;;  %v1091_v38 = vmul.f32 48.0, %v1043_v45  ;;  %v1139_v22 = vmul.f32 21.0, %v1043_v45  ;;  %v1044_v5 = vmul.f32 %v1028_v30, %v1012_v60 }
 0x207   :  { %v10309_v59 = vpop.eup %10308  ;;  %v1202_v41 = vsel %vm1186_vm6, %v1170_v6, 0.0  ;;  %v1029_v24 = vmul.f32 %v1013_v39, %v1013_v39  ;;  %v1260_v44 = vmul.f32 %v11639_v63, %v11599_v25  ;;  %10312 = vpow2.f32 %v1278_v15 }
 0x208   :  { %v1304_v19 = vmul.f32 %v10309_v59, %v1201_v48  ;;  %v1305_v3 = vmul.f32 %v10307_v21, %v1202_v41  ;;  %v1075_v53 = vsub.f32 1.0, %v1059_v11  ;;  %v1107_v51 = vmul.f32 %v1091_v38, %v11532_v28 }
 0x209   :  { %v1155_v33 = vmul.f32 %v1139_v22, %v1011_v9  ;;  %v1060_v18 = vmul.f32 28.0, %v1044_v5  ;;  %v1092_v45 = vmul.f32 48.0, %v1044_v5  ;;  %v1140_v4 = vmul.f32 21.0, %v1044_v5 }
 0x20a   :  { %v1854_v14 = vsel %vm535_vm0, %v1304_v19, 0  ;;  %v1857_v61 = vsel %vm535_vm0, %v1305_v3, 0  ;;  %v1123_v40 = vadd.f32 %v1107_v51, %v1075_v53  ;;  %v11808_v48 = vmul.f32 -112.5, %v11778_v8 }
 0x20b   :  { %v11802_v6 = vand.u32 4294901760, %v1854_v14  ;;  %v11804_v30 = vand.u32 4294901760, %v1857_v61  ;;  %v1076_v25 = vsub.f32 1.0, %v1060_v18  ;;  %v1108_v63 = vmul.f32 %v1092_v45, %v11530_v50 }
 0x20c   :  { %v1171_v9 = vsub.f32 %v1123_v40, %v1155_v33  ;;  %v1045_v21 = vmul.f32 %v1029_v24, %v1013_v39  ;;  %v1280_v11 = vmul.f32 1.442695, %v1260_v44  ;;  %v1014_v22 = vmul.f32 %v11553_v58, %v11553_v58 }
 0x20d   :  { %v11811_v38 = vsub.f32 %v1854_v14, %v11802_v6  ;;  %v11814_v3 = vsub.f32 %v1857_v61, %v11804_v30  ;;  %v1124_v19 = vadd.f32 %v1108_v63, %v1076_v25  ;;  %v1156_v15 = vmul.f32 %v1140_v4, %v1012_v60 }
 0x20e   :  { %v1061_v18 = vmul.f32 28.0, %v1045_v21  ;;  %v1093_v59 = vmul.f32 48.0, %v1045_v21  ;;  %v1141_v41 = vmul.f32 21.0, %v1045_v21  ;;  %v1203_v44 = vsel %vm1187_vm7, %v1171_v9, 0.0 }
 0x20f   :  { %v10311_v5 = vpop.eup %10310  ;;  %v1970_v53 = vand.u32 4294901760, %v11811_v38  ;;  %v1980_v24 = vand.u32 4294901760, %v11814_v3  ;;  %10314 = vpow2.f32 %v1280_v11  ;;  %v1172_v61 = vsub.f32 %v1124_v19, %v1156_v15 }
 0x210   :  { %v1306_v51 = vmul.f32 %v10311_v5, %v1203_v44  ;;  %v1077_v33 = vsub.f32 1.0, %v1061_v18  ;;  %v1109_v45 = vmul.f32 %v1093_v59, %v11555_v32  ;;  %vm1188_vm8 = vcmp.lt.f32.partialorder %v11530_v50, 1.0 }
 0x211   :  { %v1971_v4 = vsub.f32 %v11811_v38, %v1970_v53  ;;  %v1981_v60 = vsub.f32 %v11814_v3, %v1980_v24  ;;  %v1030_v14 = vmul.f32 %v1014_v22, %v1014_v22  ;;  %v1157_v25 = vmul.f32 %v1141_v41, %v1013_v39  ;;  %v10313_v15 = vpop.eup %10312 }
 0x212   :  { %v1860_v28 = vsel %vm535_vm0, %v1306_v51, 0  ;;  %v1125_v40 = vadd.f32 %v1109_v45, %v1077_v33  ;;  %v1261_v63 = vmul.f32 %v11636_v13, %v11595_v55  ;;  %v1204_v18 = vsel %vm1188_vm8, %v1172_v61, 0.0 }
 0x213   :  { %v1972_v9 = vand.u32 4294901760, %v1971_v4  ;;  %v1982_v21 = vand.u32 4294901760, %v1981_v60  ;;  %v11833_v11 = vand.u32 4294901760, %v1860_v28  ;;  %v1046_v19 = vmul.f32 %v1030_v14, %v1014_v22 }
 0x214   :  { %v1173_v59 = vsub.f32 %v1125_v40, %v1157_v25  ;;  %v1282_v5 = vmul.f32 1.442695, %v1261_v63  ;;  %v1015_v50 = vmul.f32 %v11601_v23, %v11601_v23  ;;  %v1307_v39 = vmul.f32 %v10313_v15, %v1204_v18 }
 0x215   :  { %8701 = vmatprep.mubr.f32.mxu1 %v1972_v9  ;;  %v11838_v44 = vsub.f32 %v1860_v28, %v11833_v11  ;;  %v1062_v41 = vmul.f32 28.0, %v1046_v19  ;;  %v1094_v51 = vmul.f32 48.0, %v1046_v19  ;;  %vm1189_vm9 = vcmp.lt.f32.partialorder %v11555_v32, 1.0 }
 0x216   :  { %8702 = vmatmul.mubr.f32.vlgmr.msra.gmra.mrb[0].mxu1 %v1982_v21  ;;  %v1142_v55 = vmul.f32 21.0, %v1046_v19  ;;  %10316 = vpow2.f32 %v1282_v5  ;;  %v1031_v13 = vmul.f32 %v1015_v50, %v1015_v50  ;;  %v1863_v33 = vsel %vm535_vm0, %v1307_v39, 0 }
 0x217   :  { %9580 = vmatpush3.bf16.msra.mxu1 %v11473_v2  ;;  %v1990_v61 = vand.u32 4294901760, %v11838_v44  ;;  %v1078_v45 = vsub.f32 1.0, %v1062_v41  ;;  %v1110_v4 = vmul.f32 %v1094_v51, %v11553_v58  ;;  %v11845_v60 = vand.u32 4294901760, %v1863_v33 }
 0x218   :  { %v1205_v14 = vsel %vm1189_vm9, %v1173_v59, 0.0  ;;  %v1047_v28 = vmul.f32 %v1031_v13, %v1015_v50  ;;  %v1262_v40 = vmul.f32 %v11660_v7, %v11626_v43  ;;  %v1158_v63 = vmul.f32 %v1142_v55, %v1014_v22 }
 0x219   :  { %v10315_v32 = vpop.eup %10314  ;;  %v1991_v25 = vsub.f32 %v11838_v44, %v1990_v61  ;;  %v1126_v2 = vadd.f32 %v1110_v4, %v1078_v45  ;;  %v1016_v9 = vmul.f32 %v11582_v31, %v11582_v31  ;;  %v11855_v21 = vsub.f32 %v1863_v33, %v11845_v60 }
 0x21a   :  { %v1308_v19 = vmul.f32 %v10315_v32, %v1205_v14  ;;  %v1063_v15 = vmul.f32 28.0, %v1047_v28  ;;  %v1095_v18 = vmul.f32 48.0, %v1047_v28  ;;  %v1143_v39 = vmul.f32 21.0, %v1047_v28 }
 0x21b   :  { %v1992_v59 = vand.u32 4294901760, %v1991_v25  ;;  %v1174_v5 = vsub.f32 %v1126_v2, %v1158_v63  ;;  %v1284_v43 = vmul.f32 1.442695, %v1262_v40  ;;  %v2000_v7 = vand.u32 4294901760, %v11855_v21 }
 0x21c   :  { %v1866_v41 = vsel %vm535_vm0, %v1308_v19, 0  ;;  %v1079_v51 = vsub.f32 1.0, %v1063_v15  ;;  %v1111_v22 = vmul.f32 %v1095_v18, %v11601_v23  ;;  %v11862_v55 = vsub.f32 %v11785_v12, %v11511_v26 }
 0x21d   :  { %8704 = vmatprep.mubr.f32.mxu1 %v1992_v59  ;;  %v11864_v13 = vand.u32 4294901760, %v1866_v41  ;;  %vm1190_vm10 = vcmp.lt.f32.partialorder %v11553_v58, 1.0  ;;  %10318 = vpow2.f32 %v1284_v43  ;;  %v2001_v33 = vsub.f32 %v11855_v21, %v2000_v7 }
 0x21e   :  { %v1127_v45 = vadd.f32 %v1111_v22, %v1079_v51  ;;  %vm1191_vm11 = vcmp.lt.f32.partialorder %v11601_v23, 1.0  ;;  %v1032_v4 = vmul.f32 %v1016_v9, %v1016_v9  ;;  %v1263_v14 = vmul.f32 %v11654_v49, %v11616_v1 }
 0x21f   :  { %v11874_v26 = vsub.f32 %v1866_v41, %v11864_v13  ;;  %v1159_v28 = vmul.f32 %v1143_v39, %v1015_v50  ;;  %v1017_v40 = vmul.f32 %v11641_v16, %v11641_v16  ;;  %v1264_v58 = vmul.f32 %v11692_v36, %v11664_v54 }
 0x220   :  { %v10317_v32 = vpop.eup %10316  ;;  %v2002_v25 = vand.u32 4294901760, %v2001_v33  ;;  %v1206_v2 = vsel %vm1190_vm10, %v1174_v5, 0.0  ;;  %v1048_v63 = vmul.f32 %v1032_v4, %v1016_v9  ;;  %v1286_v19 = vmul.f32 1.442695, %v1263_v14 }
 0x221   :  { %v2010_v15 = vand.u32 4294901760, %v11874_v26  ;;  %v1309_v18 = vmul.f32 %v10317_v32, %v1206_v2  ;;  %v1175_v59 = vsub.f32 %v1127_v45, %v1159_v28  ;;  %v1033_v1 = vmul.f32 %v1017_v40, %v1017_v40 }
 0x222   :  { %8705 = vmatmul.mubr.f32.gmra.mrb[2].mxu1 %v2002_v25  ;;  %v1064_v49 = vmul.f32 28.0, %v1048_v63  ;;  %v1096_v43 = vmul.f32 48.0, %v1048_v63  ;;  %v1144_v50 = vmul.f32 21.0, %v1048_v63  ;;  %v1288_v39 = vmul.f32 1.442695, %v1264_v58 }
 0x223   :  { %v2011_v41 = vsub.f32 %v11874_v26, %v2010_v15  ;;  %v1869_v54 = vsel %vm535_vm0, %v1309_v18, 0  ;;  %10320 = vpow2.f32 %v1286_v19  ;;  %v1049_v36 = vmul.f32 %v1033_v1, %v1017_v40 }
 0x224   :  { %v11885_v5 = vand.u32 4294901760, %v1869_v54  ;;  %v1080_v51 = vsub.f32 1.0, %v1064_v49  ;;  %v1112_v22 = vmul.f32 %v1096_v43, %v11582_v31  ;;  %vm1192_vm12 = vcmp.lt.f32.partialorder %v11582_v31, 1.0 }
 0x225   :  { %v2012_v33 = vand.u32 4294901760, %v2011_v41  ;;  %v1065_v45 = vmul.f32 28.0, %v1049_v36  ;;  %v1097_v4 = vmul.f32 48.0, %v1049_v36  ;;  %v1145_v14 = vmul.f32 21.0, %v1049_v36 }
 0x226   :  { %v11890_v28 = vsub.f32 %v1869_v54, %v11885_v5  ;;  %v1128_v58 = vadd.f32 %v1112_v22, %v1080_v51  ;;  %10322 = vpow2.f32 %v1288_v39  ;;  %v1018_v32 = vmul.f32 %v11628_v27, %v11628_v27 }
 0x227   :  { %v10319_v25 = vpop.eup %10318  ;;  %8707 = vmatprep.mubr.f32.mxu1 %v2012_v33  ;;  %v1207_v2 = vsel %vm1191_vm11, %v1175_v59, 0.0  ;;  %v1160_v63 = vmul.f32 %v1144_v50, %v1016_v9  ;;  %v1081_v19 = vsub.f32 1.0, %v1065_v45  ;;  %v1113_v18 = vmul.f32 %v1097_v4, %v11641_v16 }
 0x228   :  { %v2020_v1 = vand.u32 4294901760, %v11890_v28  ;;  %v1310_v49 = vmul.f32 %v10319_v25, %v1207_v2  ;;  %v1161_v43 = vmul.f32 %v1145_v14, %v1017_v40  ;;  %v1034_v41 = vmul.f32 %v1018_v32, %v1018_v32 }
 0x229   :  { %v1176_v54 = vsub.f32 %v1128_v58, %v1160_v63  ;;  %v1129_v36 = vadd.f32 %v1113_v18, %v1081_v19  ;;  %v1265_v39 = vmul.f32 %v11676_v52, %v11646_v29  ;;  %v1019_v51 = vmul.f32 %v11707_v56, %v11707_v56 }
 0x22a   :  { %v2021_v23 = vsub.f32 %v11890_v28, %v2020_v1  ;;  %v1872_v9 = vsel %vm535_vm0, %v1310_v49, 0  ;;  %vm1193_vm13 = vcmp.lt.f32.partialorder %v11641_v16, 1.0  ;;  %v1050_v59 = vmul.f32 %v1034_v41, %v1018_v32 }
 0x22b   :  { %v11907_v50 = vand.u32 4294901760, %v1872_v9  ;;  %v1177_v40 = vsub.f32 %v1129_v36, %v1161_v43  ;;  %v1290_v22 = vmul.f32 1.442695, %v1265_v39  ;;  %v1035_v33 = vmul.f32 %v1019_v51, %v1019_v51 }
 0x22c   :  { %v2022_v45 = vand.u32 4294901760, %v2021_v23  ;;  %v1066_v4 = vmul.f32 28.0, %v1050_v59  ;;  %v1098_v52 = vmul.f32 48.0, %v1050_v59  ;;  %v1146_v29 = vmul.f32 21.0, %v1050_v59 }
 0x22d   :  { %v10321_v14 = vpop.eup %10320  ;;  %v11910_v58 = vsub.f32 %v1872_v9, %v11907_v50  ;;  %v1208_v25 = vsel %vm1192_vm12, %v1176_v54, 0.0  ;;  %10324 = vpow2.f32 %v1290_v22  ;;  %v1051_v2 = vmul.f32 %v1035_v33, %v1019_v51 }
 0x22e   :  { %8708 = vmatmul.mubr.f32.gmra.mrb[4].mxu1 %v2022_v45  ;;  %v1311_v63 = vmul.f32 %v10321_v14, %v1208_v25  ;;  %v1209_v19 = vsel %vm1193_vm13, %v1177_v40, 0.0  ;;  %v1082_v18 = vsub.f32 1.0, %v1066_v4  ;;  %v1114_v49 = vmul.f32 %v1098_v52, %v11628_v27 }
 0x22f   :  { %v2030_v43 = vand.u32 4294901760, %v11910_v58  ;;  %v1162_v41 = vmul.f32 %v1146_v29, %v1018_v32  ;;  %v1067_v36 = vmul.f32 28.0, %v1051_v2  ;;  %v1099_v39 = vmul.f32 48.0, %v1051_v2 }
 0x230   :  { %v10323_v23 = vpop.eup %10322  ;;  %v1875_v9 = vsel %vm535_vm0, %v1311_v63, 0  ;;  %v1130_v31 = vadd.f32 %v1114_v49, %v1082_v18  ;;  %v1266_v54 = vmul.f32 %v11762_v17, %v11727_v62  ;;  %v1020_v59 = vmul.f32 %v11694_v47, %v11694_v47 }
 0x231   :  { %v2031_v16 = vsub.f32 %v11910_v58, %v2030_v43  ;;  %v11926_v40 = vand.u32 4294901760, %v1875_v9  ;;  %v1312_v22 = vmul.f32 %v10323_v23, %v1209_v19  ;;  %v1083_v32 = vsub.f32 1.0, %v1067_v36 }
 0x232   :  { %v1178_v33 = vsub.f32 %v1130_v31, %v1162_v41  ;;  %v1115_v45 = vmul.f32 %v1099_v39, %v11707_v56  ;;  %v1147_v4 = vmul.f32 21.0, %v1051_v2  ;;  %v1292_v52 = vmul.f32 1.442695, %v1266_v54 }
 0x233   :  { %v2032_v29 = vand.u32 4294901760, %v2031_v16  ;;  %v11930_v14 = vsub.f32 %v1875_v9, %v11926_v40  ;;  %v1878_v62 = vsel %vm535_vm0, %v1312_v22, 0  ;;  %v1036_v17 = vmul.f32 %v1020_v59, %v1020_v59 }
 0x234   :  { %v11934_v25 = vmul.f32 -112.5, %v11862_v55  ;;  %v11936_v63 = vand.u32 4294901760, %v1878_v62  ;;  %v1131_v18 = vadd.f32 %v1115_v45, %v1083_v32  ;;  %10326 = vpow2.f32 %v1292_v52 }
 0x235   :  { %8710 = vmatprep.mubr.f32.mxu1 %v2032_v29  ;;  %v2040_v19 = vand.u32 4294901760, %v11930_v14  ;;  %vm1194_vm14 = vcmp.lt.f32.partialorder %v11628_v27, 1.0  ;;  %v1052_v2 = vmul.f32 %v1036_v17, %v1020_v59  ;;  %v1267_v49 = vmul.f32 %v11759_v37, %v11714_v35 }
 0x236   :  { %v11943_v41 = vsub.f32 %v1878_v62, %v11936_v63  ;;  %v1163_v36 = vmul.f32 %v1147_v4, %v1019_v51  ;;  %vm1195_vm15 = vcmp.lt.f32.partialorder %v11707_v56, 1.0  ;;  %v1021_v39 = vmul.f32 %v11742_v46, %v11742_v46 }
 0x237   :  { %v10325_v23 = vpop.eup %10324  ;;  %v2041_v9 = vsub.f32 %v11930_v14, %v2040_v19  ;;  %v1210_v31 = vsel %vm1194_vm14, %v1178_v33, 0.0  ;;  %v1068_v27 = vmul.f32 28.0, %v1052_v2  ;;  %v1100_v54 = vmul.f32 48.0, %v1052_v2 }
 0x238   :  { %v2050_v16 = vand.u32 4294901760, %v11943_v41  ;;  %v1313_v35 = vmul.f32 %v10325_v23, %v1210_v31  ;;  %v1179_v37 = vsub.f32 %v1131_v18, %v1163_v36  ;;  %v1294_v22 = vmul.f32 1.442695, %v1267_v49 }
 0x239   :  { %v2042_v32 = vand.u32 4294901760, %v2041_v9  ;;  %v1084_v51 = vsub.f32 1.0, %v1068_v27  ;;  %v1116_v45 = vmul.f32 %v1100_v54, %v11694_v47  ;;  %v1148_v4 = vmul.f32 21.0, %v1052_v2 }
 0x23a   :  { %v2051_v52 = vsub.f32 %v11943_v41, %v2050_v16  ;;  %v1881_v29 = vsel %vm535_vm0, %v1313_v35, 0  ;;  %10328 = vpow2.f32 %v1294_v22  ;;  %v1037_v33 = vmul.f32 %v1021_v39, %v1021_v39 }
 0x23b   :  { %8711 = vmatmul.mubr.f32.gmra.mrb[6].mxu1 %v2042_v32  ;;  %v11957_v62 = vand.u32 4294901760, %v1881_v29  ;;  %vm1196_vm1 = vcmp.lt.f32.partialorder %v11694_v47, 1.0  ;;  %v1268_v17 = vmul.f32 %v11792_v34, %v11768_v0  ;;  %v1022_v18 = vmul.f32 %v11729_v10, %v11729_v10 }
 0x23c   :  { %v2052_v2 = vand.u32 4294901760, %v2051_v52  ;;  %v1132_v49 = vadd.f32 %v1116_v45, %v1084_v51  ;;  %v1053_v36 = vmul.f32 %v1037_v33, %v1021_v39  ;;  %v1269_v23 = vmul.f32 %v11774_v42, %v11749_v57 }
 0x23d   :  { %v11967_v9 = vsub.f32 %v1881_v29, %v11957_v62  ;;  %v1211_v31 = vsel %vm1195_vm15, %v1179_v37, 0.0  ;;  %v1296_v27 = vmul.f32 1.442695, %v1268_v17  ;;  %v1038_v54 = vmul.f32 %v1022_v18, %v1022_v18 }
 0x23e   :  { %v10327_v35 = vpop.eup %10326  ;;  %8713 = vmatprep.mubr.f32.mxu1 %v2052_v2  ;;  %v1164_v0 = vmul.f32 %v1148_v4, %v1020_v59  ;;  %v1069_v34 = vmul.f32 28.0, %v1053_v36  ;;  %v1101_v22 = vmul.f32 48.0, %v1053_v36  ;;  %v1298_v32 = vmul.f32 1.442695, %v1269_v23 }
 0x23f   :  { %v2060_v51 = vand.u32 4294901760, %v11967_v9  ;;  %v1314_v45 = vmul.f32 %v10327_v35, %v1211_v31  ;;  %v1149_v52 = vmul.f32 21.0, %v1053_v36  ;;  %10330 = vpow2.f32 %v1296_v27 }
 0x240   :  { %v1180_v57 = vsub.f32 %v1132_v49, %v1164_v0  ;;  %v1085_v42 = vsub.f32 1.0, %v1069_v34  ;;  %v1117_v29 = vmul.f32 %v1101_v22, %v11742_v46  ;;  %v1054_v33 = vmul.f32 %v1038_v54, %v1022_v18 }
 0x241   :  { %v2061_v56 = vsub.f32 %v11967_v9, %v2060_v51  ;;  %v1884_v37 = vsel %vm535_vm0, %v1314_v45, 0  ;;  %10332 = vpow2.f32 %v1298_v32  ;;  %v1023_v59 = vmul.f32 %v11785_v12, %v11785_v12 }
 0x242   :  { %v11979_v4 = vand.u32 4294901760, %v1884_v37  ;;  %v1133_v17 = vadd.f32 %v1117_v29, %v1085_v42  ;;  %v1070_v2 = vmul.f32 28.0, %v1054_v33  ;;  %v1102_v36 = vmul.f32 48.0, %v1054_v33 }
 0x243   :  { %v2062_v49 = vand.u32 4294901760, %v2061_v56  ;;  %v1165_v23 = vmul.f32 %v1149_v52, %v1021_v39  ;;  %v1150_v31 = vmul.f32 21.0, %v1054_v33  ;;  %v1039_v27 = vmul.f32 %v1023_v59, %v1023_v59 }
 0x244   :  { %v10329_v54 = vpop.eup %10328  ;;  %v11982_v35 = vsub.f32 %v1884_v37, %v11979_v4  ;;  %v1212_v0 = vsel %vm1196_vm1, %v1180_v57, 0.0  ;;  %v1086_v34 = vsub.f32 1.0, %v1070_v2  ;;  %v1118_v22 = vmul.f32 %v1102_v36, %v11729_v10 }
 0x245   :  { %8714 = vmatmul.mubr.f32.gmra.mrb[8].mxu1 %v2062_v49  ;;  %v1315_v32 = vmul.f32 %v10329_v54, %v1212_v0  ;;  %v1181_v45 = vsub.f32 %v1133_v17, %v1165_v23  ;;  %v1055_v42 = vmul.f32 %v1039_v27, %v1023_v59  ;;  %v1270_v29 = vmul.f32 %v11934_v25, %v11862_v55 }
 0x246   :  { %v2070_v39 = vand.u32 4294901760, %v11982_v35  ;;  %v1134_v52 = vadd.f32 %v1118_v22, %v1086_v34  ;;  %v1166_v33 = vmul.f32 %v1150_v31, %v1022_v18  ;;  %v1024_v56 = vmul.f32 %v11751_v20, %v11751_v20 }
 0x247   :  { %v1887_v47 = vsel %vm535_vm0, %v1315_v32, 0  ;;  %vm1197_vm4 = vcmp.lt.f32.partialorder %v11742_v46, 1.0  ;;  %v1071_v57 = vmul.f32 28.0, %v1055_v42  ;;  %v1103_v37 = vmul.f32 48.0, %v1055_v42 }
 0x248   :  { %v2071_v17 = vsub.f32 %v11982_v35, %v2070_v39  ;;  %v11997_v2 = vand.u32 4294901760, %v1887_v47  ;;  %v1182_v55 = vsub.f32 %v1134_v52, %v1166_v33  ;;  %v1300_v25 = vmul.f32 1.442695, %v1270_v29 }
 0x249   :  { %v10331_v36 = vpop.eup %10330  ;;  %v1213_v49 = vsel %vm1197_vm4, %v1181_v45, 0.0  ;;  %v1087_v18 = vsub.f32 1.0, %v1071_v57  ;;  %v1119_v23 = vmul.f32 %v1103_v37, %v11785_v12  ;;  %v1040_v31 = vmul.f32 %v1024_v56, %v1024_v56 }
 0x24a   :  { %v2072_v27 = vand.u32 4294901760, %v2071_v17  ;;  %v12001_v54 = vsub.f32 %v1887_v47, %v11997_v2  ;;  %v1316_v46 = vmul.f32 %v10331_v36, %v1213_v49  ;;  %vm1198_vm5 = vcmp.lt.f32.partialorder %v11729_v10, 1.0 }
 0x24b   :  { %v10333_v0 = vpop.eup %10332  ;;  %v1214_v34 = vsel %vm1198_vm5, %v1182_v55, 0.0  ;;  %v1151_v22 = vmul.f32 21.0, %v1055_v42  ;;  %10334 = vpow2.f32 %v1300_v25  ;;  %v1056_v32 = vmul.f32 %v1040_v31, %v1024_v56 }
 0x24c   :  { %8716 = vmatprep.mubr.f32.mxu1 %v2072_v27  ;;  %v2080_v29 = vand.u32 4294901760, %v12001_v54  ;;  %v1890_v45 = vsel %vm535_vm0, %v1316_v46, 0  ;;  %v1317_v52 = vmul.f32 %v10333_v0, %v1214_v34  ;;  %v1271_v33 = vmul.f32 %v11808_v48, %v11778_v8  ;;  %v14255_v0 = vld [vmem:[#allocation28_spill] sm:$0xff]  ;;  %v14256_v34 = vld [vmem:[#allocation23_spill] sm:$0xff] }
 0x24d   :  { %v12008_v57 = vand.u32 4294901760, %v1890_v45  ;;  %v1135_v47 = vadd.f32 %v1119_v23, %v1087_v18  ;;  %v1072_v37 = vmul.f32 28.0, %v1056_v32  ;;  %v1104_v17 = vmul.f32 48.0, %v1056_v32 }
 0x24e   :  { %v2081_v10 = vsub.f32 %v12001_v54, %v2080_v29  ;;  %v1893_v42 = vsel %vm535_vm0, %v1317_v52, 0  ;;  %v1302_v55 = vmul.f32 1.442695, %v1271_v33  ;;  %v1167_v49 = vmul.f32 %v1151_v22, %v1023_v59 }
 0x24f   :  { %v12015_v25 = vsub.f32 %v1890_v45, %v12008_v57  ;;  %v12017_v36 = vand.u32 4294901760, %v1893_v42  ;;  %v1088_v31 = vsub.f32 1.0, %v1072_v37  ;;  %v1120_v48 = vmul.f32 %v1104_v17, %v11751_v20 }
 0x250   :  { %v2082_v8 = vand.u32 4294901760, %v2081_v10  ;;  %v1152_v18 = vmul.f32 21.0, %v1056_v32  ;;  %10336 = vpow2.f32 %v1302_v55  ;;  %v1183_v46 = vsub.f32 %v1135_v47, %v1167_v49 }
 0x251   :  { %v2090_v23 = vand.u32 4294901760, %v12015_v25  ;;  %v12022_v27 = vsub.f32 %v1893_v42, %v12017_v36  ;;  %v9581_v52 = vpack.c.bf16 %v14256_v34, %v14255_v0  ;;  %v1136_v45 = vadd.f32 %v1120_v48, %v1088_v31 }
 0x252   :  { %8717 = vmatmul.mubr.f32.gmra.mrb[10].mxu1 %v2082_v8  ;;  %vm1199_vm6 = vcmp.lt.f32.partialorder %v11785_v12, 1.0  ;;  %v1168_v33 = vmul.f32 %v1152_v18, %v1024_v56  ;;  %vm1200_vm7 = vcmp.lt.f32.partialorder %v11751_v20, 1.0 }
 0x253   :  { %v2091_v59 = vsub.f32 %v12015_v25, %v2090_v23  ;;  %v2100_v22 = vand.u32 4294901760, %v12022_v27  ;;  %9582 = vmatprep.subr.bf16.mxu1 %v9581_v52  ;;  %v1215_v42 = vsel %vm1199_vm6, %v1183_v46, 0.0 }
 0x254   :  { %v1184_v49 = vsub.f32 %v1136_v45, %v1168_v33 }
 0x255   :  { %v12030_v32 = vpop.f32.mrb[0].mxu0  ;;  %v10335_v17 = vpop.eup %10334  ;;  %v2092_v47 = vand.u32 4294901760, %v2091_v59  ;;  %v2101_v10 = vsub.f32 %v12022_v27, %v2100_v22 }
 0x256   :  { %v8696_v37 = vpop.f32.mrb[1].mxu0  ;;  %v1318_v55 = vmul.f32 %v10335_v17, %v1215_v42  ;;  %v1216_v56 = vsel %vm1200_vm7, %v1184_v49, 0.0  ;;  %v14259_v49 = vand.u32 4294901760, %v14256_v34 }
 0x257   :  { %8719 = vmatprep.mubr.f32.mxu1 %v2092_v47  ;;  %v2102_v31 = vand.u32 4294901760, %v2101_v10 }
 0x258   :  { %v1896_v8 = vsel %vm535_vm0, %v1318_v55, 0  ;;  %v14257_v55 = vld [vmem:[#allocation27_spill] sm:$0xff] }
 0x259   :  { %8720 = vmatmul.mubr.f32.gmra.mrb[12].mxu1 %v2102_v31  ;;  %v12037_v48 = vand.u32 4294901760, %v1896_v8 }
 0x25a   :  { %v10337_v12 = vpop.eup %10336 }
 0x25b   :  { %v12041_v18 = vsub.f32 %v1896_v8, %v12037_v48  ;;  %v1319_v59 = vmul.f32 %v10337_v12, %v1216_v56  ;;  %v10472_v8 = vld [vmem:[#allocation2 + $0x30] sm:$0xff] }
 0x25c   :  { %v3024_v12 = vsel %vm672_vm3, %v10472_v8, 0  ;;  %v10478_v8 = vld [vmem:[#allocation2 + $0x60] sm:$0xff] }
 0x25d   :  { %v2110_v37 = vand.u32 4294901760, %v12041_v18  ;;  %v1899_v46 = vsel %vm535_vm0, %v1319_v59, 0  ;;  %vm4416_vm0 = vcmask 523264  }
 0x25e   :  { %v12045_v45 = vand.u32 4294901760, %v1899_v46 }
 0x25f   :  { %v2111_v33 = vsub.f32 %v12041_v18, %v2110_v37 }
 0x260   :  { %v12051_v17 = vsub.f32 %v1899_v46, %v12045_v45 }
 0x261   :  { %v2112_v20 = vand.u32 4294901760, %v2111_v33  ;;  %v12222_v33 = vand.u32 4294901760, %v3024_v12 }
 0x262   :  { %v2120_v47 = vand.u32 4294901760, %v12051_v17 }
 0x263   :  { %8722 = vmatprep.mubr.f32.mxu1 %v2112_v20  ;;  %v10473_v20 = vld [vmem:[#allocation2 + $0x38] sm:$0xff] }
 0x264   :  { %v2121_v10 = vsub.f32 %v12051_v17, %v2120_v47 }
 0x266   :  { %v2122_v42 = vand.u32 4294901760, %v2121_v10 }
 0x268   :  { %8723 = vmatmul.mubr.f32.gmra.mrb[14].mxu1 %v2122_v42 }
 0x269   :  { %8729 = vmatprep.mubr.f32.mxu1 %v11802_v6 }
 0x26c   :  { %8730 = vmatmul.mubr.f32.vlgmr.msra.gmra.mrb[0].mxu1 %v11804_v30 }
 0x26d   :  { %9584 = vmatpush3.bf16.msra.mxu1 %v9581_v52  ;;  %8732 = vmatprep.mubr.f32.mxu1 %v11833_v11  ;;  %v14258_v52 = vand.u32 4294901760, %v14255_v0 }
 0x26e   :  { %9586 = vmatprep.subr.bf16.mxu1 %v14257_v55 }
 0x26f   :  { %v9589_v31 = vpack.c.bf16 %v14259_v49, %v14258_v52 }
 0x270   :  { %8733 = vmatmul.mubr.f32.gmra.mrb[2].mxu1 %v11845_v60 }
 0x271   :  { %8735 = vmatprep.mubr.f32.mxu1 %v11864_v13 }
 0x274   :  { %8736 = vmatmul.mubr.f32.gmra.mrb[4].mxu1 %v11885_v5 }
 0x275   :  { %8738 = vmatprep.mubr.f32.mxu1 %v11907_v50 }
 0x278   :  { %8739 = vmatmul.mubr.f32.gmra.mrb[6].mxu1 %v11926_v40 }
 0x279   :  { %8741 = vmatprep.mubr.f32.mxu1 %v11936_v63 }
 0x27c   :  { %8742 = vmatmul.mubr.f32.gmra.mrb[8].mxu1 %v11957_v62 }
 0x27d   :  { %8744 = vmatprep.mubr.f32.mxu1 %v11979_v4 }
 0x280   :  { %8745 = vmatmul.mubr.f32.gmra.mrb[10].mxu1 %v11997_v2 }
 0x281   :  { %8747 = vmatprep.mubr.f32.mxu1 %v12008_v57 }
 0x284   :  { %8748 = vmatmul.mubr.f32.gmra.mrb[12].mxu1 %v12017_v36 }
 0x285   :  { %8750 = vmatprep.mubr.f32.mxu1 %v12037_v48 }
 0x288   :  { %8751 = vmatmul.mubr.f32.gmra.mrb[14].mxu1 %v12045_v45 }
 0x289   :  { %8757 = vmatprep.mubr.f32.mxu1 %v11811_v38  ;;  %v1847_v38 = vld [vmem:[%s13992_s5] sm:$0xff] }
 0x28c   :  { %8758 = vmatmul.mubr.f32.vlgmr.msra.gmra.mrb[0].mxu1 %v11814_v3  ;;  %v1848_v3 = vld [vmem:[%s13992_s5 + $0x8] sm:$0xff] }
 0x28d   :  { %9588 = vmatpush3.bf16.msra.mxu1 %v14257_v55  ;;  %8760 = vmatprep.mubr.f32.mxu1 %v11838_v44 }
 0x28e   :  { %9590 = vmatprep.subr.bf16.mxu1 %v9589_v31 }
 0x290   :  { %8761 = vmatmul.mubr.f32.gmra.mrb[2].mxu1 %v11855_v21 }
 0x291   :  { %8763 = vmatprep.mubr.f32.mxu1 %v11874_v26 }
 0x294   :  { %8764 = vmatmul.mubr.f32.gmra.mrb[4].mxu1 %v11890_v28  ;;  %v1850_v28 = vld [vmem:[%s13992_s5 + $0x18] sm:$0xff] }
 0x295   :  { %8766 = vmatprep.mubr.f32.mxu1 %v11910_v58  ;;  %v3063_v58 = vand.u32 4294901760, %v1850_v28 }
 0x297   :  { %v12201_v0 = vsub.f32 %v1850_v28, %v3063_v58 }
 0x298   :  { %8767 = vmatmul.mubr.f32.gmra.mrb[6].mxu1 %v11930_v14 }
 0x299   :  { %8769 = vmatprep.mubr.f32.mxu1 %v11943_v41 }
 0x29c   :  { %8770 = vmatmul.mubr.f32.gmra.mrb[8].mxu1 %v11967_v9 }
 0x29d   :  { %8772 = vmatprep.mubr.f32.mxu1 %v11982_v35 }
 0x2a0   :  { %8773 = vmatmul.mubr.f32.gmra.mrb[10].mxu1 %v12001_v54 }
 0x2a1   :  { %8775 = vmatprep.mubr.f32.mxu1 %v12015_v25 }
 0x2a4   :  { %8776 = vmatmul.mubr.f32.gmra.mrb[12].mxu1 %v12022_v27 }
 0x2a5   :  { %8778 = vmatprep.mubr.f32.mxu1 %v12041_v18 }
 0x2a8   :  { %8779 = vmatmul.mubr.f32.gmra.mrb[14].mxu1 %v12051_v17 }
 0x2a9   :  { %8785 = vmatprep.mubr.f32.mxu1 %v1970_v53  ;;  %v3054_v53 = vand.u32 4294901760, %v1847_v38 }
 0x2ac   :  { %8786 = vmatmul.mubr.f32.vlgmr.msra.gmra.mrb[0].mxu1 %v1980_v24  ;;  %v3057_v24 = vand.u32 4294901760, %v1848_v3 }
 0x2ad   :  { %9592 = vmatpush3.bf16.msra.mxu1 %v9589_v31  ;;  %8788 = vmatprep.mubr.f32.mxu1 %v1990_v61  ;;  %v12145_v61 = vsub.f32 %v1847_v38, %v3054_v53  ;;  %v12249_v38 = vsub.f32 %v3024_v12, %v12222_v33  ;;  %v3042_v12 = vsel %vm672_vm3, %v10478_v8, 0 }
 0x2ae   :  { %9594 = vmatprep.subr.bf16.mxu1 %v14257_v55  ;;  %v12131_v44 = vpack.c.bf16 %v3057_v24, %v3054_v53  ;;  %v12147_v21 = vsub.f32 %v1848_v3, %v3057_v24 }
 0x2b0   :  { %8789 = vmatmul.mubr.f32.gmra.mrb[2].mxu1 %v2000_v7  ;;  %v3285_v7 = vand.u32 4294901760, %v12145_v61  ;;  %v3292_v26 = vand.u32 4294901760, %v12147_v21 }
 0x2b1   :  { %8791 = vmatprep.mubr.f32.mxu1 %v2010_v15  ;;  %v1849_v15 = vld [vmem:[%s13992_s5 + $0x10] sm:$0xff]  ;;  %s10709_s5 = smov 45  }
 0x2b2   :  { %v3293_v14 = vsub.f32 %v12147_v21, %v3292_v26 }
 0x2b4   :  { %8792 = vmatmul.mubr.f32.gmra.mrb[4].mxu1 %v2020_v1  ;;  %v3060_v1 = vand.u32 4294901760, %v1849_v15 }
 0x2b5   :  { %8794 = vmatprep.mubr.f32.mxu1 %v2030_v43  ;;  %v3286_v43 = vsub.f32 %v12145_v61, %v3285_v7 }
 0x2b6   :  { %v12199_v27 = vsub.f32 %v1849_v15, %v3060_v1 }
 0x2b7   :  { %v3287_v41 = vand.u32 4294901760, %v3286_v43  ;;  %v10475_v43 = vld [vmem:[#allocation2 + $0x48] sm:$0xff] }
 0x2b8   :  { %8795 = vmatmul.mubr.f32.gmra.mrb[6].mxu1 %v2040_v19  ;;  %v12169_v19 = vpack.c.bf16 %v3063_v58, %v3060_v1 }
 0x2b9   :  { %8797 = vmatprep.mubr.f32.mxu1 %v2050_v16  ;;  %v3294_v16 = vand.u32 4294901760, %v3293_v14 }
 0x2bb   :  { %v12175_v9 = vpack.c.bf16 %v3294_v16, %v3287_v41  ;;  %v10476_v16 = vld [vmem:[#allocation2 + $0x50] sm:$0xff] }
 0x2bc   :  { %8798 = vmatmul.mubr.f32.gmra.mrb[8].mxu1 %v2060_v51 }
 0x2bd   :  { %8800 = vmatprep.mubr.f32.mxu1 %v2070_v39  ;;  %v10468_v39 = vld [vmem:[#allocation2 + $0x10] sm:$0xff] }
 0x2c0   :  { %8801 = vmatmul.mubr.f32.gmra.mrb[10].mxu1 %v2080_v29  ;;  %v10469_v29 = vld [vmem:[#allocation2 + $0x18] sm:$0xff] }
 0x2c1   :  { %8803 = vmatprep.mubr.f32.mxu1 %v2090_v23  ;;  %v3015_v25 = vsel %vm672_vm3, %v10469_v29, 0 }
 0x2c4   :  { %8804 = vmatmul.mubr.f32.gmra.mrb[12].mxu1 %v2100_v22 }
 0x2c5   :  { %8806 = vmatprep.mubr.f32.mxu1 %v2110_v37  ;;  %v3299_v37 = vand.u32 4294901760, %v12199_v27 }
 0x2c7   :  { %v3300_v49 = vsub.f32 %v12199_v27, %v3299_v37 }
 0x2c8   :  { %8807 = vmatmul.mubr.f32.gmra.mrb[14].mxu1 %v2120_v47  ;;  %v3027_v47 = vsel %vm672_vm3, %v10473_v20, 0 }
 0x2c9   :  { %8813 = vmatprep.mubr.f32.mxu1 %v11802_v6  ;;  %v12251_v3 = vand.u32 4294901760, %v3027_v47  ;;  %v3301_v14 = vand.u32 4294901760, %v3300_v49 }
 0x2cc   :  { %8814 = vmatmul.mubr.f32.vlgmr.msra.gmra.mrb[0].mxu1 %v11804_v30 }
 0x2cd   :  { %9596 = vmatpush3.bf16.msra.mxu1 %v14257_v55  ;;  %8816 = vmatprep.mubr.f32.mxu1 %v11833_v11 }
 0x2ce   :  { %9598 = vmatprep.subr.bf16.mxu1 %v12131_v44 }
 0x2d0   :  { %8817 = vmatmul.mubr.f32.gmra.mrb[2].mxu1 %v11845_v60 }
 0x2d1   :  { %8819 = vmatprep.mubr.f32.mxu1 %v11864_v13 }
 0x2d4   :  { %8820 = vmatmul.mubr.f32.gmra.mrb[4].mxu1 %v11885_v5 }
 0x2d5   :  { %8822 = vmatprep.mubr.f32.mxu1 %v11907_v50 }
 0x2d8   :  { %8823 = vmatmul.mubr.f32.gmra.mrb[6].mxu1 %v11926_v40 }
 0x2d9   :  { %8825 = vmatprep.mubr.f32.mxu1 %v11936_v63 }
 0x2dc   :  { %8826 = vmatmul.mubr.f32.gmra.mrb[8].mxu1 %v11957_v62 }
 0x2dd   :  { %8828 = vmatprep.mubr.f32.mxu1 %v11979_v4 }
 0x2e0   :  { %8829 = vmatmul.mubr.f32.gmra.mrb[10].mxu1 %v11997_v2 }
 0x2e1   :  { %8831 = vmatprep.mubr.f32.mxu1 %v12008_v57 }
 0x2e4   :  { %8832 = vmatmul.mubr.f32.gmra.mrb[12].mxu1 %v12017_v36 }
 0x2e5   :  { %8834 = vmatprep.mubr.f32.mxu1 %v12037_v48 }
 0x2e8   :  { %8835 = vmatmul.mubr.f32.gmra.mrb[14].mxu1 %v12045_v45 }
 0x2e9   :  { %8841 = vmatprep.mubr.f32.mxu1 %v11802_v6  ;;  %v10466_v6 = vld [vmem:[#allocation2] sm:$0xff] }
 0x2ea   :  { %v3006_v51 = vsel %vm672_vm3, %v10466_v6, 0  ;;  %v3036_v6 = vsel %vm672_vm3, %v10476_v16, 0 }
 0x2eb   :  { %v12185_v35 = vand.u32 4294901760, %v3006_v51 }
 0x2ec   :  { %8842 = vmatmul.mubr.f32.vlgmr.msra.gmra.mrb[0].mxu1 %v11804_v30  ;;  %v10467_v30 = vld [vmem:[#allocation2 + $0x8] sm:$0xff] }
 0x2ed   :  { %9600 = vmatpush3.bf16.msra.mxu1 %v12131_v44  ;;  %8844 = vmatprep.mubr.f32.mxu1 %v11833_v11  ;;  %v3009_v11 = vsel %vm672_vm3, %v10467_v30, 0  ;;  %v12193_v54 = vsub.f32 %v3006_v51, %v12185_v35  ;;  %v14116_v30 = vand.u32 4294901760, %v12249_v38 }
 0x2ee   :  { %9602 = vmatprep.subr.bf16.mxu1 %v12169_v19 }
 0x2ef   :  { %v3124_v56 = vand.u32 4294901760, %v12193_v54 }
 0x2f0   :  { %8845 = vmatmul.mubr.f32.gmra.mrb[2].mxu1 %v11845_v60  ;;  %v3012_v60 = vsel %vm672_vm3, %v10468_v39, 0 }
 0x2f1   :  { %8847 = vmatprep.mubr.f32.mxu1 %v11864_v13  ;;  %9604 = vmatpush3.bf16.msra.mxu1 %v12169_v19  ;;  %v12188_v13 = vand.u32 4294901760, %v3009_v11  ;;  %v3125_v10 = vsub.f32 %v12193_v54, %v3124_v56 }
 0x2f2   :  { %9606 = vmatprep.subr.bf16.mxu1 %v12175_v9 }
 0x2f3   :  { %v12204_v34 = vsub.f32 %v3009_v11, %v12188_v13  ;;  %v3126_v28 = vand.u32 4294901760, %v3125_v10 }
 0x2f4   :  { %8848 = vmatmul.mubr.f32.gmra.mrb[4].mxu1 %v11885_v5  ;;  %v12195_v5 = vand.u32 4294901760, %v3012_v60 }
 0x2f5   :  { %8850 = vmatprep.mubr.f32.mxu1 %v11907_v50  ;;  %v10470_v50 = vld [vmem:[#allocation2 + $0x20] sm:$0xff]  ;;  %v3134_v17 = vand.u32 4294901760, %v12204_v34 }
 0x2f6   :  { %v3018_v23 = vsel %vm672_vm3, %v10470_v50, 0  ;;  %v12214_v18 = vsub.f32 %v3012_v60, %v12195_v5 }
 0x2f7   :  { %v12216_v59 = vand.u32 4294901760, %v3018_v23  ;;  %v3135_v53 = vsub.f32 %v12204_v34, %v3134_v17 }
 0x2f8   :  { %8851 = vmatmul.mubr.f32.gmra.mrb[6].mxu1 %v11926_v40  ;;  %v12207_v40 = vand.u32 4294901760, %v3015_v25  ;;  %v3144_v42 = vand.u32 4294901760, %v12214_v18 }
 0x2f9   :  { %8853 = vmatprep.mubr.f32.mxu1 %v11936_v63  ;;  %v10471_v63 = vld [vmem:[#allocation2 + $0x28] sm:$0xff]  ;;  %v12236_v55 = vsub.f32 %v3018_v23, %v12216_v59  ;;  %v3136_v11 = vand.u32 4294901760, %v3135_v53  ;;  %v12284_v23 = vand.u32 4294901760, %v3036_v6 }
 0x2fa   :  { %v3021_v22 = vsel %vm672_vm3, %v10471_v63, 0  ;;  %v3145_v1 = vsub.f32 %v12214_v18, %v3144_v42  ;;  %v10477_v63 = vld [vmem:[#allocation2 + $0x58] sm:$0xff] }
 0x2fb   :  { %v12220_v46 = vand.u32 4294901760, %v3021_v22  ;;  %v3164_v58 = vand.u32 4294901760, %v12236_v55 }
 0x2fc   :  { %8854 = vmatmul.mubr.f32.gmra.mrb[8].mxu1 %v11957_v62  ;;  %v3306_v62 = vand.u32 4294901760, %v12201_v0 }
 0x2fd   :  { %8856 = vmatprep.mubr.f32.mxu1 %v11979_v4  ;;  %v12227_v4 = vsub.f32 %v3015_v25, %v12207_v40  ;;  %v12246_v31 = vsub.f32 %v3021_v22, %v12220_v46  ;;  %v3146_v25 = vand.u32 4294901760, %v3145_v1  ;;  %v3165_v50 = vsub.f32 %v12236_v55, %v3164_v58 }
 0x2fe   :  { %v12305_v1 = vand.u32 4294901760, %v3042_v12 }
 0x2ff   :  { %v3154_v24 = vand.u32 4294901760, %v12227_v4  ;;  %v3174_v51 = vand.u32 4294901760, %v12246_v31  ;;  %v3166_v53 = vand.u32 4294901760, %v3165_v50 }
 0x300   :  { %8857 = vmatmul.mubr.f32.gmra.mrb[10].mxu1 %v11997_v2  ;;  %v10474_v2 = vld [vmem:[#allocation2 + $0x40] sm:$0xff] }
 0x301   :  { %8859 = vmatprep.mubr.f32.mxu1 %v12008_v57  ;;  %v3030_v52 = vsel %vm672_vm3, %v10474_v2, 0  ;;  %v3307_v57 = vsub.f32 %v12201_v0, %v3306_v62  ;;  %v3155_v39 = vsub.f32 %v12227_v4, %v3154_v24  ;;  %v3175_v20 = vsub.f32 %v12246_v31, %v3174_v51 }
 0x302   :  { %v12258_v15 = vand.u32 4294901760, %v3030_v52 }
 0x303   :  { %v3308_v41 = vand.u32 4294901760, %v3307_v57  ;;  %v3156_v2 = vand.u32 4294901760, %v3155_v39 }
 0x304   :  { %8860 = vmatmul.mubr.f32.gmra.mrb[12].mxu1 %v12017_v36  ;;  %v3033_v36 = vsel %vm672_vm3, %v10475_v43, 0  ;;  %v12277_v60 = vsub.f32 %v3030_v52, %v12258_v15  ;;  %v10479_v43 = vld [vmem:[#allocation2 + $0x68] sm:$0xff] }
 0x305   :  { %8862 = vmatprep.mubr.f32.mxu1 %v12037_v48  ;;  %v12270_v48 = vsub.f32 %v3027_v47, %v12251_v3  ;;  %v12279_v29 = vand.u32 4294901760, %v3033_v36  ;;  %v9609_v22 = vpack.c.bf16 %v3308_v41, %v3301_v14  ;;  %v3185_v47 = vsub.f32 %v12249_v38, %v14116_v30  ;;  %v10480_v41 = vld [vmem:[#allocation2 + $0x70] sm:$0xff] }
 0x306   :  { %v14111_v52 = vand.u32 4294901760, %v12277_v60  ;;  %v3045_v14 = vsel %vm672_vm3, %v10479_v43, 0  ;;  %v3048_v16 = vsel %vm672_vm3, %v10480_v41, 0 }
 0x307   :  { %v14113_v10 = vand.u32 4294901760, %v12270_v48  ;;  %v12297_v49 = vsub.f32 %v3033_v36, %v12279_v29  ;;  %v9613_v36 = vpack.c.bf16 %v12147_v21, %v12145_v61  ;;  %v3186_v39 = vand.u32 4294901760, %v3185_v47 }
 0x308   :  { %8863 = vmatmul.mubr.f32.gmra.mrb[14].mxu1 %v12045_v45  ;;  %v3039_v45 = vsel %vm672_vm3, %v10477_v63, 0  ;;  %v12321_v63 = vand.u32 4294901760, %v3045_v14  ;;  %v12327_v47 = vand.u32 4294901760, %v3048_v16  ;;  %v9633_v61 = vpack.c.bf16 %v3306_v62, %v3299_v37 }
 0x309   :  { %8873 = vmatprep.mubr.f32.mxu1 %v3126_v28  ;;  %v12299_v57 = vand.u32 4294901760, %v3039_v45  ;;  %v12303_v28 = vsub.f32 %v3036_v6, %v12284_v23  ;;  %v3205_v6 = vsub.f32 %v12277_v60, %v14111_v52  ;;  %v14260_v21 = vand.u32 4294901760, %v12249_v38 }
 0x30b   :  { %v12319_v50 = vsub.f32 %v3039_v45, %v12299_v57  ;;  %v14114_v8 = vand.u32 4294901760, %v12303_v28 }
 0x30c   :  { %8874 = vmatmul.mubr.f32.vlgmr.msra.gmra.mrb[0].mxu1 %v3136_v11  ;;  %v3176_v11 = vand.u32 4294901760, %v3175_v20  ;;  %v12325_v20 = vsub.f32 %v3042_v12, %v12305_v1  ;;  %v3206_v12 = vand.u32 4294901760, %v3205_v6 }
 0x30d   :  { %9608 = vmatpush3.bf16.msra.mxu1 %v12175_v9  ;;  %8876 = vmatprep.mubr.f32.mxu1 %v3146_v25  ;;  %v3195_v9 = vsub.f32 %v12270_v48, %v14113_v10  ;;  %v14112_v25 = vand.u32 4294901760, %v12297_v49 }
 0x30e   :  { %9610 = vmatprep.subr.bf16.mxu1 %v9609_v22 }
 0x30f   :  { %v3196_v41 = vand.u32 4294901760, %v3195_v9  ;;  %v3215_v45 = vsub.f32 %v12297_v49, %v14112_v25  ;;  %v3244_v9 = vand.u32 4294901760, %v12325_v20 }
 0x310   :  { %8877 = vmatmul.mubr.f32.gmra.mrb[2].mxu1 %v3156_v2  ;;  %v10481_v2 = vld [vmem:[#allocation2 + $0x78] sm:$0xff] }
 0x311   :  { %8879 = vmatprep.mubr.f32.mxu1 %v3166_v53  ;;  %9612 = vmatpush3.bf16.msra.mxu1 %v9609_v22  ;;  %v3051_v43 = vsel %vm672_vm3, %v10481_v2, 0  ;;  %v14115_v53 = vand.u32 4294901760, %v12319_v50  ;;  %v12335_v22 = vsub.f32 %v3045_v14, %v12321_v63  ;;  %v3225_v2 = vsub.f32 %v12303_v28, %v14114_v8 }
 0x312   :  { %9614 = vmatprep.subr.bf16.mxu1 %v9613_v36  ;;  %v12337_v52 = vand.u32 4294901760, %v3051_v43  ;;  %v3216_v25 = vand.u32 4294901760, %v3215_v45  ;;  %v3245_v8 = vsub.f32 %v12325_v20, %v3244_v9 }
 0x313   :  { %v3235_v14 = vsub.f32 %v12319_v50, %v14115_v53  ;;  %v3254_v10 = vand.u32 4294901760, %v12335_v22  ;;  %v3226_v6 = vand.u32 4294901760, %v3225_v2 }
 0x314   :  { %8880 = vmatmul.mubr.f32.gmra.mrb[4].mxu1 %v3176_v11  ;;  %v12344_v11 = vsub.f32 %v3048_v16, %v12327_v47  ;;  %v3246_v30 = vand.u32 4294901760, %v3245_v8  ;;  %v9617_v8 = vpack.c.bf16 %v12201_v0, %v12199_v27  ;;  %v14264_v27 = vand.u32 4294901760, %v12303_v28 }
 0x315   :  { %8882 = vmatprep.mubr.f32.mxu1 %v3186_v39  ;;  %v12351_v39 = vsub.f32 %v3051_v43, %v12337_v52  ;;  %v3255_v45 = vsub.f32 %v12335_v22, %v3254_v10  ;;  %v14265_v0 = vand.u32 4294901760, %v12319_v50 }
 0x316   :  { %v3264_v16 = vand.u32 4294901760, %v12344_v11 }
 0x317   :  { %v3274_v53 = vand.u32 4294901760, %v12351_v39 }
 0x318   :  { %8883 = vmatmul.mubr.f32.gmra.mrb[6].mxu1 %v3196_v41  ;;  %v3236_v41 = vand.u32 4294901760, %v3235_v14  ;;  %v3265_v43 = vsub.f32 %v12344_v11, %v3264_v16 }
 0x319   :  { %8885 = vmatprep.mubr.f32.mxu1 %v3206_v12  ;;  %v3256_v12 = vand.u32 4294901760, %v3255_v45  ;;  %v3275_v2 = vsub.f32 %v12351_v39, %v3274_v53 }
 0x31b   :  { %v3276_v14 = vand.u32 4294901760, %v3275_v2 }
 0x31c   :  { %8886 = vmatmul.mubr.f32.gmra.mrb[8].mxu1 %v3216_v25  ;;  %v3266_v25 = vand.u32 4294901760, %v3265_v43 }
 0x31d   :  { %8888 = vmatprep.mubr.f32.mxu1 %v3226_v6 }
 0x320   :  { %8889 = vmatmul.mubr.f32.gmra.mrb[10].mxu1 %v3236_v41 }
 0x321   :  { %8891 = vmatprep.mubr.f32.mxu1 %v3246_v30  ;;  %v9629_v30 = vpack.c.bf16 %v3292_v26, %v3285_v7  ;;  %v14261_v7 = vand.u32 4294901760, %v12270_v48  ;;  %v14262_v26 = vand.u32 4294901760, %v12277_v60 }
 0x324   :  { %8892 = vmatmul.mubr.f32.gmra.mrb[12].mxu1 %v3256_v12 }
 0x325   :  { %8894 = vmatprep.mubr.f32.mxu1 %v3266_v25 }
 0x328   :  { %8895 = vmatmul.mubr.f32.gmra.mrb[14].mxu1 %v3276_v14 }
 0x329   :  { %8905 = vmatprep.mubr.f32.mxu1 %v12185_v35 }
 0x32c   :  { %8906 = vmatmul.mubr.f32.vlgmr.msra.gmra.mrb[0].mxu1 %v12188_v13 }
 0x32d   :  { %9616 = vmatpush3.bf16.msra.mxu1 %v9613_v36  ;;  %8908 = vmatprep.mubr.f32.mxu1 %v12195_v5 }
 0x32e   :  { %9618 = vmatprep.subr.bf16.mxu1 %v9617_v8 }
 0x330   :  { %8909 = vmatmul.mubr.f32.gmra.mrb[2].mxu1 %v12207_v40 }
 0x331   :  { %8911 = vmatprep.mubr.f32.mxu1 %v12216_v59  ;;  %9620 = vmatpush3.bf16.msra.mxu1 %v9617_v8 }
 0x332   :  { %9622 = vmatprep.subr.bf16.mxu1 %v12131_v44 }
 0x334   :  { %8912 = vmatmul.mubr.f32.gmra.mrb[4].mxu1 %v12220_v46 }
 0x335   :  { %8914 = vmatprep.mubr.f32.mxu1 %v12222_v33 }
 0x338   :  { %8915 = vmatmul.mubr.f32.gmra.mrb[6].mxu1 %v12251_v3 }
 0x339   :  { %8917 = vmatprep.mubr.f32.mxu1 %v12258_v15 }
 0x33c   :  { %8918 = vmatmul.mubr.f32.gmra.mrb[8].mxu1 %v12279_v29 }
 0x33d   :  { %8920 = vmatprep.mubr.f32.mxu1 %v12284_v23 }
 0x340   :  { %8921 = vmatmul.mubr.f32.gmra.mrb[10].mxu1 %v12299_v57 }
 0x341   :  { %8923 = vmatprep.mubr.f32.mxu1 %v12305_v1 }
 0x344   :  { %8924 = vmatmul.mubr.f32.gmra.mrb[12].mxu1 %v12321_v63 }
 0x345   :  { %8926 = vmatprep.mubr.f32.mxu1 %v12327_v47 }
 0x348   :  { %8927 = vmatmul.mubr.f32.gmra.mrb[14].mxu1 %v12337_v52 }
 0x349   :  { %8937 = vmatprep.mubr.f32.mxu1 %v12193_v54  ;;  %v14263_v54 = vand.u32 4294901760, %v12297_v49 }
 0x34c   :  { %8938 = vmatmul.mubr.f32.vlgmr.msra.gmra.mrb[0].mxu1 %v12204_v34 }
 0x34d   :  { %9624 = vmatpush3.bf16.msra.mxu1 %v12131_v44  ;;  %8940 = vmatprep.mubr.f32.mxu1 %v12214_v18 }
 0x34e   :  { %9626 = vmatprep.subr.bf16.mxu1 %v12169_v19 }
 0x350   :  { %8941 = vmatmul.mubr.f32.gmra.mrb[2].mxu1 %v12227_v4 }
 0x351   :  { %8943 = vmatprep.mubr.f32.mxu1 %v12236_v55  ;;  %9628 = vmatpush3.bf16.msra.mxu1 %v12169_v19  ;;  %v4406_v55 = vld [vmem:[%s13996_s9 + $0x28] sm:$0xff] }
 0x352   :  { %9630 = vmatprep.subr.bf16.mxu1 %v9629_v30 }
 0x354   :  { %8944 = vmatmul.mubr.f32.gmra.mrb[4].mxu1 %v12246_v31 }
 0x355   :  { %8946 = vmatprep.mubr.f32.mxu1 %v12249_v38 }
 0x358   :  { %8947 = vmatmul.mubr.f32.gmra.mrb[6].mxu1 %v12270_v48 }
 0x359   :  { %8949 = vmatprep.mubr.f32.mxu1 %v12277_v60 }
 0x35c   :  { %8950 = vmatmul.mubr.f32.gmra.mrb[8].mxu1 %v12297_v49  ;;  %v4407_v49 = vld [vmem:[%s13996_s9 + $0x30] sm:$0xff] }
 0x35d   :  { %8952 = vmatprep.mubr.f32.mxu1 %v12303_v28  ;;  %v4484_v36 = vand.u32 4294901760, %v4407_v49 }
 0x360   :  { %8953 = vmatmul.mubr.f32.gmra.mrb[10].mxu1 %v12319_v50 }
 0x361   :  { %8955 = vmatprep.mubr.f32.mxu1 %v12325_v20 }
 0x364   :  { %8956 = vmatmul.mubr.f32.gmra.mrb[12].mxu1 %v12335_v22 }
 0x365   :  { %8958 = vmatprep.mubr.f32.mxu1 %v12344_v11 }
 0x368   :  { %8959 = vmatmul.mubr.f32.gmra.mrb[14].mxu1 %v12351_v39 }
 0x369   :  { %8969 = vmatprep.mubr.f32.mxu1 %v3124_v56  ;;  %v4404_v56 = vld [vmem:[%s13996_s9 + $0x18] sm:$0xff] }
 0x36a   :  { %v4475_v62 = vand.u32 4294901760, %v4404_v56 }
 0x36c   :  { %8970 = vmatmul.mubr.f32.vlgmr.msra.gmra.mrb[0].mxu1 %v3134_v17  ;;  %v12507_v4 = vsub.f32 %v4404_v56, %v4475_v62 }
 0x36d   :  { %9632 = vmatpush3.bf16.msra.mxu1 %v9629_v30  ;;  %8972 = vmatprep.mubr.f32.mxu1 %v3144_v42  ;;  %v4405_v42 = vld [vmem:[%s13996_s9 + $0x20] sm:$0xff] }
 0x36e   :  { %9634 = vmatprep.subr.bf16.mxu1 %v9633_v61 }
 0x370   :  { %8973 = vmatmul.mubr.f32.gmra.mrb[2].mxu1 %v3154_v24  ;;  %v4722_v24 = vand.u32 4294901760, %v12507_v4 }
 0x371   :  { %8975 = vmatprep.mubr.f32.mxu1 %v3164_v58  ;;  %9636 = vmatpush3.bf16.msra.mxu1 %v9633_v61  ;;  %v4481_v58 = vand.u32 4294901760, %v4406_v55 }
 0x372   :  { %9638 = vmatprep.subr.bf16.mxu1 %v12131_v44  ;;  %v4723_v60 = vsub.f32 %v12507_v4, %v4722_v24 }
 0x374   :  { %8976 = vmatmul.mubr.f32.gmra.mrb[4].mxu1 %v3174_v51 }
 0x375   :  { %8978 = vmatprep.mubr.f32.mxu1 %v14260_v21 }
 0x378   :  { %8979 = vmatmul.mubr.f32.gmra.mrb[6].mxu1 %v14261_v7 }
 0x379   :  { %8981 = vmatprep.mubr.f32.mxu1 %v14262_v26 }
 0x37c   :  { %8982 = vmatmul.mubr.f32.gmra.mrb[8].mxu1 %v14263_v54  ;;  %v10689_v54 = vmov 1966171168  }
 0x37d   :  { %8984 = vmatprep.mubr.f32.mxu1 %v14264_v27  ;;  %v4186_v27 = vunpack.c.l.s4 %v10689_v54 }
 0x380   :  { %8985 = vmatmul.mubr.f32.gmra.mrb[10].mxu1 %v14265_v0  ;;  %v4187_v0 = vunpack.c.0.s8 %v4186_v27 }
 0x381   :  { %8987 = vmatprep.mubr.f32.mxu1 %v3244_v9 }
 0x384   :  { %8988 = vmatmul.mubr.f32.gmra.mrb[12].mxu1 %v3254_v10 }
 0x385   :  { %8990 = vmatprep.mubr.f32.mxu1 %v3264_v16 }
 0x388   :  { %8991 = vmatmul.mubr.f32.gmra.mrb[14].mxu1 %v3274_v53  ;;  %v12541_v53 = vsub.f32 %v4407_v49, %v4484_v36 }
 0x389   :  { %9001 = vmatprep.mubr.f32.mxu1 %v12185_v35 }
 0x38a   :  { %v14118_v39 = vand.u32 4294901760, %v12541_v53 }
 0x38c   :  { %9002 = vmatmul.mubr.f32.vlgmr.msra.gmra.mrb[0].mxu1 %v12188_v13  ;;  %v4744_v45 = vsub.f32 %v12541_v53, %v14118_v39 }
 0x38d   :  { %9640 = vmatpush3.bf16.msra.mxu1 %v12131_v44  ;;  %9004 = vmatprep.mubr.f32.mxu1 %v12195_v5  ;;  %v4401_v44 = vld [vmem:[%s13996_s9] sm:$0xff] }
 0x38e   :  { %9642 = vmatprep.subr.bf16.mxu1 %v12169_v19  ;;  %v4745_v12 = vand.u32 4294901760, %v4744_v45 }
 0x390   :  { %9005 = vmatmul.mubr.f32.gmra.mrb[2].mxu1 %v12207_v40 }
 0x391   :  { %9007 = vmatprep.mubr.f32.mxu1 %v12216_v59  ;;  %9644 = vmatpush3.bf16.msra.mxu1 %v12169_v19  ;;  %v4402_v19 = vld [vmem:[%s13996_s9 + $0x8] sm:$0xff] }
 0x394   :  { %9008 = vmatmul.mubr.f32.gmra.mrb[4].mxu1 %v12220_v46 }
 0x395   :  { %9010 = vmatprep.mubr.f32.mxu1 %v12222_v33 }
 0x398   :  { %9011 = vmatmul.mubr.f32.gmra.mrb[6].mxu1 %v12251_v3 }
 0x399   :  { %9013 = vmatprep.mubr.f32.mxu1 %v12258_v15 }
 0x39c   :  { %9014 = vmatmul.mubr.f32.gmra.mrb[8].mxu1 %v12279_v29 }
 0x39d   :  { %9016 = vmatprep.mubr.f32.mxu1 %v12284_v23 }
 0x3a0   :  { %9017 = vmatmul.mubr.f32.gmra.mrb[10].mxu1 %v12299_v57 }
 0x3a1   :  { %9019 = vmatprep.mubr.f32.mxu1 %v12305_v1 }
 0x3a4   :  { %9020 = vmatmul.mubr.f32.gmra.mrb[12].mxu1 %v12321_v63 }
 0x3a5   :  { %9022 = vmatprep.mubr.f32.mxu1 %v12327_v47 }
 0x3a8   :  { %9023 = vmatmul.mubr.f32.gmra.mrb[14].mxu1 %v12337_v52 }
 0x3a9   :  { %9033 = vmatprep.mubr.f32.mxu1 %v12185_v35  ;;  %v4466_v35 = vand.u32 4294901760, %v4401_v44 }
 0x3ac   :  { %9034 = vmatmul.mubr.f32.vlgmr.msra.gmra.mrb[0].mxu1 %v12188_v13  ;;  %v4469_v13 = vand.u32 4294901760, %v4402_v19 }
 0x3ad   :  { %9036 = vmatprep.mubr.f32.mxu1 %v12195_v5  ;;  %v12487_v5 = vsub.f32 %v4401_v44, %v4466_v35  ;;  %v8050_v44 = vld [vmem:[%s13995_s8] ss:$0 sm:$0xff]  ;;  %s10701_s8 = smov 3  }
 0x3ae   :  { %v12489_v34 = vsub.f32 %v4402_v19, %v4469_v13  ;;  %v12546_v6 = vpack.c.bf16 %v4469_v13, %v4466_v35  ;;  %v9837_v19 = vadd.f32 %v8050_v44, %v12030_v32  ;;  %v14266_v35 = vld [vmem:[#allocation19_spill] sm:$0xff] }
 0x3af   :  { %v4701_v18 = vand.u32 4294901760, %v12487_v5  ;;  %v12591_v13 = vsub.s32 %v4187_v0, %v14266_v35 }
 0x3b0   :  { %9037 = vmatmul.mubr.f32.gmra.mrb[2].mxu1 %v12207_v40  ;;  %v4403_v40 = vld [vmem:[%s13996_s9 + $0x10] sm:$0xff]  ;;  %9646 = vmatprep.subr.bf16.mxu1 %v12546_v6  ;;  %v12571_v61 = vpack.c.bf16 %v12489_v34, %v12487_v5 }
 0x3b1   :  { %9039 = vmatprep.mubr.f32.mxu1 %v12216_v59  ;;  %v4708_v59 = vand.u32 4294901760, %v12489_v34  ;;  %v4472_v37 = vand.u32 4294901760, %v4403_v40  ;;  %9648 = vmatpush3.bf16.msra.mxu1 %v12546_v6 }
 0x3b3   :  { %v12505_v17 = vsub.f32 %v4403_v40, %v4472_v37  ;;  %v12557_v2 = vpack.c.bf16 %v4475_v62, %v4472_v37  ;;  %v4191_v40 = vrot.slane %v9837_v19, %v12591_v13  ;;  %v14267_v62 = vld [vmem:[#allocation20_spill] sm:$0xff] }
 0x3b4   :  { %9040 = vmatmul.mubr.f32.gmra.mrb[4].mxu1 %v12220_v46  ;;  %v4702_v46 = vsub.f32 %v12487_v5, %v4701_v18 }
 0x3b5   :  { %9042 = vmatprep.mubr.f32.mxu1 %v12222_v33  ;;  %v4709_v33 = vsub.f32 %v12489_v34, %v4708_v59  ;;  %9650 = vmatprep.subr.bf16.mxu1 %v12557_v2  ;;  %v12576_v21 = vpack.c.bf16 %v12507_v4, %v12505_v17  ;;  %v4199_v56 = vcombine.high %v4191_v40, %v4191_v40  ;;  %v14274_v4 = vand.u32 4294901760, %v12541_v53 }
 0x3b6   :  { %v4703_v31 = vand.u32 4294901760, %v4702_v46  ;;  %9652 = vmatpush3.bf16.msra.mxu1 %v12557_v2  ;;  %v4207_v37 = vrot.slane %v4191_v40, %v12591_v13 }
 0x3b7   :  { %v4710_v38 = vand.u32 4294901760, %v4709_v33  ;;  %v4221_v33 = vrot.slane %v4199_v56, %v12591_v13 }
 0x3b8   :  { %9043 = vmatmul.mubr.f32.gmra.mrb[6].mxu1 %v12251_v3  ;;  %v4715_v3 = vand.u32 4294901760, %v12505_v17  ;;  %v4236_v46 = vrot.slane %v4207_v37, %v14267_v62 }
 0x3b9   :  { %9045 = vmatprep.mubr.f32.mxu1 %v12258_v15  ;;  %v4478_v15 = vand.u32 4294901760, %v4405_v42  ;;  %v9661_v51 = vpack.c.bf16 %v4710_v38, %v4703_v31 }
 0x3ba   :  { %v4716_v48 = vsub.f32 %v12505_v17, %v4715_v3  ;;  %v9713_v5 = vpack.c.bf16 %v4722_v24, %v4715_v3 }
 0x3bb   :  { %9662 = vmatprep.subr.bf16.mxu0 %v9661_v51  ;;  %v12561_v8 = vpack.c.bf16 %v4481_v58, %v4478_v15 }
 0x3bc   :  { %9046 = vmatmul.mubr.f32.gmra.mrb[8].mxu1 %v12279_v29  ;;  %v12523_v29 = vsub.f32 %v4405_v42, %v4478_v15  ;;  %v4717_v10 = vand.u32 4294901760, %v4716_v48  ;;  %9664 = vmatpush3.bf16.msra.mxu0 %v9661_v51  ;;  %v4184_v15 = vcombine.high %v9837_v19, %v9837_v19  ;;  %v4229_v51 = vcombine.high %v4207_v37, %v4207_v37 }
 0x3bd   :  { %9048 = vmatprep.mubr.f32.mxu1 %v12284_v23  ;;  %v12525_v23 = vsub.f32 %v4406_v55, %v4481_v58  ;;  %9654 = vmatprep.subr.bf16.mxu1 %v12561_v8  ;;  %v4240_v58 = vrot.slane %v4221_v33, %v14267_v62 }
 0x3be   :  { %v14127_v28 = vand.u32 4294901760, %v12523_v29  ;;  %9656 = vmatpush3.bf16.msra.mxu1 %v12561_v8 }
 0x3bf   :  { %v12580_v7 = vpack.c.bf16 %v12525_v23, %v12523_v29 }
 0x3c0   :  { %9049 = vmatmul.mubr.f32.gmra.mrb[10].mxu1 %v12299_v57  ;;  %v4408_v57 = vld [vmem:[%s13996_s9 + $0x38] sm:$0xff]  ;;  %v4730_v20 = vsub.f32 %v12523_v29, %v14127_v28  ;;  %s10699_s9 = smov 39  }
 0x3c1   :  { %9051 = vmatprep.mubr.f32.mxu1 %v12305_v1  ;;  %v14125_v1 = vand.u32 4294901760, %v12525_v23  ;;  %v4487_v50 = vand.u32 4294901760, %v4408_v57 }
 0x3c2   :  { %v4731_v9 = vand.u32 4294901760, %v4730_v20 }
 0x3c3   :  { %v12543_v22 = vsub.f32 %v4408_v57, %v4487_v50  ;;  %v12565_v30 = vpack.c.bf16 %v4487_v50, %v4484_v36  ;;  %v4198_v57 = vrot.slane %v4184_v15, %v12591_v13  ;;  %v4244_v50 = vrot.slane %v4229_v51, %v14267_v62 }
 0x3c4   :  { %9052 = vmatmul.mubr.f32.gmra.mrb[12].mxu1 %v12321_v63 }
 0x3c5   :  { %9054 = vmatprep.mubr.f32.mxu1 %v12327_v47  ;;  %v4737_v47 = vsub.f32 %v12525_v23, %v14125_v1  ;;  %v14117_v16 = vand.u32 4294901760, %v12543_v22  ;;  %9658 = vmatprep.subr.bf16.mxu1 %v12565_v30  ;;  %v12584_v26 = vpack.c.bf16 %v12543_v22, %v12541_v53  ;;  %v14275_v3 = vand.u32 4294901760, %v12543_v22 }
 0x3c6   :  { %9660 = vmatpush3.bf16.msra.mxu1 %v12565_v30 }
 0x3c7   :  { %v4738_v11 = vand.u32 4294901760, %v4737_v47  ;;  %v4751_v43 = vsub.f32 %v12543_v22, %v14117_v16  ;;  %v9721_v24 = vpack.c.bf16 %v14275_v3, %v14274_v4 }
 0x3c8   :  { %9055 = vmatmul.mubr.f32.gmra.mrb[14].mxu1 %v12337_v52  ;;  %v4724_v52 = vand.u32 4294901760, %v4723_v60 }
 0x3c9   :  { %v9669_v41 = vpack.c.bf16 %v4738_v11, %v4731_v9  ;;  %v4752_v25 = vand.u32 4294901760, %v4751_v43 }
 0x3ca   :  { %v9665_v63 = vpack.c.bf16 %v4724_v52, %v4717_v10 }
 0x3cb   :  { %v9673_v14 = vpack.c.bf16 %v4752_v25, %v4745_v12  ;;  %v4214_v12 = vrot.slane %v4198_v57, %v12591_v13  ;;  %v4200_v25 = vcombine.high %v4198_v57, %v4198_v57 }
 0x3cc   :  { %9666 = vmatprep.subr.bf16.mxu0 %v9665_v63 }
 0x3cd   :  { %9668 = vmatpush3.bf16.msra.mxu0 %v9665_v63  ;;  %v4231_v63 = vcombine.high %v4221_v33, %v4221_v33  ;;  %v4252_v40 = vrot.slane %v4214_v12, %v14267_v62  ;;  %v4228_v56 = vrot.slane %v4200_v25, %v12591_v13 }
 0x3ce   :  { %9670 = vmatprep.subr.bf16.mxu0 %v9669_v41 }
 0x3cf   :  { %v4248_v43 = vrot.slane %v4231_v63, %v14267_v62 }
 0x3d1   :  { %9672 = vmatpush3.bf16.msra.mxu0 %v9669_v41 }
 0x3d2   :  { %9674 = vmatprep.subr.bf16.mxu0 %v9673_v14 }
 0x3d5   :  { %9676 = vmatpush3.bf16.msra.mxu0 %v9673_v14 }
 0x3d6   :  { %9678 = vmatprep.subr.bf16.mxu0 %v12571_v61 }
 0x47f   :  { %v9035_v42 = vpop.f32.mrb[0].mxu1 }
 0x480   :  { %v12597_v55 = vadd.f32 %v9035_v42, %v4236_v46  ;;  %v4089_v31 = vpop.f32.mrb[1].mxu1 }
 0x481   :  { %v12599_v38 = vadd.f32 %v4236_v46, %v4089_v31 }
 0x482   :  { %v8052_v32 = vmul.f32 -1.442695, %v12597_v55 }
 0x483   :  { %v8051_v48 = vmul.f32 -1.442695, %v12599_v38  ;;  %v9038_v60 = vpop.f32.mrb[2].mxu1 }
 0x484   :  { %10338 = vpow2.f32 %v8052_v32  ;;  %v12604_v10 = vadd.f32 %v9038_v60, %v4240_v58  ;;  %v4101_v52 = vpop.f32.mrb[3].mxu1  ;;  %v4256_v60 = vrot.slane %v4228_v56, %v14267_v62 }
 0x485   :  { %10340 = vpow2.f32 %v8051_v48  ;;  %v12606_v49 = vadd.f32 %v4240_v58, %v4101_v52  ;;  %v4230_v52 = vcombine.high %v4214_v12, %v4214_v12 }
 0x486   :  { %v8054_v36 = vmul.f32 -1.442695, %v12604_v10 }
 0x487   :  { %v8053_v20 = vmul.f32 -1.442695, %v12606_v49  ;;  %v9041_v47 = vpop.f32.mrb[4].mxu1  ;;  %v4260_v12 = vrot.slane %v4230_v52, %v14267_v62 }
 0x488   :  { %10342 = vpow2.f32 %v8054_v36  ;;  %v12612_v9 = vadd.f32 %v9041_v47, %v4244_v50  ;;  %v4113_v11 = vpop.f32.mrb[5].mxu1 }
 0x489   :  { %10344 = vpow2.f32 %v8053_v20  ;;  %v12614_v41 = vadd.f32 %v4244_v50, %v4113_v11 }
 0x48a   :  { %v8056_v45 = vmul.f32 -1.442695, %v12612_v9 }
 0x48b   :  { %v8055_v14 = vmul.f32 -1.442695, %v12614_v41  ;;  %v9044_v54 = vpop.f32.mrb[6].mxu1 }
 0x48c   :  { %10346 = vpow2.f32 %v8056_v45  ;;  %v12620_v27 = vadd.f32 %v9044_v54, %v4248_v43  ;;  %v4125_v0 = vpop.f32.mrb[7].mxu1 }
 0x48d   :  { %10348 = vpow2.f32 %v8055_v14  ;;  %v12622_v44 = vadd.f32 %v4248_v43, %v4125_v0  ;;  %v4232_v14 = vcombine.high %v4228_v56, %v4228_v56 }
 0x48e   :  { %v10339_v19 = vpop.eup %10338  ;;  %v8058_v35 = vmul.f32 -1.442695, %v12620_v27 }
 0x48f   :  { %v10341_v37 = vpop.eup %10340  ;;  %v4338_v46 = vadd.f32 1.0, %v10339_v19  ;;  %v8057_v33 = vmul.f32 -1.442695, %v12622_v44  ;;  %v9047_v42 = vpop.f32.mrb[8].mxu1  ;;  %v4264_v56 = vrot.slane %v4232_v14, %v14267_v62 }
 0x490   :  { %v4337_v31 = vadd.f32 1.0, %v10341_v37  ;;  %10350 = vpow2.f32 %v8058_v35  ;;  %v12628_v15 = vadd.f32 %v9047_v42, %v4252_v40  ;;  %v4137_v32 = vpop.f32.mrb[9].mxu1 }
 0x491   :  { %10352 = vrcp.f32 %v4338_v46  ;;  %v12630_v58 = vadd.f32 %v4252_v40, %v4137_v32 }
 0x492   :  { %v10343_v51 = vpop.eup %10342  ;;  %10354 = vrcp.f32 %v4337_v31  ;;  %v8060_v48 = vmul.f32 -1.442695, %v12628_v15 }
 0x493   :  { %v10345_v57 = vpop.eup %10344  ;;  %v4340_v36 = vadd.f32 1.0, %v10343_v51  ;;  %10356 = vpow2.f32 %v8057_v33  ;;  %v8059_v50 = vmul.f32 -1.442695, %v12630_v58  ;;  %v9050_v63 = vpop.f32.mrb[10].mxu1 }
 0x494   :  { %v4339_v20 = vadd.f32 1.0, %v10345_v57  ;;  %10358 = vpow2.f32 %v8060_v48  ;;  %v12635_v47 = vadd.f32 %v9050_v63, %v4256_v60  ;;  %v4149_v11 = vpop.f32.mrb[11].mxu1 }
 0x495   :  { %10360 = vrcp.f32 %v4340_v36  ;;  %v12637_v45 = vadd.f32 %v4256_v60, %v4149_v11 }
 0x496   :  { %v10347_v43 = vpop.eup %10346  ;;  %10362 = vrcp.f32 %v4339_v20  ;;  %v8062_v25 = vmul.f32 -1.442695, %v12635_v47 }
 0x497   :  { %v10349_v54 = vpop.eup %10348  ;;  %v4342_v0 = vadd.f32 1.0, %v10347_v43  ;;  %10364 = vpow2.f32 %v8059_v50  ;;  %v8061_v19 = vmul.f32 -1.442695, %v12637_v45  ;;  %v9053_v35 = vpop.f32.mrb[12].mxu1 }
 0x498   :  { %v4341_v40 = vadd.f32 1.0, %v10349_v54  ;;  %10366 = vpow2.f32 %v8062_v25  ;;  %v12642_v37 = vadd.f32 %v9053_v35, %v4260_v12  ;;  %v4161_v46 = vpop.f32.mrb[13].mxu1 }
 0x499   :  { %10368 = vrcp.f32 %v4342_v0  ;;  %v12644_v33 = vadd.f32 %v4260_v12, %v4161_v46 }
 0x49a   :  { %v10351_v42 = vpop.eup %10350  ;;  %10370 = vrcp.f32 %v4341_v40  ;;  %v8064_v31 = vmul.f32 -1.442695, %v12642_v37 }
 0x49b   :  { %v10353_v32 = vpop.eup %10352  ;;  %v4344_v51 = vadd.f32 1.0, %v10351_v42  ;;  %10372 = vpow2.f32 %v8061_v19  ;;  %v8063_v48 = vmul.f32 -1.442695, %v12644_v33  ;;  %v9056_v60 = vpop.f32.mrb[14].mxu1 }
 0x49c   :  { %v10355_v52 = vpop.eup %10354  ;;  %v4386_v57 = vmul.f32 %v10353_v32, %v12597_v55  ;;  %10374 = vpow2.f32 %v8064_v31  ;;  %v12650_v36 = vadd.f32 %v9056_v60, %v4264_v56  ;;  %v4173_v50 = vpop.f32.mrb[15].mxu1 }
 0x49d   :  { %v10357_v63 = vpop.eup %10356  ;;  %v4385_v20 = vmul.f32 %v10355_v52, %v12599_v38  ;;  %10376 = vrcp.f32 %v4344_v51  ;;  %v12653_v11 = vadd.f32 %v4264_v56, %v4173_v50 }
 0x49e   :  { %v10359_v43 = vpop.eup %10358  ;;  %v4421_v25 = vsel %vm4416_vm0, %v4386_v57, 0  ;;  %v4343_v12 = vadd.f32 1.0, %v10357_v63  ;;  %10378 = vpow2.f32 %v8063_v48  ;;  %v8066_v14 = vmul.f32 -1.442695, %v12650_v36 }
 0x49f   :  { %v10361_v54 = vpop.eup %10360  ;;  %v12657_v0 = vand.u32 4294901760, %v4421_v25  ;;  %v4418_v55 = vsel %vm4416_vm0, %v4385_v20, 0  ;;  %v4346_v19 = vadd.f32 1.0, %v10359_v43  ;;  %v8065_v56 = vmul.f32 -1.442695, %v12653_v11 }
 0x4a0   :  { %v10363_v35 = vpop.eup %10362  ;;  %v12660_v40 = vand.u32 4294901760, %v4418_v55  ;;  %v4388_v38 = vmul.f32 %v10361_v54, %v12604_v10  ;;  %10380 = vrcp.f32 %v4343_v12 }
 0x4a1   :  { %v10365_v46 = vpop.eup %10364  ;;  %v12664_v42 = vsub.f32 %v4421_v25, %v12657_v0  ;;  %v4387_v31 = vmul.f32 %v10363_v35, %v12606_v49  ;;  %10382 = vrcp.f32 %v4346_v19 }
 0x4a2   :  { %v10367_v32 = vpop.eup %10366  ;;  %v12669_v51 = vsub.f32 %v4418_v55, %v12660_v40  ;;  %v4427_v48 = vsel %vm4416_vm0, %v4388_v38, 0  ;;  %v4345_v60 = vadd.f32 1.0, %v10365_v46  ;;  %10384 = vpow2.f32 %v8066_v14  ;;  %9113 = vmatprep.mubr.f32.mxu0 %v12660_v40 }
 0x4a3   :  { %v10369_v10 = vpop.eup %10368  ;;  %v14131_v52 = vand.u32 4294901760, %v12664_v42  ;;  %v12674_v57 = vand.u32 4294901760, %v4427_v48  ;;  %v4424_v49 = vsel %vm4416_vm0, %v4387_v31, 0  ;;  %v4348_v50 = vadd.f32 1.0, %v10367_v32  ;;  %9114 = vmatmul.mubr.f32.vlgmr.msra.gmra.mrb[2].mxu0 %v12657_v0 }
 0x4a4   :  { %v10371_v63 = vpop.eup %10370  ;;  %v12678_v20 = vand.u32 4294901760, %v4424_v49  ;;  %v4390_v43 = vmul.f32 %v10369_v10, %v12612_v9  ;;  %10386 = vrcp.f32 %v4345_v60  ;;  %9680 = vmatpush3.bf16.msra.mxu0 %v12571_v61  ;;  %v4540_v25 = vand.u32 4294901760, %v12669_v51 }
 0x4a5   :  { %v10373_v12 = vpop.eup %10372  ;;  %v4551_v14 = vsub.f32 %v12664_v42, %v14131_v52  ;;  %v12687_v54 = vsub.f32 %v4427_v48, %v12674_v57  ;;  %v4389_v55 = vmul.f32 %v10371_v63, %v12614_v41  ;;  %10388 = vrcp.f32 %v4348_v50  ;;  %9682 = vmatprep.subr.bf16.mxu0 %v12576_v21 }
 0x4a6   :  { %v10375_v19 = vpop.eup %10374  ;;  %v12692_v9 = vsub.f32 %v4424_v49, %v12678_v20  ;;  %v4433_v61 = vsel %vm4416_vm0, %v4390_v43, 0  ;;  %v4347_v35 = vadd.f32 1.0, %v10373_v12  ;;  %10390 = vpow2.f32 %v8065_v56  ;;  %9116 = vmatprep.mubr.f32.mxu0 %v12678_v20 }
 0x4a7   :  { %v10377_v38 = vpop.eup %10376  ;;  %v4552_v46 = vand.u32 4294901760, %v4551_v14  ;;  %v12696_v31 = vand.u32 4294901760, %v4433_v61  ;;  %v4430_v32 = vsel %vm4416_vm0, %v4389_v55, 0  ;;  %v4350_v41 = vadd.f32 1.0, %v10375_v19  ;;  %9117 = vmatmul.mubr.f32.gmra.mrb[4].mxu0 %v12674_v57 }
 0x4a8   :  { %v10379_v48 = vpop.eup %10378  ;;  %v12700_v60 = vand.u32 4294901760, %v4430_v32  ;;  %v4392_v10 = vmul.f32 %v10377_v38, %v12620_v27  ;;  %10392 = vrcp.f32 %v4347_v35  ;;  %v4541_v56 = vsub.f32 %v12669_v51, %v4540_v25  ;;  %9684 = vmatpush3.bf16.msra.mxu0 %v12576_v21 }
 0x4a9   :  { %v12708_v49 = vsub.f32 %v4433_v61, %v12696_v31  ;;  %10394 = vrcp.f32 %v4350_v41  ;;  %v4349_v50 = vadd.f32 1.0, %v10379_v48  ;;  %v14130_v63 = vand.u32 4294901760, %v12692_v9  ;;  %9686 = vmatprep.subr.bf16.mxu0 %v12580_v7 }
 0x4aa   :  { %v10381_v43 = vpop.eup %10380  ;;  %v12713_v12 = vsub.f32 %v4430_v32, %v12700_v60  ;;  %v4439_v27 = vsel %vm4416_vm0, %v4392_v10, 0  ;;  %v4542_v14 = vand.u32 4294901760, %v4541_v56  ;;  %9119 = vmatprep.mubr.f32.mxu0 %v12700_v60  ;;  %v14122_v21 = vand.u32 4294901760, %v12687_v54 }
 0x4ab   :  { %v10383_v55 = vpop.eup %10382  ;;  %v12718_v19 = vand.u32 4294901760, %v4439_v27  ;;  %v4391_v61 = vmul.f32 %v10381_v43, %v12622_v44  ;;  %10396 = vrcp.f32 %v4349_v50  ;;  %9120 = vmatmul.mubr.f32.gmra.mrb[6].mxu0 %v12696_v31  ;;  %v4561_v35 = vsub.f32 %v12692_v9, %v14130_v63 }
 0x4ac   :  { %v10385_v38 = vpop.eup %10384  ;;  %v4394_v32 = vmul.f32 %v10383_v55, %v12628_v15  ;;  %9073 = vmatprep.mubr.f32.mxu1 %v4542_v14  ;;  %v4571_v41 = vsub.f32 %v12687_v54, %v14122_v21  ;;  %v14119_v48 = vand.u32 4294901760, %v12713_v12  ;;  %v14120_v10 = vand.u32 4294901760, %v12708_v49  ;;  %9688 = vmatpush3.bf16.msra.mxu0 %v12580_v7 }
 0x4ad   :  { %v12733_v44 = vsub.f32 %v4439_v27, %v12718_v19  ;;  %v4436_v56 = vsel %vm4416_vm0, %v4391_v61, 0  ;;  %v4352_v50 = vadd.f32 1.0, %v10385_v38  ;;  %9074 = vmatmul.mubr.f32.vlgmr.msra.gmra.mrb[16].mxu1 %v4552_v46  ;;  %v4562_v43 = vand.u32 4294901760, %v4561_v35  ;;  %9690 = vmatprep.subr.bf16.mxu0 %v12584_v26 }
 0x4ae   :  { %v10387_v15 = vpop.eup %10386  ;;  %v12737_v14 = vand.u32 4294901760, %v4436_v56  ;;  %v4445_v55 = vsel %vm4416_vm0, %v4394_v32, 0  ;;  %v4572_v16 = vand.u32 4294901760, %v4571_v41  ;;  %v4581_v7 = vsub.f32 %v12713_v12, %v14119_v48 }
 0x4af   :  { %v10389_v39 = vpop.eup %10388  ;;  %v12743_v27 = vand.u32 4294901760, %v4445_v55  ;;  %v4393_v61 = vmul.f32 %v10387_v15, %v12630_v58  ;;  %10398 = vrcp.f32 %v4352_v50  ;;  %9076 = vmatprep.mubr.f32.mxu1 %v4562_v43  ;;  %v4591_v46 = vsub.f32 %v12708_v49, %v14120_v10 }
 0x4b0   :  { %v10391_v35 = vpop.eup %10390  ;;  %v12750_v38 = vsub.f32 %v4436_v56, %v12737_v14  ;;  %v4396_v32 = vmul.f32 %v10389_v39, %v12635_v47  ;;  %9122 = vmatprep.mubr.f32.mxu0 %v12737_v14  ;;  %v4582_v41 = vand.u32 4294901760, %v4581_v7  ;;  %v14121_v48 = vand.u32 4294901760, %v12733_v44  ;;  %9692 = vmatpush3.bf16.msra.mxu0 %v12584_v26 }
 0x4b1   :  { %v12757_v58 = vsub.f32 %v4445_v55, %v12743_v27  ;;  %v4442_v50 = vsel %vm4416_vm0, %v4393_v61, 0  ;;  %v4351_v43 = vadd.f32 1.0, %v10391_v35  ;;  %9077 = vmatmul.mubr.f32.gmra.mrb[18].mxu1 %v4572_v16  ;;  %9123 = vmatmul.mubr.f32.gmra.mrb[8].mxu0 %v12718_v19  ;;  %v4592_v56 = vand.u32 4294901760, %v4591_v46 }
 0x4b2   :  { %v10393_v15 = vpop.eup %10392  ;;  %v12761_v10 = vand.u32 4294901760, %v4442_v50  ;;  %v4451_v39 = vsel %vm4416_vm0, %v4396_v32, 0  ;;  %9079 = vmatprep.mubr.f32.mxu1 %v4582_v41  ;;  %v14123_v47 = vand.u32 4294901760, %v12750_v38  ;;  %v4611_v26 = vsub.f32 %v12733_v44, %v14121_v48  ;;  %9694 = vmatprep.subr.bf16.mxu0 %v12546_v6 }
 0x4b3   :  { %v10395_v55 = vpop.eup %10394  ;;  %v12769_v7 = vand.u32 4294901760, %v4451_v39  ;;  %v4395_v16 = vmul.f32 %v10393_v15, %v12637_v45  ;;  %10400 = vrcp.f32 %v4351_v43  ;;  %v14124_v61 = vand.u32 4294901760, %v12757_v58 }
 0x4b4   :  { %v12774_v46 = vsub.f32 %v4442_v50, %v12761_v10  ;;  %v4398_v35 = vmul.f32 %v10395_v55, %v12642_v37  ;;  %9125 = vmatprep.mubr.f32.mxu0 %v12761_v10  ;;  %v4601_v32 = vsub.f32 %v12750_v38, %v14123_v47  ;;  %v4612_v21 = vand.u32 4294901760, %v4611_v26 }
 0x4b5   :  { %v10397_v41 = vpop.eup %10396  ;;  %v12782_v48 = vsub.f32 %v4451_v39, %v12769_v7  ;;  %v4448_v45 = vsel %vm4416_vm0, %v4395_v16, 0  ;;  %9080 = vmatmul.mubr.f32.gmra.mrb[20].mxu1 %v4592_v56  ;;  %9126 = vmatmul.mubr.f32.gmra.mrb[10].mxu0 %v12743_v27  ;;  %v4631_v39 = vsub.f32 %v12757_v58, %v14124_v61  ;;  %v14268_v34 = vand.u32 4294901760, %v12664_v42 }
 0x4b6   :  { %v12786_v43 = vand.u32 4294901760, %v4448_v45  ;;  %v4457_v50 = vsel %vm4416_vm0, %v4398_v35, 0  ;;  %v4397_v37 = vmul.f32 %v10397_v41, %v12644_v33  ;;  %v4602_v15 = vand.u32 4294901760, %v4601_v32 }
 0x4b7   :  { %v12790_v55 = vand.u32 4294901760, %v4457_v50  ;;  %v14126_v47 = vand.u32 4294901760, %v12774_v46  ;;  %v14128_v33 = vand.u32 4294901760, %v12782_v48  ;;  %v14273_v17 = vand.u32 4294901760, %v12713_v12 }
 0x4b8   :  { %v12797_v56 = vsub.f32 %v4448_v45, %v12786_v43  ;;  %v4454_v16 = vsel %vm4416_vm0, %v4397_v37, 0  ;;  %9082 = vmatprep.mubr.f32.mxu1 %v4602_v15  ;;  %9128 = vmatprep.mubr.f32.mxu0 %v12786_v43  ;;  %v14280_v53 = vand.u32 4294901760, %v12757_v58 }
 0x4b9   :  { %v10399_v35 = vpop.eup %10398  ;;  %v12803_v32 = vsub.f32 %v4457_v50, %v12790_v55  ;;  %v12805_v26 = vand.u32 4294901760, %v4454_v16  ;;  %9083 = vmatmul.mubr.f32.gmra.mrb[22].mxu1 %v4612_v21  ;;  %9129 = vmatmul.mubr.f32.gmra.mrb[12].mxu0 %v12769_v7  ;;  %v4621_v41 = vsub.f32 %v12774_v46, %v14126_v47  ;;  %v4632_v50 = vand.u32 4294901760, %v4631_v39 }
 0x4ba   :  { %v4400_v45 = vmul.f32 %v10399_v35, %v12650_v36  ;;  %v14129_v37 = vand.u32 4294901760, %v12797_v56  ;;  %v4651_v47 = vsub.f32 %v12782_v48, %v14128_v33  ;;  %v14281_v22 = vand.u32 4294901760, %v12797_v56 }
 0x4bb   :  { %v12814_v15 = vsub.f32 %v4454_v16, %v12805_v26  ;;  %v4622_v61 = vand.u32 4294901760, %v4621_v41  ;;  %9131 = vmatprep.mubr.f32.mxu0 %v12805_v26  ;;  %v4670_v36 = vand.u32 4294901760, %v12803_v32 }
 0x4bc   :  { %v4463_v1 = vsel %vm4416_vm0, %v4400_v45, 0  ;;  %v4641_v21 = vsub.f32 %v12797_v56, %v14129_v37  ;;  %v4652_v63 = vand.u32 4294901760, %v4651_v47 }
 0x4bd   :  { %v10401_v35 = vpop.eup %10400  ;;  %v12825_v28 = vand.u32 4294901760, %v4463_v1  ;;  %9085 = vmatprep.mubr.f32.mxu1 %v4622_v61  ;;  %9132 = vmatmul.mubr.f32.gmra.mrb[14].mxu0 %v12790_v55  ;;  %v4660_v39 = vand.u32 4294901760, %v12814_v15  ;;  %v4671_v61 = vsub.f32 %v12803_v32, %v4670_v36 }
 0x4be   :  { %v4399_v16 = vmul.f32 %v10401_v35, %v12653_v11  ;;  %9086 = vmatmul.mubr.f32.gmra.mrb[24].mxu1 %v4632_v50  ;;  %v4642_v41 = vand.u32 4294901760, %v4641_v21 }
 0x4bf   :  { %v12831_v45 = vsub.f32 %v4463_v1, %v12825_v28  ;;  %v4661_v33 = vsub.f32 %v12814_v15, %v4660_v39  ;;  %v4672_v21 = vand.u32 4294901760, %v4671_v61 }
 0x4c0   :  { %v4460_v37 = vsel %vm4416_vm0, %v4399_v16, 0  ;;  %9088 = vmatprep.mubr.f32.mxu1 %v4642_v41  ;;  %v9709_v16 = vpack.c.bf16 %v4708_v59, %v4701_v18  ;;  %v14269_v18 = vand.u32 4294901760, %v12692_v9  ;;  %v14270_v59 = vand.u32 4294901760, %v12523_v29 }
 0x4c1   :  { %v12840_v52 = vand.u32 4294901760, %v4460_v37  ;;  %v4662_v11 = vand.u32 4294901760, %v4661_v33  ;;  %v4690_v50 = vand.u32 4294901760, %v12831_v45  ;;  %v14271_v41 = vand.u32 4294901760, %v12525_v23 }
 0x4c2   :  { %9089 = vmatmul.mubr.f32.gmra.mrb[26].mxu1 %v4652_v63  ;;  %v14277_v29 = vand.u32 4294901760, %v12750_v38  ;;  %v14278_v23 = vand.u32 4294901760, %v12733_v44 }
 0x4c3   :  { %v12844_v1 = vsub.f32 %v4460_v37, %v12840_v52  ;;  %9134 = vmatprep.mubr.f32.mxu0 %v12840_v52  ;;  %9091 = vmatprep.mubr.f32.mxu1 %v4662_v11  ;;  %v4691_v63 = vsub.f32 %v12831_v45, %v4690_v50  ;;  %v9717_v61 = vpack.c.bf16 %v14271_v41, %v14270_v59 }
 0x4c4   :  { %9135 = vmatmul.mubr.f32.gmra.mrb[16].mxu0 %v12825_v28 }
 0x4c5   :  { %9153 = vmatprep.mubr.f32.mxu0 %v12669_v51  ;;  %v4680_v47 = vand.u32 4294901760, %v12844_v1  ;;  %v4692_v35 = vand.u32 4294901760, %v4691_v63  ;;  %v14272_v51 = vand.u32 4294901760, %v12687_v54 }
 0x4c6   :  { %9092 = vmatmul.mubr.f32.gmra.mrb[28].mxu1 %v4672_v21 }
 0x4c7   :  { %v4681_v33 = vsub.f32 %v12844_v1, %v4680_v47 }
 0x4c8   :  { %9154 = vmatmul.mubr.f32.vlgmr.msra.gmra.mrb[2].mxu0 %v12664_v42  ;;  %v14276_v42 = vand.u32 4294901760, %v12708_v49 }
 0x4c9   :  { %9696 = vmatpush3.bf16.msra.mxu0 %v12546_v6  ;;  %9156 = vmatprep.mubr.f32.mxu0 %v12692_v9  ;;  %v4682_v37 = vand.u32 4294901760, %v4681_v33 }
 0x4ca   :  { %9698 = vmatprep.subr.bf16.mxu0 %v12557_v2 }
 0x4cb   :  { %9094 = vmatprep.mubr.f32.mxu1 %v4682_v37 }
 0x4cc   :  { %9095 = vmatmul.mubr.f32.gmra.mrb[30].mxu1 %v4692_v35  ;;  %9157 = vmatmul.mubr.f32.gmra.mrb[4].mxu0 %v12687_v54  ;;  %v14282_v54 = vand.u32 4294901760, %v12782_v48 }
 0x4cd   :  { %9159 = vmatprep.mubr.f32.mxu0 %v12713_v12  ;;  %9700 = vmatpush3.bf16.msra.mxu0 %v12557_v2 }
 0x4ce   :  { %9702 = vmatprep.subr.bf16.mxu0 %v12561_v8 }
 0x4d0   :  { %9160 = vmatmul.mubr.f32.gmra.mrb[6].mxu0 %v12708_v49 }
 0x4d1   :  { %9162 = vmatprep.mubr.f32.mxu0 %v12750_v38  ;;  %9704 = vmatpush3.bf16.msra.mxu0 %v12561_v8 }
 0x4d2   :  { %9706 = vmatprep.subr.bf16.mxu0 %v12565_v30 }
 0x4d4   :  { %9163 = vmatmul.mubr.f32.gmra.mrb[8].mxu0 %v12733_v44  ;;  %v5762_v44 = vld [vmem:[%s13998_s11 + $0x18] sm:$0xff] }
 0x4d5   :  { %9165 = vmatprep.mubr.f32.mxu0 %v12774_v46  ;;  %9708 = vmatpush3.bf16.msra.mxu0 %v12565_v30  ;;  %v5832_v38 = vand.u32 4294901760, %v5762_v44 }
 0x4d6   :  { %9710 = vmatprep.subr.bf16.mxu0 %v9709_v16 }
 0x4d8   :  { %9166 = vmatmul.mubr.f32.gmra.mrb[10].mxu0 %v12757_v58 }
 0x4d9   :  { %9168 = vmatprep.mubr.f32.mxu0 %v12797_v56 }
 0x4dc   :  { %9169 = vmatmul.mubr.f32.gmra.mrb[12].mxu0 %v12782_v48 }
 0x4dd   :  { %9171 = vmatprep.mubr.f32.mxu0 %v12814_v15 }
 0x4e0   :  { %9172 = vmatmul.mubr.f32.gmra.mrb[14].mxu0 %v12803_v32 }
 0x4e1   :  { %9174 = vmatprep.mubr.f32.mxu0 %v12844_v1 }
 0x4e4   :  { %9175 = vmatmul.mubr.f32.gmra.mrb[16].mxu0 %v12831_v45 }
 0x4e5   :  { %9193 = vmatprep.mubr.f32.mxu0 %v4540_v25  ;;  %v14279_v25 = vand.u32 4294901760, %v12774_v46  ;;  %v5763_v46 = vld [vmem:[%s13998_s11 + $0x20] sm:$0xff] }
 0x4e8   :  { %9194 = vmatmul.mubr.f32.vlgmr.msra.gmra.mrb[2].mxu0 %v14268_v34 }
 0x4e9   :  { %9712 = vmatpush3.bf16.msra.mxu0 %v9709_v16  ;;  %9196 = vmatprep.mubr.f32.mxu0 %v14269_v18  ;;  %v13048_v16 = vsub.f32 %v5762_v44, %v5832_v38 }
 0x4ea   :  { %9714 = vmatprep.subr.bf16.mxu0 %v9713_v5 }
 0x4eb   :  { %v14137_v59 = vand.u32 4294901760, %v13048_v16 }
 0x4ec   :  { %9197 = vmatmul.mubr.f32.gmra.mrb[4].mxu0 %v14272_v51 }
 0x4ed   :  { %9199 = vmatprep.mubr.f32.mxu0 %v14273_v17  ;;  %9716 = vmatpush3.bf16.msra.mxu0 %v9713_v5  ;;  %v6080_v51 = vsub.f32 %v13048_v16, %v14137_v59 }
 0x4ee   :  { %9718 = vmatprep.subr.bf16.mxu0 %v9717_v61 }
 0x4f0   :  { %9200 = vmatmul.mubr.f32.gmra.mrb[6].mxu0 %v14276_v42 }
 0x4f1   :  { %9202 = vmatprep.mubr.f32.mxu0 %v14277_v29  ;;  %9720 = vmatpush3.bf16.msra.mxu0 %v9717_v61 }
 0x4f2   :  { %9722 = vmatprep.subr.bf16.mxu0 %v9721_v24 }
 0x4f4   :  { %9203 = vmatmul.mubr.f32.gmra.mrb[8].mxu0 %v14278_v23 }
 0x4f5   :  { %9205 = vmatprep.mubr.f32.mxu0 %v14279_v25  ;;  %9724 = vmatpush3.bf16.msra.mxu0 %v9721_v24  ;;  %v6081_v24 = vand.u32 4294901760, %v6080_v51 }
 0x4f6   :  { %9726 = vmatprep.subr.bf16.mxu0 %v12546_v6 }
 0x4f8   :  { %9206 = vmatmul.mubr.f32.gmra.mrb[10].mxu0 %v14280_v53 }
 0x4f9   :  { %9208 = vmatprep.mubr.f32.mxu0 %v14281_v22 }
 0x4fc   :  { %9209 = vmatmul.mubr.f32.gmra.mrb[12].mxu0 %v14282_v54 }
 0x4fd   :  { %9211 = vmatprep.mubr.f32.mxu0 %v4660_v39  ;;  %v5766_v39 = vld [vmem:[%s13998_s11 + $0x38] sm:$0xff] }
 0x4fe   :  { %v5844_v11 = vand.u32 4294901760, %v5766_v39 }
 0x500   :  { %9212 = vmatmul.mubr.f32.gmra.mrb[14].mxu0 %v4670_v36  ;;  %v5765_v36 = vld [vmem:[%s13998_s11 + $0x30] sm:$0xff]  ;;  %v13074_v22 = vsub.f32 %v5766_v39, %v5844_v11 }
 0x501   :  { %9214 = vmatprep.mubr.f32.mxu0 %v4680_v47  ;;  %v5841_v45 = vand.u32 4294901760, %v5765_v36 }
 0x503   :  { %v13072_v53 = vsub.f32 %v5765_v36, %v5841_v45 }
 0x504   :  { %9215 = vmatmul.mubr.f32.gmra.mrb[16].mxu0 %v4690_v50  ;;  %v13030_v50 = vpack.c.bf16 %v5844_v11, %v5841_v45  ;;  %v13107_v45 = vld [vmem:[#allocation10] ss:$0 sm:$0xff] }
 0x505   :  { %9233 = vmatprep.mubr.f32.mxu0 %v12660_v40  ;;  %v13105_v39 = vpack.c.bf16 %v13074_v22, %v13072_v53 }
 0x508   :  { %9234 = vmatmul.mubr.f32.vlgmr.msra.gmra.mrb[2].mxu0 %v12657_v0 }
 0x509   :  { %9728 = vmatpush3.bf16.msra.mxu0 %v12546_v6  ;;  %9236 = vmatprep.mubr.f32.mxu0 %v12678_v20 }
 0x50a   :  { %9730 = vmatprep.subr.bf16.mxu0 %v12557_v2 }
 0x50c   :  { %9237 = vmatmul.mubr.f32.gmra.mrb[4].mxu0 %v12674_v57 }
 0x50d   :  { %9239 = vmatprep.mubr.f32.mxu0 %v12700_v60  ;;  %9732 = vmatpush3.bf16.msra.mxu0 %v12557_v2 }
 0x50e   :  { %9734 = vmatprep.subr.bf16.mxu0 %v12561_v8 }
 0x510   :  { %9240 = vmatmul.mubr.f32.gmra.mrb[6].mxu0 %v12696_v31 }
 0x511   :  { %9242 = vmatprep.mubr.f32.mxu0 %v12737_v14  ;;  %9736 = vmatpush3.bf16.msra.mxu0 %v12561_v8 }
 0x512   :  { %9738 = vmatprep.subr.bf16.mxu0 %v12565_v30 }
 0x514   :  { %9243 = vmatmul.mubr.f32.gmra.mrb[8].mxu0 %v12718_v19 }
 0x515   :  { %9245 = vmatprep.mubr.f32.mxu0 %v12761_v10  ;;  %9740 = vmatpush3.bf16.msra.mxu0 %v12565_v30 }
 0x518   :  { %9246 = vmatmul.mubr.f32.gmra.mrb[10].mxu0 %v12743_v27 }
 0x519   :  { %9248 = vmatprep.mubr.f32.mxu0 %v12786_v43 }
 0x51c   :  { %9249 = vmatmul.mubr.f32.gmra.mrb[12].mxu0 %v12769_v7 }
 0x51d   :  { %9251 = vmatprep.mubr.f32.mxu0 %v12805_v26 }
 0x520   :  { %9252 = vmatmul.mubr.f32.gmra.mrb[14].mxu0 %v12790_v55 }
 0x521   :  { %9254 = vmatprep.mubr.f32.mxu0 %v12840_v52 }
 0x524   :  { %9255 = vmatmul.mubr.f32.gmra.mrb[16].mxu0 %v12825_v28 }
 0x525   :  { %9273 = vmatprep.mubr.f32.mxu0 %v12660_v40 }
 0x528   :  { %9274 = vmatmul.mubr.f32.vlgmr.msra.gmra.mrb[2].mxu0 %v12657_v0 }
 0x529   :  { %9276 = vmatprep.mubr.f32.mxu0 %v12678_v20 }
 0x52c   :  { %9277 = vmatmul.mubr.f32.gmra.mrb[4].mxu0 %v12674_v57 }
 0x52d   :  { %9279 = vmatprep.mubr.f32.mxu0 %v12700_v60 }
 0x530   :  { %9280 = vmatmul.mubr.f32.gmra.mrb[6].mxu0 %v12696_v31  ;;  %v5760_v31 = vld [vmem:[%s13998_s11 + $0x8] sm:$0xff] }
 0x531   :  { %9282 = vmatprep.mubr.f32.mxu0 %v12737_v14  ;;  %v5826_v49 = vand.u32 4294901760, %v5760_v31 }
 0x533   :  { %v13036_v21 = vsub.f32 %v5760_v31, %v5826_v49  ;;  %v14133_v31 = vand.u32 4294901760, %v13072_v53 }
 0x534   :  { %9283 = vmatmul.mubr.f32.gmra.mrb[8].mxu0 %v12718_v19 }
 0x535   :  { %9285 = vmatprep.mubr.f32.mxu0 %v12761_v10  ;;  %v5761_v10 = vld [vmem:[%s13998_s11 + $0x10] sm:$0xff]  ;;  %v14150_v63 = vand.u32 4294901760, %v13036_v21 }
 0x537   :  { %v6066_v37 = vsub.f32 %v13036_v21, %v14150_v63 }
 0x538   :  { %9286 = vmatmul.mubr.f32.gmra.mrb[10].mxu0 %v12743_v27  ;;  %v5829_v27 = vand.u32 4294901760, %v5761_v10 }
 0x539   :  { %9288 = vmatprep.mubr.f32.mxu0 %v12786_v43  ;;  %v5764_v43 = vld [vmem:[%s13998_s11 + $0x28] sm:$0xff]  ;;  %v6067_v34 = vand.u32 4294901760, %v6066_v37 }
 0x53a   :  { %v5838_v56 = vand.u32 4294901760, %v5764_v43  ;;  %v13046_v35 = vsub.f32 %v5761_v10, %v5829_v27  ;;  %v6101_v10 = vsub.f32 %v13072_v53, %v14133_v31 }
 0x53c   :  { %9289 = vmatmul.mubr.f32.gmra.mrb[12].mxu0 %v12769_v7  ;;  %v13006_v7 = vpack.c.bf16 %v5832_v38, %v5829_v27  ;;  %v14139_v18 = vand.u32 4294901760, %v13046_v35  ;;  %v13062_v4 = vsub.f32 %v5764_v43, %v5838_v56  ;;  %v6102_v38 = vand.u32 4294901760, %v6101_v10 }
 0x53d   :  { %9291 = vmatprep.mubr.f32.mxu0 %v12805_v26 }
 0x53e   :  { %v6073_v61 = vsub.f32 %v13046_v35, %v14139_v18  ;;  %v14134_v29 = vand.u32 4294901760, %v13062_v4 }
 0x540   :  { %9292 = vmatmul.mubr.f32.gmra.mrb[14].mxu0 %v12790_v55  ;;  %v5835_v55 = vand.u32 4294901760, %v5763_v46  ;;  %v6074_v3 = vand.u32 4294901760, %v6073_v61  ;;  %v6094_v54 = vsub.f32 %v13062_v4, %v14134_v29 }
 0x541   :  { %9294 = vmatprep.mubr.f32.mxu0 %v12840_v52 }
 0x542   :  { %v13018_v26 = vpack.c.bf16 %v5838_v56, %v5835_v55  ;;  %v13060_v17 = vsub.f32 %v5763_v46, %v5835_v55  ;;  %v13067_v23 = vpack.c.bf16 %v6081_v24, %v6074_v3  ;;  %v13097_v56 = vpack.c.bf16 %v13048_v16, %v13046_v35 }
 0x544   :  { %9295 = vmatmul.mubr.f32.gmra.mrb[16].mxu0 %v12825_v28  ;;  %v5759_v28 = vld [vmem:[%s13998_s11] sm:$0xff]  ;;  %v14135_v42 = vand.u32 4294901760, %v13060_v17  ;;  %v13101_v36 = vpack.c.bf16 %v13062_v4, %v13060_v17 }
 0x545   :  { %v5823_v60 = vand.u32 4294901760, %v5759_v28 }
 0x546   :  { %v6087_v25 = vsub.f32 %v13060_v17, %v14135_v42 }
 0x547   :  { %v12990_v19 = vpack.c.bf16 %v5826_v49, %v5823_v60  ;;  %v13034_v1 = vsub.f32 %v5759_v28, %v5823_v60  ;;  %v14132_v60 = vand.u32 4294901760, %v13074_v22  ;;  %v6095_v49 = vand.u32 4294901760, %v6094_v54 }
 0x548   :  { %v6088_v28 = vand.u32 4294901760, %v6087_v25 }
 0x549   :  { %9742 = vmatprep.subr.bf16.mxu0 %v12990_v19  ;;  %v6058_v47 = vand.u32 4294901760, %v13034_v1  ;;  %v6108_v44 = vsub.f32 %v13074_v22, %v14132_v60  ;;  %v13093_v55 = vpack.c.bf16 %v13036_v21, %v13034_v1 }
 0x54a   :  { %9744 = vmatpush3.bf16.msra.mxu0 %v12990_v19  ;;  %v13087_v27 = vpack.c.bf16 %v6095_v49, %v6088_v28 }
 0x54b   :  { %9746 = vmatprep.subr.bf16.mxu0 %v13006_v7  ;;  %v6059_v33 = vsub.f32 %v13034_v1, %v6058_v47  ;;  %v6109_v46 = vand.u32 4294901760, %v6108_v44 }
 0x54d   :  { %v6060_v5 = vand.u32 4294901760, %v6059_v33  ;;  %v13089_v43 = vpack.c.bf16 %v6109_v46, %v6102_v38 }
 0x54e   :  { %9748 = vmatpush3.bf16.msra.mxu0 %v13006_v7 }
 0x54f   :  { %9750 = vmatprep.subr.bf16.mxu0 %v13018_v26  ;;  %v13052_v41 = vpack.c.bf16 %v6067_v34, %v6060_v5 }
 0x552   :  { %9752 = vmatpush3.bf16.msra.mxu0 %v13018_v26 }
 0x553   :  { %9754 = vmatprep.subr.bf16.mxu0 %v13030_v50 }
 0x556   :  { %9756 = vmatpush3.bf16.msra.mxu0 %v13030_v50 }
 0x557   :  { %9758 = vmatprep.subr.bf16.mxu0 %v13052_v41 }
 0x580   :  { %v12962_v6 = vpop.f32.mrb[16].mxu1 }
 0x581   :  { %v12964_v2 = vpop.f32.mrb[17].mxu1  ;;  %v4555_v11 = vadd.f32 %v12962_v6, %v13107_v45 }
 0x582   :  { %v4545_v33 = vadd.f32 %v13107_v45, %v12964_v2 }
 0x584   :  { %v12966_v8 = vpop.f32.mrb[18].mxu1 }
 0x585   :  { %v12968_v30 = vpop.f32.mrb[19].mxu1  ;;  %v4575_v51 = vadd.f32 %v12966_v8, %v13107_v45 }
 0x586   :  { %v4565_v24 = vadd.f32 %v13107_v45, %v12968_v30 }
 0x588   :  { %v12970_v0 = vpop.f32.mrb[20].mxu1 }
 0x589   :  { %v12972_v40 = vpop.f32.mrb[21].mxu1  ;;  %v4595_v49 = vadd.f32 %v12970_v0, %v13107_v45 }
 0x58a   :  { %v4585_v10 = vadd.f32 %v13107_v45, %v12972_v40 }
 0x58c   :  { %v12974_v57 = vpop.f32.mrb[22].mxu1 }
 0x58d   :  { %v12976_v20 = vpop.f32.mrb[23].mxu1 }
 0x591   :  { %v12978_v9 = vpop.f32.mrb[24].mxu1 }
 0x592   :  { %v12980_v52 = vpop.f32.mrb[25].mxu1 }
 0x595   :  { %v12988_v12 = vpop.f32.mrb[26].mxu1 }
 0x596   :  { %v12992_v48 = vpop.f32.mrb[27].mxu1 }
 0x599   :  { %v13002_v14 = vpop.f32.mrb[28].mxu1 }
 0x59a   :  { %v13004_v58 = vpop.f32.mrb[29].mxu1 }
 0x59f   :  { %v13016_v32 = vpop.f32.mrb[30].mxu1 }
 0x5a0   :  { %v13020_v15 = vpop.f32.mrb[31].mxu1 }
 0x5fb   :  { %v9275_v37 = vpop.f32.mrb[2].mxu0 }
 0x5fc   :  { %v13113_v5 = vadd.f32 %v9275_v37, %v4555_v11  ;;  %v5553_v34 = vpop.f32.mrb[3].mxu0  ;;  %v4605_v37 = vadd.f32 %v13107_v45, %v12976_v20  ;;  %v4625_v20 = vadd.f32 %v13107_v45, %v12980_v52 }
 0x5fd   :  { %v13115_v61 = vadd.f32 %v5553_v34, %v4545_v33  ;;  %v4615_v33 = vadd.f32 %v12974_v57, %v13107_v45 }
 0x5fe   :  { %v8069_v3 = vmul.f32 -1.442695, %v13113_v5 }
 0x5ff   :  { %v8068_v25 = vmul.f32 -1.442695, %v13115_v61  ;;  %v9278_v6 = vpop.f32.mrb[4].mxu0 }
 0x600   :  { %10402 = vpow2.f32 %v8069_v3  ;;  %v13123_v54 = vadd.f32 %v9278_v6, %v4575_v51  ;;  %v5565_v2 = vpop.f32.mrb[5].mxu0  ;;  %v4635_v6 = vadd.f32 %v12978_v9, %v13107_v45  ;;  %v4655_v9 = vadd.f32 %v12988_v12, %v13107_v45 }
 0x601   :  { %10404 = vpow2.f32 %v8068_v25  ;;  %v13125_v28 = vadd.f32 %v5565_v2, %v4565_v24 }
 0x602   :  { %v8071_v8 = vmul.f32 -1.442695, %v13123_v54 }
 0x603   :  { %v8070_v30 = vmul.f32 -1.442695, %v13125_v28  ;;  %v9281_v44 = vpop.f32.mrb[6].mxu0 }
 0x604   :  { %10406 = vpow2.f32 %v8071_v8  ;;  %v13133_v38 = vadd.f32 %v9281_v44, %v4595_v49  ;;  %v5577_v46 = vpop.f32.mrb[7].mxu0 }
 0x605   :  { %10408 = vpow2.f32 %v8070_v30  ;;  %v13135_v11 = vadd.f32 %v5577_v46, %v4585_v10 }
 0x606   :  { %v8073_v0 = vmul.f32 -1.442695, %v13133_v38 }
 0x607   :  { %v8072_v40 = vmul.f32 -1.442695, %v13135_v11  ;;  %v9284_v34 = vpop.f32.mrb[8].mxu0 }
 0x608   :  { %10410 = vpow2.f32 %v8073_v0  ;;  %v13143_v51 = vadd.f32 %v9284_v34, %v4615_v33  ;;  %v5589_v3 = vpop.f32.mrb[9].mxu0 }
 0x609   :  { %10412 = vpow2.f32 %v8072_v40  ;;  %v13145_v24 = vadd.f32 %v5589_v3, %v4605_v37  ;;  %v4645_v40 = vadd.f32 %v13107_v45, %v12992_v48 }
 0x60a   :  { %v10403_v25 = vpop.eup %10402  ;;  %v8075_v57 = vmul.f32 -1.442695, %v13143_v51 }
 0x60b   :  { %v10405_v2 = vpop.eup %10404  ;;  %v5696_v49 = vadd.f32 1.0, %v10403_v25  ;;  %v8074_v8 = vmul.f32 -1.442695, %v13145_v24  ;;  %v9287_v10 = vpop.f32.mrb[10].mxu0 }
 0x60c   :  { %v5695_v30 = vadd.f32 1.0, %v10405_v2  ;;  %10414 = vpow2.f32 %v8075_v57  ;;  %v13153_v44 = vadd.f32 %v9287_v10, %v4635_v6  ;;  %v5601_v46 = vpop.f32.mrb[11].mxu0 }
 0x60d   :  { %10416 = vrcp.f32 %v5696_v49  ;;  %v13155_v33 = vadd.f32 %v5601_v46, %v4625_v20  ;;  %v4675_v49 = vadd.f32 %v13002_v14, %v13107_v45 }
 0x60e   :  { %v10407_v0 = vpop.eup %10406  ;;  %10418 = vrcp.f32 %v5695_v30  ;;  %v8077_v37 = vmul.f32 -1.442695, %v13153_v44 }
 0x60f   :  { %v10409_v52 = vpop.eup %10408  ;;  %v5698_v34 = vadd.f32 1.0, %v10407_v0  ;;  %10420 = vpow2.f32 %v8074_v8  ;;  %v8076_v3 = vmul.f32 -1.442695, %v13155_v33  ;;  %v9290_v25 = vpop.f32.mrb[12].mxu0  ;;  %v4665_v8 = vadd.f32 %v13107_v45, %v13004_v58 }
 0x610   :  { %v5697_v6 = vadd.f32 1.0, %v10409_v52  ;;  %10422 = vpow2.f32 %v8077_v37  ;;  %v13163_v57 = vadd.f32 %v9290_v25, %v4655_v9  ;;  %v5613_v2 = vpop.f32.mrb[13].mxu0 }
 0x611   :  { %10424 = vrcp.f32 %v5698_v34  ;;  %v13165_v20 = vadd.f32 %v5613_v2, %v4645_v40  ;;  %v4695_v34 = vadd.f32 %v13016_v32, %v13107_v45 }
 0x612   :  { %v10411_v12 = vpop.eup %10410  ;;  %10426 = vrcp.f32 %v5697_v6  ;;  %v8079_v48 = vmul.f32 -1.442695, %v13163_v57 }
 0x613   :  { %v10413_v10 = vpop.eup %10412  ;;  %v5700_v30 = vadd.f32 1.0, %v10411_v12  ;;  %10428 = vpow2.f32 %v8076_v3  ;;  %v8078_v46 = vmul.f32 -1.442695, %v13165_v20  ;;  %v9293_v0 = vpop.f32.mrb[14].mxu0  ;;  %v4685_v3 = vadd.f32 %v13107_v45, %v13020_v15 }
 0x614   :  { %v5699_v9 = vadd.f32 1.0, %v10413_v10  ;;  %10430 = vpow2.f32 %v8079_v48  ;;  %v13173_v37 = vadd.f32 %v9293_v0, %v4675_v49  ;;  %v5625_v52 = vpop.f32.mrb[15].mxu0 }
 0x615   :  { %10432 = vrcp.f32 %v5700_v30  ;;  %v13175_v40 = vadd.f32 %v5625_v52, %v4665_v8 }
 0x616   :  { %v10415_v14 = vpop.eup %10414  ;;  %10434 = vrcp.f32 %v5699_v9  ;;  %v8081_v58 = vmul.f32 -1.442695, %v13173_v37 }
 0x617   :  { %v10417_v25 = vpop.eup %10416  ;;  %v5702_v6 = vadd.f32 1.0, %v10415_v14  ;;  %10436 = vpow2.f32 %v8078_v46  ;;  %v8080_v2 = vmul.f32 -1.442695, %v13175_v40  ;;  %v9296_v12 = vpop.f32.mrb[16].mxu0 }
 0x618   :  { %v10419_v49 = vpop.eup %10418  ;;  %v5744_v48 = vmul.f32 %v10417_v25, %v13113_v5  ;;  %10438 = vpow2.f32 %v8081_v58  ;;  %v13184_v10 = vadd.f32 %v9296_v12, %v4695_v34  ;;  %v5637_v8 = vpop.f32.mrb[17].mxu0 }
 0x619   :  { %v10421_v32 = vpop.eup %10420  ;;  %v5743_v30 = vmul.f32 %v10419_v49, %v13115_v61  ;;  %10440 = vrcp.f32 %v5702_v6  ;;  %v13187_v0 = vadd.f32 %v5637_v8, %v4685_v3 }
 0x61a   :  { %v10423_v9 = vpop.eup %10422  ;;  %v5778_v15 = vsel %vm4416_vm0, %v5744_v48, 0  ;;  %v5701_v45 = vadd.f32 1.0, %v10421_v32  ;;  %10442 = vpow2.f32 %v8080_v2  ;;  %v8083_v46 = vmul.f32 -1.442695, %v13184_v10 }
 0x61b   :  { %v10425_v52 = vpop.eup %10424  ;;  %v13191_v14 = vand.u32 4294901760, %v5778_v15  ;;  %v5775_v5 = vsel %vm4416_vm0, %v5743_v30, 0  ;;  %v5704_v34 = vadd.f32 1.0, %v10423_v9  ;;  %v8082_v12 = vmul.f32 -1.442695, %v13187_v0 }
 0x61c   :  { %v10427_v58 = vpop.eup %10426  ;;  %v13194_v25 = vand.u32 4294901760, %v5775_v5  ;;  %v5746_v61 = vmul.f32 %v10425_v52, %v13123_v54  ;;  %10444 = vrcp.f32 %v5701_v45 }
 0x61d   :  { %v10429_v3 = vpop.eup %10428  ;;  %v13198_v6 = vsub.f32 %v5778_v15, %v13191_v14  ;;  %v5745_v2 = vmul.f32 %v10427_v58, %v13125_v28  ;;  %10446 = vrcp.f32 %v5704_v34 }
 0x61e   :  { %v10431_v49 = vpop.eup %10430  ;;  %v13203_v48 = vsub.f32 %v5775_v5, %v13194_v25  ;;  %v5784_v8 = vsel %vm4416_vm0, %v5746_v61, 0  ;;  %v5703_v32 = vadd.f32 1.0, %v10429_v3  ;;  %10448 = vpow2.f32 %v8083_v46 }
 0x61f   :  { %v10433_v30 = vpop.eup %10432  ;;  %v14136_v54 = vand.u32 4294901760, %v13198_v6  ;;  %v13207_v9 = vand.u32 4294901760, %v5784_v8  ;;  %v5781_v15 = vsel %vm4416_vm0, %v5745_v2, 0  ;;  %v5706_v45 = vadd.f32 1.0, %v10431_v49 }
 0x620   :  { %v10435_v28 = vpop.eup %10434  ;;  %v13210_v52 = vand.u32 4294901760, %v5781_v15  ;;  %v5748_v34 = vmul.f32 %v10433_v30, %v13133_v38  ;;  %10450 = vrcp.f32 %v5703_v32  ;;  %v14142_v5 = vand.u32 4294901760, %v13203_v48 }
 0x621   :  { %v10437_v58 = vpop.eup %10436  ;;  %v5908_v46 = vsub.f32 %v13198_v6, %v14136_v54  ;;  %v13218_v61 = vsub.f32 %v5784_v8, %v13207_v9  ;;  %v5747_v3 = vmul.f32 %v10435_v28, %v13135_v11  ;;  %10452 = vrcp.f32 %v5706_v45 }
 0x622   :  { %v10439_v2 = vpop.eup %10438  ;;  %v13222_v49 = vsub.f32 %v5781_v15, %v13210_v52  ;;  %v5790_v38 = vsel %vm4416_vm0, %v5748_v34, 0  ;;  %v5705_v32 = vadd.f32 1.0, %v10437_v58  ;;  %10454 = vpow2.f32 %v8082_v12 }
 0x623   :  { %v10441_v30 = vpop.eup %10440  ;;  %v5909_v60 = vand.u32 4294901760, %v5908_v46  ;;  %v13225_v31 = vand.u32 4294901760, %v5790_v38  ;;  %v5787_v29 = vsel %vm4416_vm0, %v5747_v3, 0  ;;  %v5708_v42 = vadd.f32 1.0, %v10439_v2 }
 0x624   :  { %v10443_v8 = vpop.eup %10442  ;;  %v13228_v54 = vand.u32 4294901760, %v5787_v29  ;;  %v5750_v11 = vmul.f32 %v10441_v30, %v13143_v51  ;;  %10456 = vrcp.f32 %v5705_v32  ;;  %v5898_v15 = vsub.f32 %v13203_v48, %v14142_v5 }
 0x625   :  { %v13235_v45 = vsub.f32 %v5790_v38, %v13225_v31  ;;  %10458 = vrcp.f32 %v5708_v42  ;;  %v5707_v12 = vadd.f32 1.0, %v10443_v8  ;;  %v14138_v28 = vand.u32 4294901760, %v13222_v49 }
 0x626   :  { %v10445_v34 = vpop.eup %10444  ;;  %v13239_v58 = vsub.f32 %v5787_v29, %v13228_v54  ;;  %v5796_v46 = vsel %vm4416_vm0, %v5750_v11, 0  ;;  %v5899_v3 = vand.u32 4294901760, %v5898_v15  ;;  %v14140_v51 = vand.u32 4294901760, %v13218_v61 }
 0x627   :  { %v10447_v2 = vpop.eup %10446  ;;  %v13243_v32 = vand.u32 4294901760, %v5796_v46  ;;  %v5749_v30 = vmul.f32 %v10445_v34, %v13145_v24  ;;  %10460 = vrcp.f32 %v5707_v12  ;;  %v5918_v42 = vsub.f32 %v13222_v49, %v14138_v28 }
 0x628   :  { %v10449_v38 = vpop.eup %10448  ;;  %v5752_v8 = vmul.f32 %v10447_v2, %v13153_v44  ;;  %9313 = vmatprep.mubr.f32.mxu0 %v5899_v3  ;;  %v5928_v29 = vsub.f32 %v13218_v61, %v14140_v51  ;;  %v14141_v11 = vand.u32 4294901760, %v13239_v58  ;;  %v14143_v15 = vand.u32 4294901760, %v13235_v45 }
 0x629   :  { %v13256_v59 = vsub.f32 %v5796_v46, %v13243_v32  ;;  %v5793_v24 = vsel %vm4416_vm0, %v5749_v30, 0  ;;  %v5710_v12 = vadd.f32 1.0, %v10449_v38  ;;  %9314 = vmatmul.mubr.f32.vlgmr.msra.gmra.mrb[18].mxu0 %v5909_v60  ;;  %v5919_v34 = vand.u32 4294901760, %v5918_v42 }
 0x62a   :  { %v10451_v28 = vpop.eup %10450  ;;  %v13259_v18 = vand.u32 4294901760, %v5793_v24  ;;  %v5802_v44 = vsel %vm4416_vm0, %v5752_v8, 0  ;;  %9760 = vmatpush3.bf16.msra.mxu0 %v13052_v41  ;;  %v5929_v3 = vand.u32 4294901760, %v5928_v29  ;;  %v5938_v2 = vsub.f32 %v13239_v58, %v14141_v11 }
 0x62b   :  { %v10453_v51 = vpop.eup %10452  ;;  %v13266_v46 = vand.u32 4294901760, %v5802_v44  ;;  %v5751_v30 = vmul.f32 %v10451_v28, %v13155_v33  ;;  %10462 = vrcp.f32 %v5710_v12  ;;  %9316 = vmatprep.mubr.f32.mxu0 %v5919_v34  ;;  %9762 = vmatprep.subr.bf16.mxu0 %v13067_v23  ;;  %v5948_v60 = vsub.f32 %v13235_v45, %v14143_v15 }
 0x62c   :  { %v10455_v42 = vpop.eup %10454  ;;  %v13274_v41 = vsub.f32 %v5793_v24, %v13259_v18  ;;  %v5754_v38 = vmul.f32 %v10453_v51, %v13163_v57  ;;  %v5939_v8 = vand.u32 4294901760, %v5938_v2  ;;  %v14144_v29 = vand.u32 4294901760, %v13256_v59 }
 0x62d   :  { %v13279_v11 = vsub.f32 %v5802_v44, %v13266_v46  ;;  %v5799_v33 = vsel %vm4416_vm0, %v5751_v30, 0  ;;  %v5709_v28 = vadd.f32 1.0, %v10455_v42  ;;  %9317 = vmatmul.mubr.f32.gmra.mrb[20].mxu0 %v5929_v3  ;;  %v5949_v12 = vand.u32 4294901760, %v5948_v60 }
 0x62e   :  { %v10457_v34 = vpop.eup %10456  ;;  %v13282_v5 = vand.u32 4294901760, %v5799_v33  ;;  %v5808_v15 = vsel %vm4416_vm0, %v5754_v38, 0  ;;  %9319 = vmatprep.mubr.f32.mxu0 %v5939_v8  ;;  %9764 = vmatpush3.bf16.msra.mxu0 %v13067_v23  ;;  %v14149_v57 = vand.u32 4294901760, %v13274_v41  ;;  %v5968_v51 = vsub.f32 %v13256_v59, %v14144_v29 }
 0x62f   :  { %v10459_v24 = vpop.eup %10458  ;;  %v13290_v44 = vand.u32 4294901760, %v5808_v15  ;;  %v5753_v3 = vmul.f32 %v10457_v34, %v13165_v20  ;;  %10464 = vrcp.f32 %v5709_v28  ;;  %9766 = vmatprep.subr.bf16.mxu0 %v13087_v27  ;;  %v14145_v2 = vand.u32 4294901760, %v13279_v11 }
 0x630   :  { %v13296_v30 = vsub.f32 %v5799_v33, %v13282_v5  ;;  %v5756_v23 = vmul.f32 %v10459_v24, %v13173_v37  ;;  %v5958_v60 = vsub.f32 %v13274_v41, %v14149_v57  ;;  %v5969_v24 = vand.u32 4294901760, %v5968_v51 }
 0x631   :  { %v10461_v42 = vpop.eup %10460  ;;  %v13303_v38 = vsub.f32 %v5808_v15, %v13290_v44  ;;  %v5805_v20 = vsel %vm4416_vm0, %v5753_v3, 0  ;;  %9320 = vmatmul.mubr.f32.gmra.mrb[22].mxu0 %v5949_v12  ;;  %v5988_v15 = vsub.f32 %v13279_v11, %v14145_v2 }
 0x632   :  { %v13306_v8 = vand.u32 4294901760, %v5805_v20  ;;  %v5814_v28 = vsel %vm4416_vm0, %v5756_v23, 0  ;;  %v5755_v33 = vmul.f32 %v10461_v42, %v13175_v40  ;;  %v5959_v34 = vand.u32 4294901760, %v5958_v60  ;;  %9768 = vmatpush3.bf16.msra.mxu0 %v13087_v27 }
 0x633   :  { %v13311_v37 = vand.u32 4294901760, %v5814_v28  ;;  %v14146_v29 = vand.u32 4294901760, %v13296_v30  ;;  %9770 = vmatprep.subr.bf16.mxu0 %v13089_v43  ;;  %v14148_v40 = vand.u32 4294901760, %v13303_v38  ;;  %v5989_v2 = vand.u32 4294901760, %v5988_v15 }
 0x634   :  { %v13319_v12 = vsub.f32 %v5805_v20, %v13306_v8  ;;  %v5811_v3 = vsel %vm4416_vm0, %v5755_v33, 0  ;;  %9322 = vmatprep.mubr.f32.mxu0 %v5959_v34 }
 0x635   :  { %v10463_v27 = vpop.eup %10462  ;;  %v13324_v23 = vsub.f32 %v5814_v28, %v13311_v37  ;;  %v13326_v51 = vand.u32 4294901760, %v5811_v3  ;;  %9323 = vmatmul.mubr.f32.gmra.mrb[24].mxu0 %v5969_v24  ;;  %v5978_v60 = vsub.f32 %v13296_v30, %v14146_v29 }
 0x636   :  { %v5758_v42 = vmul.f32 %v10463_v27, %v13184_v10  ;;  %v14147_v20 = vand.u32 4294901760, %v13319_v12  ;;  %9772 = vmatpush3.bf16.msra.mxu0 %v13089_v43  ;;  %v6008_v10 = vsub.f32 %v13303_v38, %v14148_v40 }
 0x637   :  { %v13335_v33 = vsub.f32 %v5811_v3, %v13326_v51  ;;  %v5979_v34 = vand.u32 4294901760, %v5978_v60  ;;  %9774 = vmatprep.subr.bf16.mxu0 %v13093_v55  ;;  %v6027_v27 = vand.u32 4294901760, %v13324_v23 }
 0x638   :  { %v5820_v28 = vsel %vm4416_vm0, %v5758_v42, 0  ;;  %v5998_v24 = vsub.f32 %v13319_v12, %v14147_v20  ;;  %v6009_v57 = vand.u32 4294901760, %v6008_v10 }
 0x639   :  { %v10465_v43 = vpop.eup %10464  ;;  %v13346_v29 = vand.u32 4294901760, %v5820_v28  ;;  %9325 = vmatprep.mubr.f32.mxu0 %v5979_v34  ;;  %v6017_v15 = vand.u32 4294901760, %v13335_v33  ;;  %v6028_v34 = vsub.f32 %v13324_v23, %v6027_v27 }
 0x63a   :  { %v5757_v3 = vmul.f32 %v10465_v43, %v13187_v0  ;;  %9326 = vmatmul.mubr.f32.gmra.mrb[26].mxu0 %v5989_v2  ;;  %v5999_v60 = vand.u32 4294901760, %v5998_v24 }
 0x63b   :  { %v13351_v42 = vsub.f32 %v5820_v28, %v13346_v29  ;;  %v6018_v20 = vsub.f32 %v13335_v33, %v6017_v15  ;;  %v6029_v24 = vand.u32 4294901760, %v6028_v34 }
 0x63c   :  { %v5817_v40 = vsel %vm4416_vm0, %v5757_v3, 0  ;;  %9328 = vmatprep.mubr.f32.mxu0 %v5999_v60 }
 0x63d   :  { %v13360_v63 = vand.u32 4294901760, %v5817_v40  ;;  %v6019_v0 = vand.u32 4294901760, %v6018_v20  ;;  %v6047_v2 = vand.u32 4294901760, %v13351_v42 }
 0x63e   :  { %9329 = vmatmul.mubr.f32.gmra.mrb[28].mxu0 %v6009_v57 }
 0x63f   :  { %v13364_v28 = vsub.f32 %v5817_v40, %v13360_v63  ;;  %9331 = vmatprep.mubr.f32.mxu0 %v6019_v0  ;;  %v6048_v10 = vsub.f32 %v13351_v42, %v6047_v2 }
 0x641   :  { %v6037_v43 = vand.u32 4294901760, %v13364_v28  ;;  %v6049_v57 = vand.u32 4294901760, %v6048_v10 }
 0x642   :  { %9332 = vmatmul.mubr.f32.gmra.mrb[30].mxu0 %v6029_v24 }
 0x643   :  { %v6038_v3 = vsub.f32 %v13364_v28, %v6037_v43 }
 0x645   :  { %v6039_v20 = vand.u32 4294901760, %v6038_v3 }
 0x647   :  { %9334 = vmatprep.mubr.f32.mxu0 %v6039_v20 }
 0x648   :  { %9335 = vmatmul.mubr.f32.gmra.mrb[32].mxu0 %v6049_v57 }
 0x649   :  { %9353 = vmatprep.mubr.f32.mxu0 %v13194_v25 }
 0x64c   :  { %9354 = vmatmul.mubr.f32.vlgmr.msra.gmra.mrb[18].mxu0 %v13191_v14 }
 0x64d   :  { %9776 = vmatpush3.bf16.msra.mxu0 %v13093_v55  ;;  %9356 = vmatprep.mubr.f32.mxu0 %v13210_v52  ;;  %v446_v55 = vld [vmem:[%s13990_s3] sm:$0xff] }
 0x64e   :  { %9778 = vmatprep.subr.bf16.mxu0 %v13097_v56 }
 0x650   :  { %9357 = vmatmul.mubr.f32.gmra.mrb[20].mxu0 %v13207_v9 }
 0x651   :  { %9359 = vmatprep.mubr.f32.mxu0 %v13228_v54  ;;  %9780 = vmatpush3.bf16.msra.mxu0 %v13097_v56  ;;  %v10690_v56 = vmov 0  }
 0x652   :  { %9782 = vmatprep.subr.bf16.mxu0 %v13101_v36  ;;  %10266 = vset.pattern.permute.xlu1 %v10690_v56 }
 0x653   :  { %10267 = vset.pattern.permute.xlu0 %v10690_v56 }
 0x654   :  { %9360 = vmatmul.mubr.f32.gmra.mrb[22].mxu0 %v13225_v31 }
 0x655   :  { %9362 = vmatprep.mubr.f32.mxu0 %v13259_v18  ;;  %9784 = vmatpush3.bf16.msra.mxu0 %v13101_v36  ;;  %v7133_v36 = vcombine.high %v446_v55, %v446_v55 }
 0x656   :  { %9786 = vmatprep.subr.bf16.mxu0 %v13105_v39 }
 0x657   :  { %v7147_v34 = vrot.slane %v7133_v36, %v12591_v13 }
 0x658   :  { %9363 = vmatmul.mubr.f32.gmra.mrb[24].mxu0 %v13243_v32 }
 0x659   :  { %9365 = vmatprep.mubr.f32.mxu0 %v13282_v5  ;;  %9788 = vmatpush3.bf16.msra.mxu0 %v13105_v39  ;;  %v7140_v39 = vrot.slane %v446_v55, %v12591_v13  ;;  %v7149_v10 = vcombine.high %v7147_v34, %v7147_v34  ;;  %v7163_v20 = vrot.slane %v7147_v34, %v12591_v13 }
 0x65a   :  { %9790 = vmatprep.subr.bf16.mxu0 %v12990_v19 }
 0x65b   :  { %v7156_v40 = vrot.slane %v7140_v39, %v12591_v13  ;;  %v7148_v60 = vcombine.high %v7140_v39, %v7140_v39  ;;  %v7177_v39 = vrot.slane %v7149_v10, %v12591_v13  ;;  %vm7194_vm12 = vcmp.gt.f32.partialorder %v7163_v20, 0.5 }
 0x65c   :  { %9366 = vmatmul.mubr.f32.gmra.mrb[26].mxu0 %v13266_v46  ;;  %v14283_v10 = vand.u32 4294901760, %v13036_v21 }
 0x65d   :  { %9368 = vmatprep.mubr.f32.mxu0 %v13306_v8  ;;  %vm7190_vm8 = vcmp.gt.f32.partialorder %v7156_v40, 0.5  ;;  %v7178_v0 = vcombine.high %v7156_v40, %v7156_v40  ;;  %v7170_v24 = vrot.slane %v7148_v60, %v12591_v13  ;;  %v7179_v40 = vcombine.high %v7163_v20, %v7163_v20 }
 0x65e   :  { %v7198_v3 = vsel %vm7190_vm8, 1, %v10690_v56  ;;  %vm7195_vm13 = vcmp.gt.f32.partialorder %v7177_v39, 0.5  ;;  %v7181_v13 = vcombine.high %v7177_v39, %v7177_v39  ;;  %v9805_v20 = vpack.c.bf16 %v14283_v10, %v6058_v47 }
 0x65f   :  { %v7209_v57 = vrot.slane %v7198_v3, %v14267_v62  ;;  %vm7192_vm9 = vcmp.gt.f32.partialorder %v7178_v0, 0.5  ;;  %v7180_v55 = vcombine.high %v7170_v24, %v7170_v24  ;;  %vm7191_vm10 = vcmp.gt.f32.partialorder %v7170_v24, 0.5 }
 0x660   :  { %9369 = vmatmul.mubr.f32.gmra.mrb[28].mxu0 %v13290_v44  ;;  %v7200_v36 = vsel %vm7192_vm9, 1, %v10690_v56  ;;  %v7199_v34 = vsel %vm7191_vm10, 1, %v10690_v56  ;;  %v7202_v24 = vsel %vm7194_vm12, 1, %v10690_v56  ;;  %vm7196_vm14 = vcmp.gt.f32.partialorder %v7179_v40, 0.5 }
 0x661   :  { %9371 = vmatprep.mubr.f32.mxu0 %v13326_v51  ;;  %vm7193_vm11 = vcmp.gt.f32.partialorder %v7180_v55, 0.5  ;;  %7239 = vperm.xlu1 %10266, %v7209_v57   ;;  %v7217_v60 = vrot.slane %v7200_v36, %v14267_v62  ;;  %v7213_v3 = vrot.slane %v7199_v34, %v14267_v62  ;;  %v7203_v55 = vsel %vm7195_vm13, 1, %v10690_v56 }
 0x662   :  { %v7201_v0 = vsel %vm7193_vm11, 1, %v10690_v56  ;;  %v7225_v36 = vrot.slane %v7202_v24, %v14267_v62  ;;  %vm7197_vm15 = vcmp.gt.f32.partialorder %v7181_v13, 0.5  ;;  %v7204_v39 = vsel %vm7196_vm14, 1, %v10690_v56 }
 0x663   :  { %v7221_v57 = vrot.slane %v7201_v0, %v14267_v62  ;;  %7242 = vperm.xlu0 %10267, %v7213_v3   ;;  %v7229_v1 = vrot.slane %v7203_v55, %v14267_v62  ;;  %v7205_v21 = vsel %vm7197_vm15, 1, %v10690_v56  ;;  %v7233_v47 = vrot.slane %v7204_v39, %v14267_v62  ;;  %v14305_v55 = vld [vmem:[#allocation37_spill] sm:$0xff] }
 0x664   :  { %9372 = vmatmul.mubr.f32.gmra.mrb[30].mxu0 %v13311_v37  ;;  %v7237_v40 = vrot.slane %v7205_v21, %v14267_v62  ;;  %v14285_v34 = vand.u32 4294901760, %v13046_v35  ;;  %v14286_v0 = vand.u32 4294901760, %v13048_v16  ;;  %v14287_v3 = vand.u32 4294901760, %v13198_v6 }
 0x665   :  { %9374 = vmatprep.mubr.f32.mxu0 %v13360_v63  ;;  %7245 = vperm.xlu1 %10266, %v7217_v60   ;;  %v14284_v60 = vand.u32 4294901760, %v13203_v48  ;;  %v14288_v13 = vand.u32 4294901760, %v13222_v49  ;;  %v14289_v24 = vand.u32 4294901760, %v13060_v17  ;;  %v14290_v10 = vand.u32 4294901760, %v13062_v4 }
 0x666   :  { %v9809_v62 = vpack.c.bf16 %v14286_v0, %v14285_v34  ;;  %v14292_v35 = vand.u32 4294901760, %v13239_v58  ;;  %v14293_v16 = vand.u32 4294901760, %v13072_v53  ;;  %v14296_v17 = vand.u32 4294901760, %v13274_v41  ;;  %v10489_v0 = vld [vmem:[#allocation2 + $0x30] sm:$0xff] }
 0x667   :  { %7251 = vperm.xlu0 %10267, %v7225_v36   ;;  %v14297_v4 = vand.u32 4294901760, %v13256_v59  ;;  %v14299_v53 = vand.u32 4294901760, %v13279_v11  ;;  %vm7988_vm11 = vcmask 48128   ;;  %vm7990_vm12 = vcmask 72704  }
 0x668   :  { %9375 = vmatmul.mubr.f32.gmra.mrb[32].mxu0 %v13346_v29  ;;  %vm7992_vm13 = vcmask 97280   ;;  %vm7994_vm14 = vcmask 121856   ;;  %vm7624_vm15 = vcmask 785408  }
 0x669   :  { %9393 = vmatprep.mubr.f32.mxu0 %v13203_v48  ;;  %7248 = vperm.xlu1 %10266, %v7221_v57   ;;  %v9813_v57 = vpack.c.bf16 %v14290_v10, %v14289_v24  ;;  %v14291_v48 = vand.u32 4294901760, %v13218_v61  ;;  %v14307_v10 = vld [vmem:[#allocation47_spill] sm:$0xff] }
 0x66b   :  { %7257 = vperm.xlu0 %10267, %v7233_v47   ;;  %v10488_v47 = vld [vmem:[#allocation2 + $0x38] sm:$0xff] }
 0x66c   :  { %9394 = vmatmul.mubr.f32.vlgmr.msra.gmra.mrb[18].mxu0 %v13198_v6  ;;  %v14294_v6 = vand.u32 4294901760, %v13074_v22  ;;  %v14300_v22 = vand.u32 4294901760, %v13319_v12 }
 0x66d   :  { %9792 = vmatpush3.bf16.msra.mxu0 %v12990_v19  ;;  %9396 = vmatprep.mubr.f32.mxu0 %v13222_v49 }
 0x66e   :  { %9794 = vmatprep.subr.bf16.mxu0 %v13006_v7  ;;  %7254 = vperm.xlu1 %10266, %v7229_v1   ;;  %v9817_v49 = vpack.c.bf16 %v14294_v6, %v14293_v16  ;;  %v14309_v6 = vld [vmem:[#allocation43_spill] sm:$0xff] }
 0x670   :  { %9397 = vmatmul.mubr.f32.gmra.mrb[20].mxu0 %v13218_v61  ;;  %v14298_v61 = vand.u32 4294901760, %v13296_v30 }
 0x671   :  { %9399 = vmatprep.mubr.f32.mxu0 %v13239_v58  ;;  %9796 = vmatpush3.bf16.msra.mxu0 %v13006_v7 }
 0x672   :  { %9798 = vmatprep.subr.bf16.mxu0 %v13018_v26  ;;  %7260 = vperm.xlu1 %10266, %v7237_v40  }
 0x674   :  { %9400 = vmatmul.mubr.f32.gmra.mrb[22].mxu0 %v13235_v45 }
 0x675   :  { %9402 = vmatprep.mubr.f32.mxu0 %v13274_v41  ;;  %9800 = vmatpush3.bf16.msra.mxu0 %v13018_v26  ;;  %v10484_v41 = vld [vmem:[#allocation2 + $0x28] sm:$0xff] }
 0x676   :  { %9802 = vmatprep.subr.bf16.mxu0 %v13030_v50 }
 0x678   :  { %9403 = vmatmul.mubr.f32.gmra.mrb[24].mxu0 %v13256_v59 }
 0x679   :  { %9405 = vmatprep.mubr.f32.mxu0 %v13296_v30  ;;  %9804 = vmatpush3.bf16.msra.mxu0 %v13030_v50 }
 0x67a   :  { %9806 = vmatprep.subr.bf16.mxu0 %v9805_v20 }
 0x67c   :  { %9406 = vmatmul.mubr.f32.gmra.mrb[26].mxu0 %v13279_v11 }
 0x67d   :  { %9408 = vmatprep.mubr.f32.mxu0 %v13319_v12  ;;  %v10486_v12 = vld [vmem:[#allocation2 + $0x18] sm:$0xff] }
 0x680   :  { %9409 = vmatmul.mubr.f32.gmra.mrb[28].mxu0 %v13303_v38 }
 0x681   :  { %9411 = vmatprep.mubr.f32.mxu0 %v13335_v33 }
 0x684   :  { %9412 = vmatmul.mubr.f32.gmra.mrb[30].mxu0 %v13324_v23 }
 0x685   :  { %9414 = vmatprep.mubr.f32.mxu0 %v13364_v28  ;;  %v10487_v28 = vld [vmem:[#allocation2 + $0x10] sm:$0xff] }
 0x688   :  { %9415 = vmatmul.mubr.f32.gmra.mrb[32].mxu0 %v13351_v42  ;;  %v14304_v42 = vld [vmem:[#allocation29_spill] sm:$0xff] }
 0x689   :  { %9433 = vmatprep.mubr.f32.mxu0 %v14284_v60 }
 0x68c   :  { %9434 = vmatmul.mubr.f32.vlgmr.msra.gmra.mrb[18].mxu0 %v14287_v3 }
 0x68d   :  { %9808 = vmatpush3.bf16.msra.mxu0 %v9805_v20  ;;  %9436 = vmatprep.mubr.f32.mxu0 %v14288_v13  ;;  %v14295_v20 = vand.u32 4294901760, %v13235_v45  ;;  %v14301_v45 = vand.u32 4294901760, %v13303_v38  ;;  %v14306_v13 = vld [vmem:[#allocation36_spill] sm:$0xff] }
 0x68e   :  { %9810 = vmatprep.subr.bf16.mxu0 %v9809_v62 }
 0x690   :  { %9437 = vmatmul.mubr.f32.gmra.mrb[20].mxu0 %v14291_v48 }
 0x691   :  { %9439 = vmatprep.mubr.f32.mxu0 %v14292_v35  ;;  %9812 = vmatpush3.bf16.msra.mxu0 %v9809_v62  ;;  %v14308_v35 = vld [vmem:[#allocation34_spill] sm:$0xff] }
 0x692   :  { %9814 = vmatprep.subr.bf16.mxu0 %v9813_v57 }
 0x694   :  { %9440 = vmatmul.mubr.f32.gmra.mrb[22].mxu0 %v14295_v20 }
 0x695   :  { %9442 = vmatprep.mubr.f32.mxu0 %v14296_v17  ;;  %9816 = vmatpush3.bf16.msra.mxu0 %v9813_v57 }
 0x696   :  { %9818 = vmatprep.subr.bf16.mxu0 %v9817_v49 }
 0x698   :  { %9443 = vmatmul.mubr.f32.gmra.mrb[24].mxu0 %v14297_v4  ;;  %v14310_v4 = vld [vmem:[#allocation30_spill] sm:$0xff] }
 0x699   :  { %9445 = vmatprep.mubr.f32.mxu0 %v14298_v61  ;;  %9820 = vmatpush3.bf16.msra.mxu0 %v9817_v49 }
 0x69a   :  { %9822 = vmatprep.subr.bf16.mxu0 %v12990_v19 }
 0x69c   :  { %9446 = vmatmul.mubr.f32.gmra.mrb[26].mxu0 %v14299_v53 }
 0x69d   :  { %9448 = vmatprep.mubr.f32.mxu0 %v14300_v22 }
 0x6a0   :  { %9449 = vmatmul.mubr.f32.gmra.mrb[28].mxu0 %v14301_v45 }
 0x6a1   :  { %9451 = vmatprep.mubr.f32.mxu0 %v6017_v15 }
 0x6a4   :  { %9452 = vmatmul.mubr.f32.gmra.mrb[30].mxu0 %v6027_v27 }
 0x6a5   :  { %9454 = vmatprep.mubr.f32.mxu0 %v6037_v43 }
 0x6a8   :  { %9455 = vmatmul.mubr.f32.gmra.mrb[32].mxu0 %v6047_v2 }
 0x6a9   :  { %9473 = vmatprep.mubr.f32.mxu0 %v13194_v25 }
 0x6ac   :  { %9474 = vmatmul.mubr.f32.vlgmr.msra.gmra.mrb[18].mxu0 %v13191_v14 }
 0x6ad   :  { %9824 = vmatpush3.bf16.msra.mxu0 %v12990_v19  ;;  %9476 = vmatprep.mubr.f32.mxu0 %v13210_v52  ;;  %v10691_v19 = vmov 32  }
 0x6ae   :  { %9826 = vmatprep.subr.bf16.mxu0 %v13006_v7  ;;  %10268 = vset.pattern.permute.xlu0 %v10691_v19 }
 0x6af   :  { %10269 = vset.pattern.permute.xlu1 %v10691_v19 }
 0x6b0   :  { %9477 = vmatmul.mubr.f32.gmra.mrb[20].mxu0 %v13207_v9 }
 0x6b1   :  { %9479 = vmatprep.mubr.f32.mxu0 %v13228_v54  ;;  %9828 = vmatpush3.bf16.msra.mxu0 %v13006_v7  ;;  %v13538_v7 = vld [vmem:[%s13999_s12] ss:$0 sm:$0xff]  ;;  %s10692_s12 = smov 32  }
 0x6b2   :  { %9830 = vmatprep.subr.bf16.mxu0 %v13018_v26 }
 0x6b4   :  { %9480 = vmatmul.mubr.f32.gmra.mrb[22].mxu0 %v13225_v31 }
 0x6b5   :  { %9482 = vmatprep.mubr.f32.mxu0 %v13259_v18  ;;  %9832 = vmatpush3.bf16.msra.mxu0 %v13018_v26 }
 0x6b6   :  { %9834 = vmatprep.subr.bf16.mxu0 %v13030_v50 }
 0x6b8   :  { %9483 = vmatmul.mubr.f32.gmra.mrb[24].mxu0 %v13243_v32 }
 0x6b9   :  { %9485 = vmatprep.mubr.f32.mxu0 %v13282_v5  ;;  %9836 = vmatpush3.bf16.msra.mxu0 %v13030_v50 }
 0x6bc   :  { %9486 = vmatmul.mubr.f32.gmra.mrb[26].mxu0 %v13266_v46 }
 0x6bd   :  { %9488 = vmatprep.mubr.f32.mxu0 %v13306_v8 }
 0x6c0   :  { %9489 = vmatmul.mubr.f32.gmra.mrb[28].mxu0 %v13290_v44 }
 0x6c1   :  { %9491 = vmatprep.mubr.f32.mxu0 %v13326_v51 }
 0x6c4   :  { %9492 = vmatmul.mubr.f32.gmra.mrb[30].mxu0 %v13311_v37 }
 0x6c5   :  { %9494 = vmatprep.mubr.f32.mxu0 %v13360_v63 }
 0x6c8   :  { %9495 = vmatmul.mubr.f32.gmra.mrb[32].mxu0 %v13346_v29 }
 0x6c9   :  { %9513 = vmatprep.mubr.f32.mxu0 %v13194_v25 }
 0x6cc   :  { %9514 = vmatmul.mubr.f32.vlgmr.msra.gmra.mrb[18].mxu0 %v13191_v14 }
 0x6cd   :  { %9516 = vmatprep.mubr.f32.mxu0 %v13210_v52 }
 0x6d0   :  { %9517 = vmatmul.mubr.f32.gmra.mrb[20].mxu0 %v13207_v9 }
 0x6d1   :  { %9519 = vmatprep.mubr.f32.mxu0 %v13228_v54  ;;  %v10482_v54 = vld [vmem:[#allocation2 + $0x8] sm:$0xff] }
 0x6d4   :  { %9520 = vmatmul.mubr.f32.gmra.mrb[22].mxu0 %v13225_v31 }
 0x6d5   :  { %9522 = vmatprep.mubr.f32.mxu0 %v13259_v18 }
 0x6d8   :  { %9523 = vmatmul.mubr.f32.gmra.mrb[24].mxu0 %v13243_v32  ;;  %v10483_v32 = vld [vmem:[#allocation2] sm:$0xff] }
 0x6d9   :  { %9525 = vmatprep.mubr.f32.mxu0 %v13282_v5 }
 0x6dc   :  { %9526 = vmatmul.mubr.f32.gmra.mrb[26].mxu0 %v13266_v46 }
 0x6dd   :  { %9528 = vmatprep.mubr.f32.mxu0 %v13306_v8  ;;  %v14302_v8 = vld [vmem:[#allocation32_spill] sm:$0xff] }
 0x6e0   :  { %9529 = vmatmul.mubr.f32.gmra.mrb[28].mxu0 %v13290_v44  ;;  %v10485_v44 = vld [vmem:[#allocation2 + $0x20] sm:$0xff] }
 0x6e1   :  { %9531 = vmatprep.mubr.f32.mxu0 %v13326_v51  ;;  %v14303_v51 = vld [vmem:[#allocation40_spill] sm:$0xff] }
 0x6e4   :  { %9532 = vmatmul.mubr.f32.gmra.mrb[30].mxu0 %v13311_v37 }
 0x6e5   :  { %9534 = vmatprep.mubr.f32.mxu0 %v13360_v63 }
 0x6e8   :  { %9535 = vmatmul.mubr.f32.gmra.mrb[32].mxu0 %v13346_v29 }
 0x79f   :  { %v9515_v26 = vpop.f32.mrb[18].mxu0 }
 0x7a0   :  { %v9870_v50 = vadd.f32 %v9515_v26, %v13538_v7  ;;  %v6910_v18 = vpop.f32.mrb[19].mxu0 }
 0x7a1   :  { %v9871_v31 = vadd.f32 %v13538_v7, %v6910_v18 }
 0x7a2   :  { %7027 = vperm.xlu0 %10268, %v9870_v50   ;;  %v7005_v9 = vadd.f32 %v10482_v54, %v9870_v50 }
 0x7a3   :  { %v9518_v59 = vpop.f32.mrb[20].mxu0  ;;  %v7004_v11 = vadd.f32 %v10483_v32, %v9871_v31 }
 0x7a4   :  { %v9872_v63 = vadd.f32 %v9518_v59, %v13538_v7  ;;  %v6922_v14 = vpop.f32.mrb[21].mxu0  ;;  %v7287_v37 = vmul.f32 %v7005_v9, %v14302_v8 }
 0x7a5   :  { %v9873_v52 = vadd.f32 %v13538_v7, %v6922_v14  ;;  %v7286_v2 = vmul.f32 %v7004_v11, %v14304_v42 }
 0x7a6   :  { %7037 = vperm.xlu1 %10269, %v9872_v63   ;;  %7022 = vperm.xlu0 %10268, %v9871_v31   ;;  %v7007_v23 = vadd.f32 %v10486_v12, %v9872_v63 }
 0x7a7   :  { %v9521_v25 = vpop.f32.mrb[22].mxu0  ;;  %v7006_v43 = vadd.f32 %v10487_v28, %v9873_v52  ;;  %v10493_v28 = vld [vmem:[#allocation2 + $0x58] sm:$0xff] }
 0x7a8   :  { %v9874_v5 = vadd.f32 %v9521_v25, %v13538_v7  ;;  %v6934_v58 = vpop.f32.mrb[23].mxu0  ;;  %v7289_v24 = vmul.f32 %v7007_v23, %v14306_v13 }
 0x7a9   :  { %v9875_v46 = vadd.f32 %v13538_v7, %v6934_v58  ;;  %v7288_v16 = vmul.f32 %v7006_v43, %v14308_v35 }
 0x7aa   :  { %v7009_v29 = vadd.f32 %v10484_v41, %v9874_v5  ;;  %7032 = vperm.xlu1 %10269, %v9873_v52   ;;  %v10490_v41 = vld [vmem:[#allocation2 + $0x48] sm:$0xff] }
 0x7ab   :  { %v7008_v30 = vadd.f32 %v10485_v44, %v9875_v46  ;;  %v9524_v38 = vpop.f32.mrb[24].mxu0 }
 0x7ac   :  { %v7291_v33 = vmul.f32 %v7009_v29, %v14303_v51  ;;  %v9876_v27 = vadd.f32 %v9524_v38, %v13538_v7  ;;  %v6946_v15 = vpop.f32.mrb[25].mxu0 }
 0x7ad   :  { %v7290_v36 = vmul.f32 %v7008_v30, %v14305_v55  ;;  %v9877_v39 = vadd.f32 %v13538_v7, %v6946_v15 }
 0x7ae   :  { %v7438_v1 = vcombine.low %v7287_v37, %v7291_v33  ;;  %v7439_v21 = vcombine.high %v7287_v37, %v7291_v33  ;;  %v7011_v40 = vadd.f32 %v10488_v47, %v9876_v27  ;;  %7047 = vperm.xlu1 %10269, %v9874_v5   ;;  %7057 = vperm.xlu0 %10268, %v9876_v27   ;;  %v10491_v37 = vld [vmem:[#allocation2 + $0x40] sm:$0xff]  ;;  %v10492_v33 = vld [vmem:[#allocation2 + $0x68] sm:$0xff] }
 0x7af   :  { %v7302_v60 = vcombine.low %v7286_v2, %v7290_v36  ;;  %v7303_v34 = vcombine.high %v7286_v2, %v7290_v36  ;;  %v7010_v62 = vadd.f32 %v10489_v0, %v9877_v39  ;;  %v9527_v3 = vpop.f32.mrb[26].mxu0  ;;  %v10494_v36 = vld [vmem:[#allocation2 + $0x60] sm:$0xff] }
 0x7b0   :  { %v7293_v57 = vmul.f32 %v7011_v40, %v14307_v10  ;;  %v6958_v48 = vpop.f32.mrb[27].mxu0  ;;  %v13557_v61 = vrot.slane %v7438_v1, %v14310_v4  ;;  %v13560_v53 = vrot.slane %v7439_v21, %v14310_v4  ;;  %v13569_v18 = vadd.f32 %v9527_v3, %v13538_v7  ;;  %v14311_v47 = vld [vmem:[#allocation63_spill] sm:$0xff]  ;;  %v14312_v0 = vld [vmem:[#allocation60_spill] sm:$0xff] }
 0x7b1   :  { %v7292_v49 = vmul.f32 %v7010_v62, %v14309_v6  ;;  %v13573_v63 = vrot.slane %v7303_v34, %v14310_v4  ;;  %v9879_v25 = vadd.f32 %v13538_v7, %v6958_v48 }
 0x7b2   :  { %v7454_v20 = vcombine.low %v7289_v24, %v7293_v57  ;;  %v7455_v17 = vcombine.high %v7289_v24, %v7293_v57  ;;  %7042 = vperm.xlu1 %10269, %v9875_v46   ;;  %v7310_v46 = vrot.slane %v7302_v60, %v14310_v4  ;;  %v7013_v29 = vadd.f32 %v10490_v41, %v13569_v18  ;;  %v10495_v60 = vld [vmem:[#allocation2 + $0x50] sm:$0xff]  ;;  %v14320_v41 = vld [vmem:[#allocation64_spill] sm:$0xff] }
 0x7b3   :  { %v7318_v22 = vcombine.low %v7288_v16, %v7292_v49  ;;  %v7319_v45 = vcombine.high %v7288_v16, %v7292_v49  ;;  %v9530_v19 = vpop.f32.mrb[28].mxu0  ;;  %v7012_v12 = vadd.f32 %v10491_v37, %v9879_v25  ;;  %v14313_v57 = vld [vmem:[#allocation50_spill] sm:$0xff]  ;;  %v14314_v16 = vld [vmem:[#allocation56_spill] sm:$0xff] }
 0x7b4   :  { %v13563_v26 = vrot.slane %v7454_v20, %v14310_v4  ;;  %v13566_v50 = vrot.slane %v7455_v17, %v14310_v4  ;;  %v9880_v59 = vadd.f32 %v9530_v19, %v13538_v7  ;;  %v6970_v31 = vpop.f32.mrb[29].mxu0  ;;  %v7295_v40 = vmul.f32 %v7013_v29, %v14311_v47 }
 0x7b5   :  { %v13576_v14 = vrot.slane %v7319_v45, %v14310_v4  ;;  %v13580_v54 = vrot.slane %v7318_v22, %v14310_v4  ;;  %v9881_v44 = vadd.f32 %v13538_v7, %v6970_v31  ;;  %v7294_v48 = vmul.f32 %v7012_v12, %v14313_v57  ;;  %v14315_v45 = vld [vmem:[#allocation55_spill] sm:$0xff] }
 0x7b6   :  { %7052 = vperm.xlu1 %10269, %v9877_v39   ;;  %7077 = vperm.xlu0 %10268, %v9880_v59   ;;  %v7518_v9 = vcombine.low %v13560_v53, %v13566_v50  ;;  %v7503_v52 = vcombine.high %v13557_v61, %v13563_v26  ;;  %v7502_v58 = vcombine.low %v13557_v61, %v13563_v26 }
 0x7b7   :  { %v9533_v5 = vpop.f32.mrb[30].mxu0  ;;  %v7382_v32 = vcombine.low %v13573_v63, %v13576_v14  ;;  %v7519_v11 = vcombine.high %v13560_v53, %v13566_v50  ;;  %v7367_v15 = vcombine.high %v7310_v46, %v13580_v54  ;;  %v7366_v2 = vcombine.low %v7310_v46, %v13580_v54  ;;  %v10496_v53 = vld [vmem:[#allocation2 + $0x78] sm:$0xff] }
 0x7b8   :  { %v13596_v30 = vadd.f32 %v9533_v5, %v13538_v7  ;;  %v6982_v38 = vpop.f32.mrb[31].mxu0  ;;  %v7015_v43 = vadd.f32 %v10493_v28, %v9880_v59  ;;  %v7383_v21 = vcombine.high %v13573_v63, %v13576_v14  ;;  %v7014_v34 = vadd.f32 %v10495_v60, %v9881_v44  ;;  %v10497_v59 = vld [vmem:[#allocation2 + $0x70] sm:$0xff]  ;;  %v14316_v63 = vld [vmem:[#allocation52_spill] sm:$0xff]  ;;  %v14318_v5 = vld [vmem:[#allocation35_spill] sm:$0xff] }
 0x7b9   :  { %v9883_v23 = vadd.f32 %v13538_v7, %v6982_v38  ;;  %v13614_v46 = vrot.slane %v7518_v9, %v14318_v5  ;;  %v13624_v38 = vrot.slane %v7382_v32, %v14318_v5  ;;  %v13627_v37 = vrot.slane %v7519_v11, %v14318_v5 }
 0x7ba   :  { %v7017_v27 = vadd.f32 %v10492_v33, %v13596_v30  ;;  %7062 = vperm.xlu1 %10269, %v9879_v25   ;;  %v7297_v19 = vmul.f32 %v7015_v43, %v14315_v45  ;;  %v7296_v14 = vmul.f32 %v7014_v34, %v14316_v63  ;;  %v14317_v25 = vld [vmem:[#allocation62_spill] sm:$0xff]  ;;  %v13630_v9 = vrot.slane %v7367_v15, %v14318_v5 }
 0x7bb   :  { %v7016_v39 = vadd.f32 %v10494_v36, %v9883_v23  ;;  %v9536_v1 = vpop.f32.mrb[32].mxu0  ;;  %14319 = vst [vmem:[#allocation22_spill] sm:$0xff] %v13614_v46  ;;  %14322 = vst [vmem:[#allocation25_spill] sm:$0xff] %v13624_v38  ;;  %v13634_v28 = vrot.slane %v7366_v2, %v14318_v5 }
 0x7bc   :  { %v7299_v62 = vmul.f32 %v7017_v27, %v14312_v0  ;;  %v9884_v3 = vadd.f32 %v9536_v1, %v13538_v7  ;;  %v6994_v24 = vpop.f32.mrb[33].mxu0 }
 0x7bd   :  { %v7298_v49 = vmul.f32 %v7016_v39, %v14314_v16  ;;  %v9885_v20 = vadd.f32 %v13538_v7, %v6994_v24  ;;  %v13617_v7 = vrot.slane %v7503_v52, %v14318_v5  ;;  %14323 = vst [vmem:[#allocation21_spill] sm:$0xff] %v13634_v28 }
 0x7be   :  { %v7470_v17 = vcombine.low %v7295_v40, %v7299_v62  ;;  %v7471_v61 = vcombine.high %v7295_v40, %v7299_v62  ;;  %v7019_v22 = vadd.f32 %v10496_v53, %v9884_v3  ;;  %7072 = vperm.xlu1 %10269, %v9881_v44   ;;  %7097 = vperm.xlu0 %10268, %v9884_v3  }
 0x7bf   :  { %v7334_v26 = vcombine.low %v7294_v48, %v7298_v49  ;;  %v7335_v50 = vcombine.high %v7294_v48, %v7298_v49  ;;  %v7018_v31 = vadd.f32 %v10497_v59, %v9885_v20  ;;  %v13621_v44 = vrot.slane %v7502_v58, %v14318_v5 }
 0x7c0   :  { %v7301_v54 = vmul.f32 %v7019_v22, %v14317_v25  ;;  %v13637_v58 = vrot.slane %v7383_v21, %v14318_v5  ;;  %v7478_v32 = vrot.slane %v7470_v17, %v14310_v4  ;;  %v7485_v11 = vrot.slane %v7471_v61, %v14310_v4 }
 0x7c1   :  { %v7300_v29 = vmul.f32 %v7018_v31, %v14320_v41  ;;  %14321 = vst [vmem:[#allocation26_spill] sm:$0xff] %v13621_v44  ;;  %v7342_v15 = vrot.slane %v7334_v26, %v14310_v4 }
 0x7c2   :  { %v7486_v12 = vcombine.low %v7297_v19, %v7301_v54  ;;  %v7487_v33 = vcombine.high %v7297_v19, %v7301_v54  ;;  %7082 = vperm.xlu1 %10269, %v9883_v23   ;;  %10270 = vset.pattern.permute.xlu0 %v10690_v56  ;;  %v7349_v56 = vrot.slane %v7335_v50, %v14310_v4 }
 0x7c3   :  { %v7350_v52 = vcombine.low %v7296_v14, %v7300_v29  ;;  %v7351_v27 = vcombine.high %v7296_v14, %v7300_v29 }
 0x7c4   :  { %v7494_v43 = vrot.slane %v7486_v12, %v14310_v4  ;;  %v7501_v23 = vrot.slane %v7487_v33, %v14310_v4  ;;  %v14332_v33 = vld [vmem:[#allocation72_spill] sm:$0xff] }
 0x7c5   :  { %v7358_v36 = vrot.slane %v7350_v52, %v14310_v4  ;;  %v7365_v2 = vrot.slane %v7351_v27, %v14310_v4  ;;  %v14333_v52 = vld [vmem:[#allocation73_spill] sm:$0xff]  ;;  %v14334_v27 = vld [vmem:[#allocation79_spill] sm:$0xff] }
 0x7c6   :  { %7092 = vperm.xlu1 %10269, %v9885_v20   ;;  %v7550_v39 = vcombine.low %v7485_v11, %v7501_v23  ;;  %v7535_v1 = vcombine.high %v7478_v32, %v7494_v43  ;;  %v7534_v21 = vcombine.low %v7478_v32, %v7494_v43  ;;  %v7551_v40 = vcombine.high %v7485_v11, %v7501_v23  ;;  %v13705_v23 = vpop.permute.xlu1 %7239 }
 0x7c7   :  { %v7414_v60 = vcombine.low %v7349_v56, %v7365_v2  ;;  %v7399_v34 = vcombine.high %v7342_v15, %v7358_v36  ;;  %v7398_v62 = vcombine.low %v7342_v15, %v7358_v36  ;;  %v7415_v3 = vcombine.high %v7349_v56, %v7365_v2  ;;  %v13711_v2 = vpop.permute.xlu0 %7242 }
 0x7c8   :  { %v13648_v24 = vrot.slane %v7550_v39, %v14318_v5  ;;  %v13651_v48 = vrot.slane %v7535_v1, %v14318_v5  ;;  %v13654_v49 = vrot.slane %v7534_v21, %v14318_v5  ;;  %v13657_v17 = vrot.slane %v7551_v40, %v14318_v5 }
 0x7c9   :  { %v13660_v20 = vrot.slane %v7414_v60, %v14318_v5  ;;  %v13663_v61 = vrot.slane %v7399_v34, %v14318_v5  ;;  %v13666_v53 = vrot.slane %v7398_v62, %v14318_v5  ;;  %v13669_v22 = vrot.slane %v7415_v3, %v14318_v5 }
 0x7ca   :  { %14324 = vst [vmem:[#allocation24_spill] sm:$0xff] %v13648_v24  ;;  %14325 = vst [vmem:[#allocation31_spill] sm:$0xff] %v13651_v48  ;;  %7067 = vperm.xlu1 %10269, %v13569_v18   ;;  %v7571_v19 = vcombine.high %v13614_v46, %v13648_v24  ;;  %v7568_v26 = vcombine.low %v13617_v7, %v13651_v48  ;;  %v7567_v50 = vcombine.high %v13621_v44, %v13654_v49  ;;  %v7246_v15 = vpop.permute.xlu1 %7245  ;;  %v14335_v46 = vld [vmem:[#allocation67_spill] sm:$0xff]  ;;  %v14341_v44 = vld [vmem:[#allocation65_spill] sm:$0xff] }
 0x7cb   :  { %14326 = vst [vmem:[#allocation33_spill] sm:$0xff] %v13654_v49  ;;  %14327 = vst [vmem:[#allocation28_spill] sm:$0xff] %v13660_v20  ;;  %v7572_v59 = vcombine.low %v13627_v37, %v13657_v17  ;;  %v7435_v31 = vcombine.high %v13624_v38, %v13660_v20  ;;  %v7432_v14 = vcombine.low %v13630_v9, %v13663_v61  ;;  %vm7262_vm1 = vcmp.eq.s32.totalorder %v13705_v23, 1  ;;  %v14345_v20 = vld [vmem:[#allocation48_spill] sm:$0xff]  ;;  %v14349_v48 = vld [vmem:[#allocation81_spill] sm:$0xff] }
 0x7cc   :  { %14328 = vst [vmem:[#allocation23_spill] sm:$0xff] %v13666_v53  ;;  %v7431_v18 = vcombine.high %v13634_v28, %v13666_v53  ;;  %v7436_v54 = vcombine.low %v13637_v58, %v13669_v22  ;;  %7611 = vrot.lane.b32.xlu0 %v7571_v19, %s10692_s12  ;;  %vm7264_vm4 = vcmp.eq.s32.totalorder %v7246_v15, 1  ;;  %vm7263_vm5 = vcmp.eq.s32.totalorder %v13711_v2, 1  ;;  %v14347_v38 = vld [vmem:[#allocation80_spill] sm:$0xff]  ;;  %v14348_v28 = vld [vmem:[#allocation87_spill] sm:$0xff]  ;;  %v14363_v2 = vld [vmem:[#allocation78_spill] sm:$0xff] }
 0x7ce   :  { %7087 = vperm.xlu1 %10269, %v13596_v30   ;;  %v13707_v56 = vpop.permute.xlu1 %7248  ;;  %v13715_v30 = vpop.permute.xlu0 %7251 }
 0x7cf   :  { %vm7265_vm6 = vcmp.eq.s32.totalorder %v13707_v56, 1  ;;  %vm7266_vm7 = vcmp.eq.s32.totalorder %v13715_v30, 1 }
 0x7d0   :  { %7603 = vrot.lane.b32.xlu0 %v7568_v26, %s10693_s19 }
 0x7d2   :  { %7599 = vrot.lane.b32.xlu1 %v7567_v50, %s10692_s12  ;;  %v13709_v36 = vpop.permute.xlu1 %7254  ;;  %v13717_v21 = vpop.permute.xlu0 %7257 }
 0x7d3   :  { %vm7268_vm8 = vcmp.eq.s32.totalorder %v13717_v21, 1  ;;  %vm7267_vm9 = vcmp.eq.s32.totalorder %v13709_v36, 1 }
 0x7d4   :  { %7587 = vrot.lane.b32.xlu0 %v7435_v31, %s10692_s12 }
 0x7d6   :  { %7615 = vrot.lane.b32.xlu1 %v7572_v59, %s10693_s19  ;;  %v13713_v39 = vpop.permute.xlu1 %7260  ;;  %v14329_v59 = vld [vmem:[#allocation77_spill] sm:$0xff] }
 0x7d7   :  { %vm7269_vm10 = vcmp.eq.s32.totalorder %v13713_v39, 1 }
 0x7d8   :  { %7579 = vrot.lane.b32.xlu0 %v7432_v14, %s10693_s19  ;;  %v14330_v14 = vld [vmem:[#allocation71_spill] sm:$0xff] }
 0x7da   :  { %7575 = vrot.lane.b32.xlu1 %v7431_v18, %s10692_s12 }
 0x7de   :  { %7591 = vrot.lane.b32.xlu1 %v7436_v54, %s10693_s19  ;;  %v14331_v54 = vld [vmem:[#allocation68_spill] sm:$0xff] }
 0x821   :  { %v7028_v34 = vpop.permute.xlu0 %7027 }
 0x822   :  { %v7101_v49 = vmul.f32 %v7028_v34, %v14335_v46 }
 0x825   :  { %v7038_v1 = vpop.permute.xlu1 %7037  ;;  %v7023_v3 = vpop.permute.xlu0 %7022 }
 0x826   :  { %v7100_v29 = vmul.f32 %v7023_v3, %v14331_v54  ;;  %v14338_v3 = vld [vmem:[#allocation74_spill] sm:$0xff] }
 0x829   :  { %v7033_v40 = vpop.permute.xlu1 %7032 }
 0x82a   :  { %v7102_v18 = vmul.f32 %v7033_v40, %v14330_v14  ;;  %v14337_v40 = vld [vmem:[#allocation76_spill] sm:$0xff] }
 0x82d   :  { %v7048_v60 = vpop.permute.xlu1 %7047  ;;  %v7058_v26 = vpop.permute.xlu0 %7057 }
 0x82e   :  { %v7105_v12 = vmul.f32 %v7048_v60, %v14332_v33  ;;  %v7107_v14 = vmul.f32 %v7058_v26, %v14337_v40  ;;  %v14339_v33 = vld [vmem:[#allocation66_spill] sm:$0xff]  ;;  %v14340_v60 = vld [vmem:[#allocation84_spill] sm:$0xff] }
 0x82f   :  { %v14344_v40 = vld [vmem:[#allocation86_spill] sm:$0xff] }
 0x831   :  { %v7043_v62 = vpop.permute.xlu1 %7042 }
 0x832   :  { %v7104_v43 = vmul.f32 %v7043_v62, %v14333_v52  ;;  %v7118_v52 = vadd.f32 %v7102_v18, %v14339_v33 }
 0x835   :  { %v7053_v19 = vpop.permute.xlu1 %7052  ;;  %v7078_v11 = vpop.permute.xlu0 %7077 }
 0x836   :  { %v7106_v31 = vmul.f32 %v7053_v19, %v14329_v59  ;;  %v14336_v19 = vld [vmem:[#allocation70_spill] sm:$0xff] }
 0x837   :  { %v7103_v59 = vmul.f32 %v7038_v1, %v14336_v19 }
 0x838   :  { %v7122_v54 = vadd.f32 %v7106_v31, %v14338_v3  ;;  %v14343_v31 = vld [vmem:[#allocation75_spill] sm:$0xff] }
 0x839   :  { %v7063_v50 = vpop.permute.xlu1 %7062 }
 0x83a   :  { %v7108_v24 = vmul.f32 %v7063_v50, %v14334_v27  ;;  %v7116_v27 = vadd.f32 %v7100_v29, %v14341_v44  ;;  %v14342_v50 = vld [vmem:[#allocation69_spill] sm:$0xff]  ;;  %v7123_v29 = vadd.f32 %v7107_v14, %v14338_v3  ;;  %v14352_v14 = vld [vmem:[#allocation44_spill] sm:$0xff]  ;;  %v14353_v3 = vld [vmem:[#allocation83_spill] sm:$0xff] }
 0x83b   :  { %v7121_v46 = vadd.f32 %v7105_v12, %v14342_v50  ;;  %v7120_v1 = vadd.f32 %v7104_v43, %v14342_v50  ;;  %v7276_v12 = vsel %vm7265_vm6, %v7122_v54, %v14345_v20  ;;  %v14346_v43 = vld [vmem:[#allocation42_spill] sm:$0xff]  ;;  %v7111_v54 = vmul.f32 %v7078_v11, %v14353_v3  ;;  %v14364_v3 = vld [vmem:[#allocation61_spill] sm:$0xff] }
 0x83c   :  { %v7124_v19 = vadd.f32 %v7108_v24, %v14343_v31  ;;  %v7272_v50 = vsel %vm7263_vm5, %v7118_v52, %v14346_v43  ;;  %v13764_v52 = vmul.f32 %v7276_v12, %v14309_v6 }
 0x83d   :  { %v7073_v32 = vpop.permute.xlu1 %7072  ;;  %v7098_v34 = vpop.permute.xlu0 %7097  ;;  %v7274_v20 = vsel %vm7264_vm4, %v7120_v1, %v14352_v14  ;;  %v13777_v11 = vmul.f32 %v7272_v50, %v14308_v35  ;;  %v14358_v1 = vld [vmem:[#allocation46_spill] sm:$0xff]  ;;  %v14361_v35 = vld [vmem:[#allocation41_spill] sm:$0xff] }
 0x83e   :  { %v7110_v62 = vmul.f32 %v7073_v32, %v14340_v60  ;;  %v7117_v32 = vadd.f32 %v7101_v49, %v14341_v44  ;;  %v7119_v60 = vadd.f32 %v7103_v59, %v14339_v33  ;;  %v7115_v24 = vmul.f32 %v7098_v34, %v14348_v28  ;;  %v14351_v49 = vld [vmem:[#allocation45_spill] sm:$0xff] }
 0x83f   :  { %v7275_v59 = vsel %vm7264_vm4, %v7121_v46, %v14351_v49  ;;  %v14355_v34 = vld [vmem:[#allocation53_spill] sm:$0xff]  ;;  %v14357_v46 = vld [vmem:[#allocation38_spill] sm:$0xff]  ;;  %v7277_v6 = vsel %vm7265_vm6, %v7123_v29, %v14358_v1  ;;  %vm8000_vm4 = vcmask 195584   ;;  %vm8004_vm6 = vcmask 244736  }
 0x840   :  { %v7126_v53 = vadd.f32 %v7110_v62, %v14347_v38  ;;  %v14354_v62 = vld [vmem:[#allocation49_spill] sm:$0xff]  ;;  %v7271_v15 = vsel %vm7262_vm1, %v7117_v32, %v14357_v46  ;;  %v14360_v49 = vld [vmem:[#allocation82_spill] sm:$0xff]  ;;  %v7273_v50 = vsel %vm7263_vm5, %v7119_v60, %v14361_v35  ;;  %vm8002_vm5 = vcmask 220160  }
 0x841   :  { %v7083_v26 = vpop.permute.xlu1 %7082  ;;  %v7278_v28 = vsel %vm7266_vm7, %v7124_v19, %v14354_v62  ;;  %v13786_v19 = vmul.f32 %v7274_v20, %v14305_v55  ;;  %v7131_v23 = vadd.f32 %v7115_v24, %v14360_v49  ;;  %v7127_v24 = vadd.f32 %v7111_v54, %v14347_v38  ;;  %v14362_v14 = vld [vmem:[#allocation57_spill] sm:$0xff]  ;;  %v14367_v46 = vld [vmem:[#allocation58_spill] sm:$0xff] }
 0x842   :  { %v7112_v18 = vmul.f32 %v7083_v26, %v14344_v40  ;;  %v14350_v40 = vld [vmem:[#allocation39_spill] sm:$0xff]  ;;  %v13801_v55 = vmul.f32 %v7278_v28, %v14313_v57 }
 0x843   :  { %v7270_v44 = vsel %vm7262_vm1, %v7116_v27, %v14350_v40  ;;  %v7285_v54 = vsel %vm7269_vm10, %v7131_v23, %v14364_v3  ;;  %vm7998_vm1 = vcmask 171008  }
 0x844   :  { %v7128_v26 = vadd.f32 %v7112_v18, %v14349_v48  ;;  %v14356_v18 = vld [vmem:[#allocation88_spill] sm:$0xff]  ;;  %v13797_v56 = vmul.f32 %v7270_v44, %v14304_v42  ;;  %v7646_v42 = vmul.f32 %v7277_v6, %v14307_v10 }
 0x845   :  { %v7093_v33 = vpop.permute.xlu1 %7092 }
 0x846   :  { %v7282_v27 = vsel %vm7268_vm8, %v7128_v26, %v14355_v34  ;;  %v7114_v43 = vmul.f32 %v7093_v33, %v14356_v18  ;;  %v14359_v26 = vld [vmem:[#allocation51_spill] sm:$0xff]  ;;  %v7655_v38 = vcombine.low %v13797_v56, %v13786_v19  ;;  %v14366_v34 = vld [vmem:[#allocation85_spill] sm:$0xff] }
 0x847   :  { %v13783_v12 = vmul.f32 %v7282_v27, %v14314_v16  ;;  %v7280_v40 = vsel %vm7267_vm9, %v7126_v53, %v14359_v26  ;;  %v7644_v16 = vmul.f32 %v7275_v59, %v14303_v51  ;;  %v7671_v53 = vcombine.low %v13777_v11, %v13764_v52  ;;  %v14368_v26 = vld [vmem:[#allocation59_spill] sm:$0xff] }
 0x848   :  { %v7130_v32 = vadd.f32 %v7114_v43, %v14360_v49  ;;  %v13812_v44 = vmul.f32 %v7280_v40, %v14316_v63  ;;  %v7640_v59 = vmul.f32 %v7271_v15, %v14302_v8  ;;  %v7642_v63 = vmul.f32 %v7273_v50, %v14306_v13 }
 0x849   :  { %v7068_v29 = vpop.permute.xlu1 %7067  ;;  %v7687_v51 = vcombine.low %v13801_v55, %v13783_v12  ;;  %v13834_v18 = vrot.slane %v7671_v53, %v14310_v4  ;;  %v7654_v43 = vmul.f32 %v7285_v54, %v14317_v25  ;;  %v13848_v1 = vrot.slane %v7655_v38, %v14310_v4 }
 0x84a   :  { %v7284_v20 = vsel %vm7269_vm10, %v7130_v32, %v14362_v14  ;;  %v7109_v60 = vmul.f32 %v7068_v29, %v14363_v2  ;;  %v7791_v28 = vcombine.low %v7640_v59, %v7644_v16  ;;  %v7807_v39 = vcombine.low %v7642_v63, %v7646_v42 }
 0x84b   :  { %v13817_v57 = vmul.f32 %v7284_v20, %v14320_v41  ;;  %v14365_v41 = vld [vmem:[#allocation54_spill] sm:$0xff]  ;;  %v7719_v30 = vcombine.low %v13848_v1, %v13834_v18  ;;  %v7792_v53 = vcombine.high %v7640_v59, %v7644_v16  ;;  %v7808_v21 = vcombine.high %v7642_v63, %v7646_v42 }
 0x84c   :  { %v7125_v10 = vadd.f32 %v7109_v60, %v14343_v31  ;;  %v7281_v8 = vsel %vm7267_vm9, %v7127_v24, %v14365_v41  ;;  %v13838_v31 = vrot.slane %v7687_v51, %v14310_v4  ;;  %v7799_v49 = vrot.slane %v7791_v28, %v14310_v4 }
 0x84d   :  { %v7703_v33 = vcombine.low %v13812_v44, %v13817_v57  ;;  %v7088_v62 = vpop.permute.xlu1 %7087  ;;  %v7650_v6 = vmul.f32 %v7281_v8, %v14315_v45  ;;  %v7815_v35 = vrot.slane %v7807_v39, %v14310_v4  ;;  %v13866_v24 = vrot.slane %v7719_v30, %v14318_v5 }
 0x84e   :  { %v7113_v27 = vmul.f32 %v7088_v62, %v14366_v34  ;;  %v7279_v15 = vsel %vm7266_vm7, %v7125_v10, %v14367_v46  ;;  %v13876_v16 = vrot.slane %v7792_v53, %v14310_v4  ;;  %v13879_v42 = vrot.slane %v7808_v21, %v14310_v4 }
 0x84f   :  { %v13841_v13 = vrot.slane %v7703_v33, %v14310_v4  ;;  %v7839_v23 = vcombine.low %v7650_v6, %v7654_v43  ;;  %v7840_v14 = vcombine.high %v7650_v6, %v7654_v43  ;;  %v7856_v54 = vcombine.high %v7799_v49, %v7815_v35 }
 0x850   :  { %v7129_v36 = vadd.f32 %v7113_v27, %v14349_v48  ;;  %v7648_v48 = vmul.f32 %v7279_v15, %v14311_v47  ;;  %v7855_v47 = vcombine.low %v7799_v49, %v7815_v35  ;;  %v7704_v63 = vcombine.high %v13812_v44, %v13817_v57 }
 0x851   :  { %v7751_v25 = vcombine.low %v13838_v31, %v13841_v13  ;;  %v7847_v2 = vrot.slane %v7839_v23, %v14310_v4  ;;  %v7854_v10 = vrot.slane %v7840_v14, %v14310_v4  ;;  %v7871_v8 = vcombine.low %v13876_v16, %v13879_v42 }
 0x852   :  { %v7283_v40 = vsel %vm7268_vm8, %v7129_v36, %v14368_v26  ;;  %v7863_v59 = vrot.slane %v7855_v47, %v14318_v5  ;;  %v7672_v34 = vcombine.high %v13777_v11, %v13764_v52  ;;  %v7688_v27 = vcombine.high %v13801_v55, %v13783_v12 }
 0x853   :  { %v7652_v32 = vmul.f32 %v7283_v40, %v14312_v0  ;;  %v13863_v45 = vrot.slane %v7751_v25, %v14318_v5  ;;  %v7870_v44 = vrot.slane %v7856_v54, %v14318_v5  ;;  %v7656_v57 = vcombine.high %v13797_v56, %v13786_v19 }
 0x854   :  { %v7718_v39 = vrot.slane %v7704_v63, %v14310_v4  ;;  %v7752_v52 = vcombine.high %v13838_v31, %v13841_v13  ;;  %v7879_v11 = vrot.slane %v7871_v8, %v14318_v5  ;;  %v7720_v12 = vcombine.high %v13848_v1, %v13834_v18 }
 0x855   :  { %v7823_v50 = vcombine.low %v7648_v48, %v7652_v32  ;;  %v7824_v29 = vcombine.high %v7648_v48, %v7652_v32  ;;  %v7783_v0 = vcombine.low %v13866_v24, %v13863_v45  ;;  %v7686_v19 = vrot.slane %v7672_v34, %v14310_v4 }
 0x856   :  { %v7702_v56 = vrot.slane %v7688_v27, %v14310_v4  ;;  %v7670_v55 = vrot.slane %v7656_v57, %v14310_v4  ;;  %v7766_v25 = vrot.slane %v7752_v52, %v14318_v5  ;;  %v7734_v13 = vrot.slane %v7720_v12, %v14318_v5 }
 0x857   :  { %v7831_v20 = vrot.slane %v7823_v50, %v14310_v4  ;;  %v13873_v38 = vrot.slane %v7824_v29, %v14310_v4  ;;  %v7784_v18 = vcombine.high %v13866_v24, %v13863_v45  ;;  %v7872_v29 = vcombine.high %v13876_v16, %v13879_v42 }
 0x858   :  { %v7767_v31 = vcombine.low %v7702_v56, %v7718_v39  ;;  %v7735_v26 = vcombine.low %v7670_v55, %v7686_v19  ;;  %v7785_v40 = vcombine.low %v7734_v13, %v7766_v25  ;;  %v7768_v49 = vcombine.high %v7702_v56, %v7718_v39 }
 0x859   :  { %v7887_v60 = vcombine.low %v7831_v20, %v7847_v2  ;;  %v7888_v51 = vcombine.high %v7831_v20, %v7847_v2  ;;  %v7903_v41 = vcombine.low %v13873_v38, %v7854_v10  ;;  %v7736_v30 = vcombine.high %v7670_v55, %v7686_v19  ;;  %v14377_v55 = vld [vmem:[#allocation25_spill] sm:$0xff] }
 0x85a   :  { %v7775_v1 = vrot.slane %v7767_v31, %v14318_v5  ;;  %v7743_v4 = vrot.slane %v7735_v26, %v14318_v5  ;;  %v7786_v48 = vcombine.high %v7734_v13, %v7766_v25  ;;  %v7782_v32 = vrot.slane %v7768_v49, %v14318_v5 }
 0x85b   :  { %v7895_v3 = vrot.slane %v7887_v60, %v14318_v5  ;;  %v7902_v28 = vrot.slane %v7888_v51, %v14318_v5  ;;  %v7911_v15 = vrot.slane %v7903_v41, %v14318_v5  ;;  %v7904_v35 = vcombine.high %v13873_v38, %v7854_v10 }
 0x85c   :  { %v7787_v23 = vcombine.low %v7743_v4, %v7775_v1  ;;  %v7750_v50 = vrot.slane %v7736_v30, %v14318_v5  ;;  %v7788_v21 = vcombine.high %v7743_v4, %v7775_v1  ;;  %v7886_v20 = vrot.slane %v7872_v29, %v14318_v5  ;;  %v14381_v1 = vld [vmem:[#allocation33_spill] sm:$0xff] }
 0x85d   :  { %v7919_v33 = vcombine.low %v7863_v59, %v7895_v3  ;;  %v7920_v62 = vcombine.high %v7863_v59, %v7895_v3  ;;  %v7921_v43 = vcombine.low %v7870_v44, %v7902_v28  ;;  %v7922_v46 = vcombine.high %v7870_v44, %v7902_v28 }
 0x85e   :  { %v7923_v36 = vcombine.low %v7879_v11, %v7911_v15  ;;  %v7924_v6 = vcombine.high %v7879_v11, %v7911_v15  ;;  %v7789_v53 = vcombine.low %v7750_v50, %v7782_v32  ;;  %v7918_v14 = vrot.slane %v7904_v35, %v14318_v5  ;;  %v14372_v5 = vld [vmem:[#allocation31_spill] sm:$0xff]  ;;  %v14384_v35 = vld [vmem:[#allocation24_spill] sm:$0xff] }
 0x85f   :  { %7956 = vrot.lane.b32.xlu0 %v7919_v33, %s10694_s1  ;;  %7960 = vrot.lane.b32.xlu1 %v7920_v62, %s10695_s23  ;;  %v14369_v47 = vcombine.high %v13630_v9, %v13663_v61  ;;  %v7790_v60 = vcombine.high %v7750_v50, %v7782_v32  ;;  %v14370_v51 = vcombine.high %v13637_v58, %v13669_v22  ;;  %v7612_v9 = vpop.permute.xlu0 %7611  ;;  %v7600_v61 = vpop.permute.xlu1 %7599  ;;  %vm8006_vm7 = vcmask 269312   ;;  %v14383_v32 = vld [vmem:[#allocation22_spill] sm:$0xff] }
 0x860   :  { %v7925_v2 = vcombine.low %v7886_v20, %v7918_v14  ;;  %v14371_v38 = vcombine.high %v13627_v37, %v13657_v17  ;;  %v14373_v16 = vcombine.high %v13617_v7, %v14372_v5  ;;  %v7926_v42 = vcombine.high %v7886_v20, %v7918_v14 }
 0x861   :  { %v14385_v50 = vcombine.low %v14383_v32, %v14384_v35  ;;  %vm8008_vm8 = vcmask 293888   ;;  %vm8010_vm9 = vcmask 318464   ;;  %vm8012_vm10 = vcmask 343040  }
 0x863   :  { %7964 = vrot.lane.b32.xlu0 %v7921_v43, %s10696_s24  ;;  %7968 = vrot.lane.b32.xlu1 %v7922_v46, %s10697_s7  ;;  %v7604_v59 = vpop.permute.xlu0 %7603  ;;  %v7616_v3 = vpop.permute.xlu1 %7615  ;;  %v14374_v43 = vld [vmem:[#allocation21_spill] sm:$0xff]  ;;  %v14375_v46 = vld [vmem:[#allocation23_spill] sm:$0xff]  ;;  %v7632_v29 = vsel %vm672_vm3, %v14385_v50, %v7612_v9 }
 0x864   :  { %v14376_v15 = vcombine.low %v14374_v43, %v14375_v46 }
 0x867   :  { %7972 = vrot.lane.b32.xlu0 %v7923_v36, %s10698_s2  ;;  %7976 = vrot.lane.b32.xlu1 %v7924_v6, %s10699_s9  ;;  %v7588_v54 = vpop.permute.xlu0 %7587  ;;  %v7576_v58 = vpop.permute.xlu1 %7575  ;;  %v14378_v36 = vld [vmem:[#allocation28_spill] sm:$0xff] }
 0x868   :  { %v7622_v52 = vsel %vm672_vm3, %v14376_v15, %v7576_v58  ;;  %v14379_v6 = vcombine.low %v14377_v55, %v14378_v36 }
 0x86a   :  { %v7626_v25 = vsel %vm672_vm3, %v14379_v6, %v7588_v54 }
 0x86b   :  { %7932 = vrot.lane.b32.xlu0 %v7785_v40, %s10700_s4  ;;  %7928 = vrot.lane.b32.xlu1 %v7784_v18, %s10701_s8  ;;  %v7580_v22 = vpop.permute.xlu0 %7579  ;;  %v7592_v10 = vpop.permute.xlu1 %7591  ;;  %v14380_v18 = vld [vmem:[#allocation26_spill] sm:$0xff] }
 0x86c   :  { %v7623_v45 = vsel %vm4416_vm0, %v7622_v52, %v7580_v22  ;;  %v7627_v31 = vsel %vm4416_vm0, %v7626_v25, %v7592_v10  ;;  %v14382_v49 = vcombine.low %v14380_v18, %v14381_v1 }
 0x86e   :  { %v7629_v4 = vsel %vm672_vm3, %v14382_v49, %v7600_v61  ;;  %vm8014_vm3 = vcmask 367616  }
 0x86f   :  { %7940 = vrot.lane.b32.xlu0 %v7787_v23, %s10702_s20  ;;  %7936 = vrot.lane.b32.xlu1 %v7786_v48, %s10703_s25 }
 0x873   :  { %7948 = vrot.lane.b32.xlu0 %v7789_v53, %s10704_s27  ;;  %7944 = vrot.lane.b32.xlu1 %v7788_v21, %s10705_s29  ;;  %v7633_v21 = vsel %vm4416_vm0, %v7632_v29, %v7616_v3 }
 0x877   :  { %7980 = vrot.lane.b32.xlu0 %v7925_v2, %s10706_s15  ;;  %7583 = vrot.lane.b32.xlu1 %v14369_v47, %s10707_s10  ;;  %v7630_v2 = vsel %vm4416_vm0, %v7629_v4, %v7604_v59 }
 0x87b   :  { %7595 = vrot.lane.b32.xlu0 %v14370_v51, %s10707_s10  ;;  %7952 = vrot.lane.b32.xlu1 %v7790_v60, %s10708_s22 }
 0x87f   :  { %7619 = vrot.lane.b32.xlu0 %v14371_v38, %s10707_s10  ;;  %7607 = vrot.lane.b32.xlu1 %v14373_v16, %s10707_s10 }
 0x883   :  { %7984 = vrot.lane.b32.xlu1 %v7926_v42, %s10709_s5 }
 0x8d1   :  { %v7957_v63 = vpop.permute.xlu0 %7956  ;;  %v7961_v33 = vpop.permute.xlu1 %7960 }
 0x8d5   :  { %v7965_v62 = vpop.permute.xlu0 %7964  ;;  %v7969_v37 = vpop.permute.xlu1 %7968 }
 0x8d9   :  { %v7973_v17 = vpop.permute.xlu0 %7972  ;;  %v7977_v28 = vpop.permute.xlu1 %7976 }
 0x8dd   :  { %v7933_v41 = vpop.permute.xlu0 %7932  ;;  %v7929_v7 = vpop.permute.xlu1 %7928 }
 0x8de   :  { %v7987_v27 = vsel %vm559_vm2, %v7783_v0, %v7929_v7  ;;  %vm7996_vm2 = vcmask 146432  }
 0x8df   :  { %v7989_v44 = vsel %vm7988_vm11, %v7987_v27, %v7933_v41 }
 0x8e1   :  { %v7941_v8 = vpop.permute.xlu0 %7940  ;;  %v7937_v34 = vpop.permute.xlu1 %7936 }
 0x8e2   :  { %v7991_v11 = vsel %vm7990_vm12, %v7989_v44, %v7937_v34 }
 0x8e3   :  { %v7993_v12 = vsel %vm7992_vm13, %v7991_v11, %v7941_v8 }
 0x8e5   :  { %v7949_v57 = vpop.permute.xlu0 %7948  ;;  %v7945_v39 = vpop.permute.xlu1 %7944 }
 0x8e6   :  { %v7995_v24 = vsel %vm7994_vm14, %v7993_v12, %v7945_v39 }
 0x8e7   :  { %v7997_v26 = vsel %vm7996_vm2, %v7995_v24, %v7949_v57 }
 0x8e9   :  { %v7981_v19 = vpop.permute.xlu0 %7980  ;;  %v7584_v56 = vpop.permute.xlu1 %7583 }
 0x8ea   :  { %v7625_v0 = vsel %vm7624_vm15, %v7623_v45, %v7584_v56 }
 0x8eb   :  { %7635 = vst [vmem:[#allocation11] sm:$0xff] %v7625_v0 }
 0x8ed   :  { %v7596_v13 = vpop.permute.xlu0 %7595  ;;  %v7953_v40 = vpop.permute.xlu1 %7952 }
 0x8ee   :  { %v7628_v30 = vsel %vm7624_vm15, %v7627_v31, %v7596_v13  ;;  %v7999_v23 = vsel %vm7998_vm1, %v7997_v26, %v7953_v40 }
 0x8ef   :  { %7636 = vst [vmem:[#allocation11 + $0x8] sm:$0xff] %v7628_v30  ;;  %v8001_v48 = vsel %vm8000_vm4, %v7999_v23, %v7957_v63 }
 0x8f0   :  { %v8003_v53 = vsel %vm8002_vm5, %v8001_v48, %v7961_v33 }
 0x8f1   :  { %v8005_v14 = vsel %vm8004_vm6, %v8003_v53, %v7965_v62  ;;  %v7620_v20 = vpop.permute.xlu0 %7619  ;;  %v7608_v47 = vpop.permute.xlu1 %7607 }
 0x8f2   :  { %v7634_v60 = vsel %vm7624_vm15, %v7633_v21, %v7620_v20  ;;  %v7631_v51 = vsel %vm7624_vm15, %v7630_v2, %v7608_v47  ;;  %v8007_v38 = vsel %vm8006_vm7, %v8005_v14, %v7969_v37 }
 0x8f3   :  { %7638 = vst [vmem:[#allocation11 + $0x18] sm:$0xff] %v7634_v60  ;;  %7637 = vst [vmem:[#allocation11 + $0x10] sm:$0xff] %v7631_v51  ;;  %v8009_v5 = vsel %vm8008_vm8, %v8007_v38, %v7973_v17 }
 0x8f4   :  { %v8011_v16 = vsel %vm8010_vm9, %v8009_v5, %v7977_v28 }
 0x8f5   :  { %10619 = shalt.err (!%p10616_p2)
}
 0x8f6   :  { %s10620_s11 = scalar_lea.hbm %s14000_s13, 512 }
 0x8f7   :  { %p10621_p3 = scmp.ne.s32.totalorder %s14000_s13, %s10620_s11  ;;  %p10624_p4 = scmp.lt.u32.totalorder %s10620_s11, %s14000_s13 }
 0x8f9   :  { %p10626_p5 = pnand %p10624_p4, %p10621_p3 }
 0x8fb   :  { %10629 = shalt.err (!%p10626_p5)
}
 0x8fc   :  { %8027 = dma.vmem_to_hbm [thread:$0]  %s8025_s0, 512, %s14000_s13, [#allocation4]   ;;  %vm8016_vm0 = vcmask 392192   ;;  %v8013_v42 = vsel %vm8012_vm10, %v8011_v16, %v7981_v19  ;;  %v7985_v9 = vpop.permute.xlu1 %7984 }
 0x8fd   :  { %v8015_v61 = vsel %vm8014_vm3, %v8013_v42, %v7985_v9  ;;  %s10630_s23 = scalar_lea.vmem %s8035_s30, 128  ;;  %p10635_p7 = scmp.lt.s32.totalorder %s8035_s30, %s8035_s30 }
 0x8fe   :  { %8017 = vst.msk [vmem:[#allocation12] sm:$0xff] %vm8016_vm0, %v8015_v61  ;;  %p10631_p6 = scmp.ne.s32.totalorder %s8035_s30, %s10630_s23  ;;  %p10636_p8 = scmp.lt.s32.totalorder %s10630_s23, %s10630_s23 }
 0x900   :  { %p10637_p9 = por %p10636_p8, %p10635_p7 }
 0x902   :  { %p10638_p10 = pnand %p10637_p9, %p10631_p6 }
 0x904   :  { %10641 = shalt.err (!%p10638_p10)
}
 0x905   :  { %s10642_s2 = scalar_lea.hbm %s14001_s14, 128 }
 0x906   :  { %p10643_p11 = scmp.ne.s32.totalorder %s14001_s14, %s10642_s2  ;;  %p10646_p12 = scmp.lt.u32.totalorder %s10642_s2, %s14001_s14 }
 0x908   :  { %p10648_p13 = pnand %p10646_p12, %p10643_p11 }
 0x90a   :  { %10651 = shalt.err (!%p10648_p13)
}
 0x90b   :  { %8037 = dma.vmem_to_hbm [thread:$0]  %s8035_s30, 128, %s14001_s14, [#allocation13]  }
 0x90c   :  { %10658 = dma.done.wait [#allocation4], 512  }
 0x90d   :  { %10659 = vsyncadd [#allocation4], 4294966784 }
 0x90e   :  { %10660 = dma.done.wait [#allocation13], 128  }
 0x90f   :  { %10661 = vsyncadd [#allocation13], 4294967168 }
 0x910   :  { %8044 = vsyncpa [#allocation3], 1 }
 0x911   :  { %8045 = vsyncpa [#allocation6], 1 }
 0x912   :  { %8046 = vsyncpa [#allocation9], 1 }
 0x913   :  { %8047 = vsyncpa [#allocation4], 1 }
 0x914   :  { %8048 = vsyncpa [#allocation13], 1 }

</bundles_post_ra>
